<compile_context>
chip_gen: v6e
topology: v6e:2x2x1
jax: 0.10.0
libtpu: 0.0.40
codegen_flags: <defaults>
</compile_context>

<pallas_src>
import jax
import jax.numpy as jnp
from jax.experimental import pallas as pl
from jax.experimental.pallas import tpu as pltpu

EPS = 1e-3  # BatchNorm2d(eps=0.001)


def fused_add_conv_bn_kernel(x1_ref, x2_ref, w_ref, gamma_ref, beta_ref, o_ref):
    # x1/x2: (Cin, rows)  w: (Cout, Cin)  gamma/beta: (Cout, 1)  o: (Cout, rows)
    x = x1_ref[...] + x2_ref[...]                                   # operator.add
    w = w_ref[...]

    # 1x1 conv == matmul on the MXU: (Cout, Cin) @ (Cin, rows) -> (Cout, rows)
    y = jnp.dot(w, x, preferred_element_type=jnp.float32)

    # BatchNorm2d (training mode): biased batch statistics over rows == (N, H, W).
    # mean(y, axis=rows) == w @ mean(x, axis=rows)  -> cheap MXU op, no XLU pass on y.
    mean_x = jnp.mean(x, axis=1, keepdims=True)                     # (Cin, 1)
    mean = jnp.dot(w, mean_x, preferred_element_type=jnp.float32)   # (Cout, 1)

    # Single reduction pass over y for E[y^2]; var = E[y^2] - mean^2.
    ex2 = jnp.mean(y * y, axis=1, keepdims=True)                    # (Cout, 1)
    var = ex2 - mean * mean

    # Fold normalization + affine into one multiply-add pass over the output tile.
    scale = gamma_ref[...] * jax.lax.rsqrt(var + EPS)               # (Cout, 1)
    bias = beta_ref[...] - mean * scale                             # (Cout, 1)
    o_ref[...] = (y * scale + bias).astype(o_ref.dtype)


def fused_add_conv_bn(x158, x143, weight, gamma, beta):
    """x158, x143: (N, Cin, H, W) float32.  weight: (Cout, Cin, 1, 1).
    gamma, beta: (Cout,).  Returns (N, Cout, H, W) float32."""
    N, Cin, H, W = x158.shape
    Cout = weight.shape[0]
    rows = N * H * W

    if N == 1:
        # Free reshape: (1, Cin, H, W) -> (Cin, H*W). No transpose materialized.
        x1 = x158.reshape(Cin, rows)
        x2 = x143.reshape(Cin, rows)
    else:
        # General-N fallback (BN reduces over N too, so channels must lead).
        x1 = jnp.transpose(x158, (1, 0, 2, 3)).reshape(Cin, rows)
        x2 = jnp.transpose(x143, (1, 0, 2, 3)).reshape(Cin, rows)

    w = weight.reshape(Cout, Cin)          # no .T needed in this orientation
    g = gamma.reshape(Cout, 1)
    b = beta.reshape(Cout, 1)

    cost = pl.CostEstimate(
        flops=2 * rows * Cin * Cout + 4 * rows * Cout,
        transcendentals=Cout,
        bytes_accessed=4 * (2 * rows * Cin + Cin * Cout + 2 * Cout + rows * Cout),
    )

    out = pl.pallas_call(
        fused_add_conv_bn_kernel,
        out_shape=jax.ShapeDtypeStruct((Cout, rows), jnp.float32),
        grid_spec=pl.GridSpec(
            grid=(1,),
            in_specs=[
                pl.BlockSpec((Cin, rows), lambda i: (0, 0)),
                pl.BlockSpec((Cin, rows), lambda i: (0, 0)),
                pl.BlockSpec((Cout, Cin), lambda i: (0, 0)),
                pl.BlockSpec((Cout, 1), lambda i: (0, 0)),
                pl.BlockSpec((Cout, 1), lambda i: (0, 0)),
            ],
            out_specs=pl.BlockSpec((Cout, rows), lambda i: (0, 0)),
        ),
        compiler_params=pltpu.CompilerParams(
            dimension_semantics=("arbitrary",)),
        cost_estimate=cost,
    )(x1, x2, w, g, b)

    if N == 1:
        return out.reshape(1, Cout, H, W)   # free reshape back to NCHW
    return jnp.transpose(out.reshape(Cout, N, H, W), (1, 0, 2, 3))


# TODO(synk): if this op is ever used with larger N/H/W, switch to a row-tiled grid
# with a two-pass streaming BN (sum/sumsq scratch) and a Cout-parallel axis so it
# fits v7x's 64 MiB VMEM and uses both TensorCores.


if __name__ == "__main__":
    key = jax.random.PRNGKey(0)
    k1, k2, k3, k4, k5 = jax.random.split(key, 5)

    N, Cin, H, W = 1, 128, 14, 14
    Cout = 768

    x158 = jax.random.normal(k1, (N, Cin, H, W), dtype=jnp.float32)
    x143 = jax.random.normal(k2, (N, Cin, H, W), dtype=jnp.float32)

    # Deterministic synthetic parameters (Conv2d kaiming-uniform-ish scale;
    # BN gamma~1 / beta~0 perturbed so the affine path is exercised).
    fan_in = Cin * 1 * 1
    bound = (1.0 / fan_in) ** 0.5
    weight = jax.random.uniform(k3, (Cout, Cin, 1, 1), dtype=jnp.float32,
                                minval=-bound, maxval=bound)
    gamma = jnp.ones((Cout,), jnp.float32) + 0.01 * jax.random.normal(k4, (Cout,))
    beta = 0.01 * jax.random.normal(k5, (Cout,))

    run = jax.jit(fused_add_conv_bn)
    out = run(x158, x143, weight, gamma, beta)
    out = jax.block_until_ready(out)

    # Pure-JAX reference (training-mode BN with biased batch statistics).
    x = x158 + x143
    y = jnp.einsum("nchw,oc->nohw", x, weight.reshape(Cout, Cin))
    mean = jnp.mean(y, axis=(0, 2, 3), keepdims=True)
    var = jnp.mean((y - mean) ** 2, axis=(0, 2, 3), keepdims=True)
    ref = (y - mean) * jax.lax.rsqrt(var + EPS) * gamma.reshape(1, Cout, 1, 1) \
          + beta.reshape(1, Cout, 1, 1)

    assert out.shape == (N, Cout, H, W)
    assert jnp.max(jnp.abs(out - ref)) < 1e-3

    print("KERNEL_OK")
</pallas_src>

<mosaic_0001>
module attributes {stable_mosaic.version = 11 : i64} {
  func.func @fused_add_conv_bn_kernel(%arg0: i32, %arg1: memref<128x196xf32, #tpu.memory_space<vmem>>, %arg2: memref<128x196xf32, #tpu.memory_space<vmem>>, %arg3: memref<768x128xf32, #tpu.memory_space<vmem>>, %arg4: memref<768x1xf32, #tpu.memory_space<vmem>>, %arg5: memref<768x1xf32, #tpu.memory_space<vmem>>, %arg6: memref<768x196xf32, #tpu.memory_space<vmem>>) attributes {dimension_semantics = [#tpu.dimension_semantics<arbitrary>], iteration_bounds = array<i64: 1>, scalar_prefetch = 0 : i64, scratch_operands = 0 : i64, tpu.core_type = #tpu.core_type<tc>, window_params = [{pipeline_mode = #tpu.pipeline_mode<synchronous>, transform_indices = @transform_0, window_bounds = array<i64: 128, 196>}, {pipeline_mode = #tpu.pipeline_mode<synchronous>, transform_indices = @transform_1, window_bounds = array<i64: 128, 196>}, {pipeline_mode = #tpu.pipeline_mode<synchronous>, transform_indices = @transform_2, window_bounds = array<i64: 768, 128>}, {pipeline_mode = #tpu.pipeline_mode<synchronous>, transform_indices = @transform_3, window_bounds = array<i64: 768, 1>}, {pipeline_mode = #tpu.pipeline_mode<synchronous>, transform_indices = @transform_4, window_bounds = array<i64: 768, 1>}, {pipeline_mode = #tpu.pipeline_mode<synchronous>, transform_indices = @transform_5, window_bounds = array<i64: 768, 196>}]} {
    %c0 = arith.constant 0 : index
    %c0_0 = arith.constant 0 : index
    %0 = vector.load %arg1[%c0, %c0_0] : memref<128x196xf32, #tpu.memory_space<vmem>>, vector<128x196xf32>
    %c0_1 = arith.constant 0 : index
    %c0_2 = arith.constant 0 : index
    %1 = vector.load %arg2[%c0_1, %c0_2] : memref<128x196xf32, #tpu.memory_space<vmem>>, vector<128x196xf32>
    %2 = arith.addf %0, %1 : vector<128x196xf32>
    %c0_3 = arith.constant 0 : index
    %c0_4 = arith.constant 0 : index
    %3 = vector.load %arg3[%c0_3, %c0_4] : memref<768x128xf32, #tpu.memory_space<vmem>>, vector<768x128xf32>
    %cst = arith.constant dense<0.000000e+00> : vector<768x196xf32>
    %4 = tpu.matmul %3, %2, %cst {dimension_numbers = #tpu.dot_dimension_numbers<[1], [0], [0], [1], [0, 0, 1, 1], [], []>} : vector<768x128xf32>, vector<128x196xf32>, vector<768x196xf32> -> vector<768x196xf32>
    %cst_5 = arith.constant dense<0.000000e+00> : vector<128xf32>
    %5 = vector.multi_reduction <add>, %2, %cst_5 [1] : vector<128x196xf32> to vector<128xf32>
    %6 = vector.shape_cast %5 : vector<128xf32> to vector<128x1xf32>
    %cst_6 = arith.constant 1.960000e+02 : f32
    %7 = vector.broadcast %cst_6 : f32 to vector<128x1xf32>
    %8 = arith.divf %6, %7 : vector<128x1xf32>
    %cst_7 = arith.constant dense<0.000000e+00> : vector<768x1xf32>
    %9 = tpu.matmul %3, %8, %cst_7 {dimension_numbers = #tpu.dot_dimension_numbers<[1], [0], [0], [1], [0, 0, 1, 1], [], []>} : vector<768x128xf32>, vector<128x1xf32>, vector<768x1xf32> -> vector<768x1xf32>
    %10 = arith.mulf %4, %4 : vector<768x196xf32>
    %cst_8 = arith.constant dense<0.000000e+00> : vector<768xf32>
    %11 = vector.multi_reduction <add>, %10, %cst_8 [1] : vector<768x196xf32> to vector<768xf32>
    %12 = vector.shape_cast %11 : vector<768xf32> to vector<768x1xf32>
    %cst_9 = arith.constant 1.960000e+02 : f32
    %13 = vector.broadcast %cst_9 : f32 to vector<768x1xf32>
    %14 = arith.divf %12, %13 : vector<768x1xf32>
    %15 = arith.mulf %9, %9 : vector<768x1xf32>
    %16 = arith.subf %14, %15 : vector<768x1xf32>
    %c0_10 = arith.constant 0 : index
    %c0_11 = arith.constant 0 : index
    %17 = vector.load %arg4[%c0_10, %c0_11] : memref<768x1xf32, #tpu.memory_space<vmem>>, vector<768x1xf32>
    %cst_12 = arith.constant 1.000000e-03 : f32
    %18 = vector.broadcast %cst_12 : f32 to vector<768x1xf32>
    %19 = arith.addf %16, %18 : vector<768x1xf32>
    %20 = math.rsqrt %19 : vector<768x1xf32>
    %21 = arith.mulf %17, %20 : vector<768x1xf32>
    %c0_13 = arith.constant 0 : index
    %c0_14 = arith.constant 0 : index
    %22 = vector.load %arg5[%c0_13, %c0_14] : memref<768x1xf32, #tpu.memory_space<vmem>>, vector<768x1xf32>
    %23 = arith.mulf %9, %21 : vector<768x1xf32>
    %24 = arith.subf %22, %23 : vector<768x1xf32>
    %25 = vector.broadcast %21 : vector<768x1xf32> to vector<768x196xf32>
    %26 = arith.mulf %4, %25 : vector<768x196xf32>
    %27 = vector.broadcast %24 : vector<768x1xf32> to vector<768x196xf32>
    %28 = arith.addf %26, %27 : vector<768x196xf32>
    %c0_15 = arith.constant 0 : index
    %c0_16 = arith.constant 0 : index
    %29 = vector.load %arg6[%c0_15, %c0_16] : memref<768x196xf32, #tpu.memory_space<vmem>>, vector<768x196xf32>
    tpu.vector_store %arg6[%c0_15, %c0_16], %28 {strides = array<i32>} : memref<768x196xf32, #tpu.memory_space<vmem>>, vector<768x196xf32>,
    return
  }
  func.func @transform_0(%arg0: i32) -> (i32, i32) {
    %c0_i32 = arith.constant 0 : i32
    %c0_i32_0 = arith.constant 0 : i32
    %c0_i32_1 = arith.constant 0 : i32
    return %c0_i32, %c0_i32_0 : i32, i32
  }
  func.func @transform_1(%arg0: i32) -> (i32, i32) {
    %c0_i32 = arith.constant 0 : i32
    %c0_i32_0 = arith.constant 0 : i32
    %c0_i32_1 = arith.constant 0 : i32
    return %c0_i32, %c0_i32_0 : i32, i32
  }
  func.func @transform_2(%arg0: i32) -> (i32, i32) {
    %c0_i32 = arith.constant 0 : i32
    %c0_i32_0 = arith.constant 0 : i32
    %c0_i32_1 = arith.constant 0 : i32
    return %c0_i32, %c0_i32_0 : i32, i32
  }
  func.func @transform_3(%arg0: i32) -> (i32, i32) {
    %c0_i32 = arith.constant 0 : i32
    %c0_i32_0 = arith.constant 0 : i32
    %c0_i32_1 = arith.constant 0 : i32
    return %c0_i32, %c0_i32_0 : i32, i32
  }
  func.func @transform_4(%arg0: i32) -> (i32, i32) {
    %c0_i32 = arith.constant 0 : i32
    %c0_i32_0 = arith.constant 0 : i32
    %c0_i32_1 = arith.constant 0 : i32
    return %c0_i32, %c0_i32_0 : i32, i32
  }
  func.func @transform_5(%arg0: i32) -> (i32, i32) {
    %c0_i32 = arith.constant 0 : i32
    %c0_i32_0 = arith.constant 0 : i32
    %c0_i32_1 = arith.constant 0 : i32
    return %c0_i32, %c0_i32_0 : i32, i32
  }
}

</mosaic_0001>

<bundles_post_ra>
// kernel: fused_add_conv_bn.1
= control target key start
LH: loop header
LB: loop body
LE: loop exit
PB: predicated region body
PF: predicated region fallthrough
CT: control target
= control target key end

     0   :  { %v9389_v3 = vmov 0.0   ;;  %vm853_vm0 = vcmask 556032   ;;  %s9382_s0 = inlined_call_operand.vmem [shape: f32[128,196], index: 0, kind: input, shape index: {}]   ;;  %s9383_s1 = inlined_call_operand.vmem [shape: f32[128,196], index: 1, kind: input, shape index: {}]   ;;  %s9384_s2 = inlined_call_operand.vmem [shape: f32[768,128], index: 2, kind: input, shape index: {}]   ;;  %s9385_s3 = inlined_call_operand.vmem [shape: f32[768,1], index: 3, kind: input, shape index: {}]   ;;  %s9386_s4 = inlined_call_operand.vmem [shape: f32[768,1], index: 4, kind: input, shape index: {}]   ;;  %s9387_s5 = inlined_call_operand.vmem [shape: f32[768,196], index: 5, kind: output, shape index: {}]  }
   0x1   :  { %v24_v0 = vld [vmem:[%s9382_s0 + $0x20] sm:$0xff]  ;;  %v25_v1 = vld [vmem:[%s9382_s0 + $0x28] sm:$0xff]  ;;  %276 = vmatprep.mubr.f32.mxu0 %v9389_v3  ;;  %708 = vmatprep.mubr.f32.mxu1 %v9389_v3  ;;  %v51_v6 = vld [vmem:[%s9382_s0 + $0xf8] sm:$0xff] }
   0x2   :  { %v56_v2 = vld [vmem:[%s9383_s1 + $0x20] sm:$0xff]  ;;  %v57_v4 = vld [vmem:[%s9383_s1 + $0x28] sm:$0xff]  ;;  %v83_v7 = vld [vmem:[%s9383_s1 + $0xf8] sm:$0xff] }
   0x3   :  { %v5142_v5 = vadd.f32 %v56_v2, %v24_v0  ;;  %v5150_v8 = vadd.f32 %v57_v4, %v25_v1  ;;  %v5152_v9 = vadd.f32 %v83_v7, %v51_v6  ;;  %v50_v10 = vld [vmem:[%s9382_s0 + $0xf0] sm:$0xff]  ;;  %v20_v12 = vld [vmem:[%s9382_s0] sm:$0xff]  ;;  %v21_v14 = vld [vmem:[%s9382_s0 + $0x8] sm:$0xff] }
   0x4   :  { %v82_v11 = vld [vmem:[%s9383_s1 + $0xf0] sm:$0xff]  ;;  %v52_v15 = vld [vmem:[%s9383_s1] sm:$0xff]  ;;  %v53_v16 = vld [vmem:[%s9383_s1 + $0x8] sm:$0xff] }
   0x5   :  { %v5163_v13 = vadd.f32 %v82_v11, %v50_v10  ;;  %v862_v17 = vsel %vm853_vm0, %v5150_v8, 0.0  ;;  %212 = vmatprep.subr.mxu0 %v5152_v9  ;;  %v5177_v18 = vadd.f32 %v52_v15, %v20_v12  ;;  %v5179_v19 = vadd.f32 %v53_v16, %v21_v14  ;;  %v49_v20 = vld [vmem:[%s9382_s0 + $0xe8] sm:$0xff]  ;;  %v48_v22 = vld [vmem:[%s9382_s0 + $0xe0] sm:$0xff]  ;;  %4844 = vmatprep.subr.mxu1 %v5152_v9  ;;  %v26_v26 = vld [vmem:[%s9382_s0 + $0x30] sm:$0xff] }
   0x6   :  { %v81_v21 = vld [vmem:[%s9383_s1 + $0xe8] sm:$0xff]  ;;  %v863_v23 = vadd.f32 %v862_v17, %v5142_v5  ;;  %v80_v25 = vld [vmem:[%s9383_s1 + $0xe0] sm:$0xff]  ;;  %v27_v27 = vld [vmem:[%s9382_s0 + $0x38] sm:$0xff] }
   0x7   :  { %213 = vmatpush1.msra.mxu0 %v5163_v13  ;;  %v5193_v24 = vadd.f32 %v81_v21, %v49_v20  ;;  %4860 = vmatpush1.msra.mxu1 %v5163_v13  ;;  %v854_v28 = vsel %vm853_vm0, %v5179_v19, 0.0  ;;  %v5207_v29 = vadd.f32 %v80_v25, %v48_v22  ;;  %v58_v30 = vld [vmem:[%s9383_s1 + $0x30] sm:$0xff]  ;;  %v59_v31 = vld [vmem:[%s9383_s1 + $0x38] sm:$0xff]  ;;  %v45_v47 = vld [vmem:[%s9382_s0 + $0xc8] sm:$0xff] }
   0x8   :  { %v47_v32 = vld [vmem:[%s9382_s0 + $0xd8] sm:$0xff]  ;;  %864 = vadd.xlane.f32.xlu1 %v863_v23  ;;  %v855_v33 = vadd.f32 %v854_v28, %v5177_v18  ;;  %v5220_v34 = vadd.f32 %v58_v30, %v26_v26  ;;  %v5222_v35 = vadd.f32 %v59_v31, %v27_v27  ;;  %v46_v37 = vld [vmem:[%s9382_s0 + $0xd0] sm:$0xff]  ;;  %v77_v48 = vld [vmem:[%s9383_s1 + $0xc8] sm:$0xff] }
   0x9   :  { %214 = vmatprep.subr.mxu0 %v5193_v24  ;;  %v79_v36 = vld [vmem:[%s9383_s1 + $0xd8] sm:$0xff]  ;;  %v78_v38 = vld [vmem:[%s9383_s1 + $0xd0] sm:$0xff]  ;;  %4845 = vmatprep.subr.mxu1 %v5193_v24  ;;  %v5266_v51 = vadd.f32 %v77_v48, %v45_v47  ;;  %v44_v52 = vld [vmem:[%s9382_s0 + $0xc0] sm:$0xff] }
   0xa   :  { %215 = vmatpush1.msra.mxu0 %v5207_v29  ;;  %v5234_v39 = vadd.f32 %v79_v36, %v47_v32  ;;  %v5236_v40 = vadd.f32 %v78_v38, %v46_v37  ;;  %v22_v41 = vld [vmem:[%s9382_s0 + $0x10] sm:$0xff]  ;;  %v23_v42 = vld [vmem:[%s9382_s0 + $0x18] sm:$0xff]  ;;  %856 = vadd.xlane.f32.xlu0 %v855_v33  ;;  %v866_v44 = vsel %vm853_vm0, %v5222_v35, 0.0  ;;  %v76_v53 = vld [vmem:[%s9383_s1 + $0xc0] sm:$0xff] }
   0xb   :  { %v54_v43 = vld [vmem:[%s9383_s1 + $0x10] sm:$0xff]  ;;  %v55_v45 = vld [vmem:[%s9383_s1 + $0x18] sm:$0xff]  ;;  %4861 = vmatpush1.msra.mxu1 %v5207_v29  ;;  %v867_v49 = vadd.f32 %v866_v44, %v5220_v34  ;;  %v5279_v55 = vadd.f32 %v76_v53, %v44_v52  ;;  %v28_v6 = vld [vmem:[%s9382_s0 + $0x40] sm:$0xff] }
   0xc   :  { %v5253_v46 = vadd.f32 %v54_v43, %v22_v41  ;;  %216 = vmatprep.subr.mxu0 %v5234_v39  ;;  %v5264_v50 = vadd.f32 %v55_v45, %v23_v42  ;;  %v30_v54 = vld [vmem:[%s9382_s0 + $0x50] sm:$0xff]  ;;  %4846 = vmatprep.subr.mxu1 %v5234_v39  ;;  %v31_v56 = vld [vmem:[%s9382_s0 + $0x58] sm:$0xff]  ;;  %v29_v7 = vld [vmem:[%s9382_s0 + $0x48] sm:$0xff] }
   0xd   :  { %217 = vmatpush1.msra.mxu0 %v5236_v40  ;;  %v62_v57 = vld [vmem:[%s9383_s1 + $0x50] sm:$0xff]  ;;  %v63_v58 = vld [vmem:[%s9383_s1 + $0x58] sm:$0xff]  ;;  %4862 = vmatpush1.msra.mxu1 %v5236_v40  ;;  %v60_v12 = vld [vmem:[%s9383_s1 + $0x40] sm:$0xff] }
   0xe   :  { %868 = vadd.xlane.f32.xlu1 %v867_v49  ;;  %v858_v59 = vsel %vm853_vm0, %v5264_v50, 0.0  ;;  %218 = vmatprep.subr.mxu0 %v5266_v51  ;;  %v5294_v60 = vadd.f32 %v62_v57, %v30_v54  ;;  %v5296_v61 = vadd.f32 %v63_v58, %v31_v56  ;;  %v43_v62 = vld [vmem:[%s9382_s0 + $0xb8] sm:$0xff]  ;;  %v42_v0 = vld [vmem:[%s9382_s0 + $0xb0] sm:$0xff]  ;;  %v61_v14 = vld [vmem:[%s9383_s1 + $0x48] sm:$0xff]  ;;  %v5337_v17 = vadd.f32 %v60_v12, %v28_v6 }
   0xf   :  { %v75_v63 = vld [vmem:[%s9383_s1 + $0xb8] sm:$0xff]  ;;  %v859_v1 = vadd.f32 %v858_v59, %v5253_v46  ;;  %219 = vmatpush1.msra.mxu0 %v5279_v55  ;;  %v74_v4 = vld [vmem:[%s9383_s1 + $0xb0] sm:$0xff]  ;;  %4847 = vmatprep.subr.mxu1 %v5266_v51  ;;  %v41_v15 = vld [vmem:[%s9382_s0 + $0xa8] sm:$0xff]  ;;  %v5339_v20 = vadd.f32 %v61_v14, %v29_v7 }
  0x10   :  { %v5309_v2 = vadd.f32 %v75_v63, %v43_v62  ;;  %v874_v10 = vsel %vm853_vm0, %v5296_v61, 0.0  ;;  %v5323_v11 = vadd.f32 %v74_v4, %v42_v0  ;;  %4863 = vmatpush1.msra.mxu1 %v5279_v55  ;;  %v73_v21 = vld [vmem:[%s9383_s1 + $0xa8] sm:$0xff]  ;;  %v40_v22 = vld [vmem:[%s9382_s0 + $0xa0] sm:$0xff]  ;;  %v34_v27 = vld [vmem:[%s9382_s0 + $0x70] sm:$0xff] }
  0x11   :  { %860 = vadd.xlane.f32.xlu0 %v859_v1  ;;  %v875_v16 = vadd.f32 %v874_v10, %v5294_v60  ;;  %v72_v23 = vld [vmem:[%s9383_s1 + $0xa0] sm:$0xff]  ;;  %v105_v25 = vadd.f32 %v73_v21, %v41_v15  ;;  %v35_v28 = vld [vmem:[%s9382_s0 + $0x78] sm:$0xff]  ;;  %v66_v30 = vld [vmem:[%s9383_s1 + $0x70] sm:$0xff]  ;;  %v870_v31 = vsel %vm853_vm0, %v5339_v20, 0.0 }
  0x12   :  { %220 = vmatprep.subr.mxu0 %v5309_v2  ;;  %v5351_v26 = vadd.f32 %v72_v23, %v40_v22  ;;  %4848 = vmatprep.subr.mxu1 %v5309_v2  ;;  %v67_v32 = vld [vmem:[%s9383_s1 + $0x78] sm:$0xff]  ;;  %v98_v33 = vadd.f32 %v66_v30, %v34_v27  ;;  %v871_v38 = vadd.f32 %v870_v31, %v5337_v17  ;;  %v38_v43 = vld [vmem:[%s9382_s0 + $0x90] sm:$0xff]  ;;  %v32_v45 = vld [vmem:[%s9382_s0 + $0x60] sm:$0xff]  ;;  %v898_v14 = vsel %vm853_vm0, %v5309_v2, 0.0 }
  0x13   :  { %221 = vmatpush1.msra.mxu0 %v5323_v11  ;;  %876 = vadd.xlane.f32.xlu1 %v875_v16  ;;  %v39_v36 = vld [vmem:[%s9382_s0 + $0x98] sm:$0xff]  ;;  %v99_v41 = vadd.f32 %v67_v32, %v35_v28  ;;  %v70_v44 = vld [vmem:[%s9383_s1 + $0x90] sm:$0xff]  ;;  %v33_v48 = vld [vmem:[%s9382_s0 + $0x68] sm:$0xff]  ;;  %v894_v16 = vsel %vm853_vm0, %v105_v25, 0.0  ;;  %v899_v21 = vadd.f32 %v898_v14, %v5323_v11  ;;  %v906_v22 = vsel %vm853_vm0, %v5234_v39, 0.0 }
  0x14   :  { %v71_v37 = vld [vmem:[%s9383_s1 + $0x98] sm:$0xff]  ;;  %4864 = vmatpush1.msra.mxu1 %v5323_v11  ;;  %222 = vmatprep.subr.mxu0 %v105_v25  ;;  %v102_v47 = vadd.f32 %v70_v44, %v38_v43  ;;  %v64_v49 = vld [vmem:[%s9383_s1 + $0x60] sm:$0xff]  ;;  %v65_v52 = vld [vmem:[%s9383_s1 + $0x68] sm:$0xff]  ;;  %v895_v2 = vadd.f32 %v894_v16, %v5351_v26  ;;  %v902_v23 = vsel %vm853_vm0, %v5266_v51, 0.0  ;;  %v907_v11 = vadd.f32 %v906_v22, %v5236_v40 }
  0x15   :  { %v103_v42 = vadd.f32 %v71_v37, %v39_v36  ;;  %4849 = vmatprep.subr.mxu1 %v105_v25  ;;  %223 = vmatpush1.msra.mxu0 %v5351_v26  ;;  %v882_v53 = vsel %vm853_vm0, %v99_v41, 0.0  ;;  %v96_v54 = vadd.f32 %v64_v49, %v32_v45  ;;  %v97_v56 = vadd.f32 %v65_v52, %v33_v48  ;;  %v37_v57 = vld [vmem:[%s9382_s0 + $0x88] sm:$0xff]  ;;  %v36_v59 = vld [vmem:[%s9382_s0 + $0x80] sm:$0xff]  ;;  %v195_v27 = vld [vmem:[%s9384_s2 + $0x278] sm:$0xff] }
  0x16   :  { %4865 = vmatpush1.msra.mxu1 %v5351_v26  ;;  %872 = vadd.xlane.f32.xlu0 %v871_v38  ;;  %v69_v58 = vld [vmem:[%s9383_s1 + $0x88] sm:$0xff]  ;;  %v883_v63 = vadd.f32 %v882_v53, %v98_v33  ;;  %v68_v1 = vld [vmem:[%s9383_s1 + $0x80] sm:$0xff]  ;;  %v914_v39 = vsel %vm853_vm0, %v5152_v9, 0.0  ;;  %v903_v25 = vadd.f32 %v902_v23, %v5279_v55  ;;  %v910_v51 = vsel %vm853_vm0, %v5193_v24, 0.0  ;;  %v5557_v28 = vld [vmem:[%s9384_s2 + $0x50] sm:$0xff] }
  0x17   :  { %224 = vmatprep.subr.mxu0 %v103_v42  ;;  %v890_v62 = vsel %vm853_vm0, %v103_v42, 0.0  ;;  %v101_v0 = vadd.f32 %v69_v58, %v37_v57  ;;  %4850 = vmatprep.subr.mxu1 %v103_v42  ;;  %v878_v4 = vsel %vm853_vm0, %v97_v56, 0.0  ;;  %v100_v6 = vadd.f32 %v68_v1, %v36_v59  ;;  %v5443_v24 = vld [vmem:[%s9384_s2] sm:$0xff]  ;;  %v5546_v26 = vld [vmem:[%s9384_s2 + $0x48] sm:$0xff]  ;;  %v5568_v31 = vld [vmem:[%s9384_s2 + $0x58] sm:$0xff] }
  0x18   :  { %225 = vmatpush1.msra.mxu0 %v102_v47  ;;  %4866 = vmatpush1.msra.mxu1 %v102_v47  ;;  %v879_v7 = vadd.f32 %v878_v4, %v96_v54  ;;  %v891_v10 = vadd.f32 %v890_v62, %v102_v47  ;;  %v915_v40 = vadd.f32 %v914_v39, %v5163_v13  ;;  %v5454_v13 = vld [vmem:[%s9384_s2 + $0x8] sm:$0xff]  ;;  %v192_v55 = vld [vmem:[%s9384_s2 + $0x260] sm:$0xff]  ;;  %v198_v36 = vld [vmem:[%s9384_s2 + $0x290] sm:$0xff] }
  0x19   :  { %884 = vadd.xlane.f32.xlu1 %v883_v63  ;;  %226 = vmatprep.subr.mxu0 %v101_v0  ;;  %v886_v12 = vsel %vm853_vm0, %v101_v0, 0.0  ;;  %v911_v9 = vadd.f32 %v910_v51, %v5207_v29  ;;  %v5465_v29 = vld [vmem:[%s9384_s2 + $0x10] sm:$0xff]  ;;  %v196_v30 = vld [vmem:[%s9384_s2 + $0x280] sm:$0xff]  ;;  %v197_v32 = vld [vmem:[%s9384_s2 + $0x288] sm:$0xff] }
  0x1a   :  { %227 = vmatpush1.msra.mxu0 %v100_v6  ;;  %4851 = vmatprep.subr.mxu1 %v101_v0  ;;  %v887_v15 = vadd.f32 %v886_v12, %v100_v6  ;;  %v5590_v37 = vld [vmem:[%s9384_s2 + $0x68] sm:$0xff]  ;;  %v199_v38 = vld [vmem:[%s9384_s2 + $0x298] sm:$0xff]  ;;  %v200_v42 = vld [vmem:[%s9384_s2 + $0x2a0] sm:$0xff] }
  0x1b   :  { %880 = vadd.xlane.f32.xlu0 %v879_v7  ;;  %228 = vmatprep.subr.mxu0 %v99_v41  ;;  %v5612_v43 = vld [vmem:[%s9384_s2 + $0x78] sm:$0xff]  ;;  %v201_v44 = vld [vmem:[%s9384_s2 + $0x2a8] sm:$0xff]  ;;  %v5623_v45 = vld [vmem:[%s9384_s2 + $0x80] sm:$0xff] }
  0x1c   :  { %229 = vmatpush1.msra.mxu0 %v98_v33  ;;  %4867 = vmatpush1.msra.mxu1 %v100_v6  ;;  %v202_v47 = vld [vmem:[%s9384_s2 + $0x2b0] sm:$0xff]  ;;  %v5634_v48 = vld [vmem:[%s9384_s2 + $0x88] sm:$0xff]  ;;  %v203_v49 = vld [vmem:[%s9384_s2 + $0x2b8] sm:$0xff] }
  0x1d   :  { %892 = vadd.xlane.f32.xlu1 %v891_v10  ;;  %230 = vmatprep.subr.mxu0 %v97_v56  ;;  %v5645_v52 = vld [vmem:[%s9384_s2 + $0x90] sm:$0xff]  ;;  %v204_v53 = vld [vmem:[%s9384_s2 + $0x2c0] sm:$0xff]  ;;  %v5678_v59 = vld [vmem:[%s9384_s2 + $0xa8] sm:$0xff] }
  0x1e   :  { %231 = vmatpush1.msra.mxu0 %v96_v54  ;;  %4852 = vmatprep.subr.mxu1 %v99_v41  ;;  %v5601_v41 = vld [vmem:[%s9384_s2 + $0x70] sm:$0xff]  ;;  %v5667_v57 = vld [vmem:[%s9384_s2 + $0xa0] sm:$0xff]  ;;  %v207_v62 = vld [vmem:[%s9384_s2 + $0x2d8] sm:$0xff] }
  0x1f   :  { %888 = vadd.xlane.f32.xlu0 %v887_v15  ;;  %232 = vmatprep.subr.mxu0 %v5296_v61  ;;  %v206_v58 = vld [vmem:[%s9384_s2 + $0x2d0] sm:$0xff]  ;;  %v208_v0 = vld [vmem:[%s9384_s2 + $0x2e0] sm:$0xff]  ;;  %v5700_v1 = vld [vmem:[%s9384_s2 + $0xb8] sm:$0xff] }
  0x20   :  { %233 = vmatpush1.msra.mxu0 %v5294_v60  ;;  %4868 = vmatpush1.msra.mxu1 %v98_v33  ;;  %v5579_v33 = vld [vmem:[%s9384_s2 + $0x60] sm:$0xff]  ;;  %v5689_v63 = vld [vmem:[%s9384_s2 + $0xb0] sm:$0xff]  ;;  %v209_v4 = vld [vmem:[%s9384_s2 + $0x2e8] sm:$0xff] }
  0x21   :  { %900 = vadd.xlane.f32.xlu1 %v899_v21  ;;  %234 = vmatprep.subr.mxu0 %v5339_v20  ;;  %v5711_v6 = vld [vmem:[%s9384_s2 + $0xc0] sm:$0xff]  ;;  %v210_v7 = vld [vmem:[%s9384_s2 + $0x2f0] sm:$0xff]  ;;  %v5722_v10 = vld [vmem:[%s9384_s2 + $0xc8] sm:$0xff] }
  0x22   :  { %235 = vmatpush1.msra.mxu0 %v5337_v17  ;;  %4853 = vmatprep.subr.mxu1 %v97_v56  ;;  %v205_v56 = vld [vmem:[%s9384_s2 + $0x2c8] sm:$0xff]  ;;  %v211_v12 = vld [vmem:[%s9384_s2 + $0x2f8] sm:$0xff]  ;;  %v5733_v14 = vld [vmem:[%s9384_s2 + $0xd0] sm:$0xff] }
  0x23   :  { %896 = vadd.xlane.f32.xlu0 %v895_v2  ;;  %236 = vmatprep.subr.mxu0 %v5222_v35  ;;  %v5745_v21 = vld [vmem:[%s9384_s2 + $0xd8] sm:$0xff]  ;;  %v5754_v2 = vld [vmem:[%s9384_s2 + $0xe0] sm:$0xff]  ;;  %v5765_v39 = vld [vmem:[%s9384_s2 + $0xe8] sm:$0xff] }
  0x24   :  { %237 = vmatpush1.msra.mxu0 %v5220_v34  ;;  %4869 = vmatpush1.msra.mxu1 %v96_v54  ;;  %v5656_v54 = vld [vmem:[%s9384_s2 + $0x98] sm:$0xff]  ;;  %v5774_v51 = vld [vmem:[%s9384_s2 + $0xf0] sm:$0xff] }
  0x25   :  { %908 = vadd.xlane.f32.xlu1 %v907_v11  ;;  %238 = vmatprep.subr.mxu0 %v5150_v8 }
  0x26   :  { %239 = vmatpush1.msra.mxu0 %v5142_v5  ;;  %4854 = vmatprep.subr.mxu1 %v5296_v61  ;;  %v193_v61 = vld [vmem:[%s9384_s2 + $0x268] sm:$0xff] }
  0x27   :  { %904 = vadd.xlane.f32.xlu0 %v903_v25  ;;  %240 = vmatprep.subr.mxu0 %v5264_v50 }
  0x28   :  { %241 = vmatpush1.msra.mxu0 %v5253_v46  ;;  %4870 = vmatpush1.msra.mxu1 %v5294_v60  ;;  %v5524_v60 = vld [vmem:[%s9384_s2 + $0x38] sm:$0xff] }
  0x29   :  { %916 = vadd.xlane.f32.xlu1 %v915_v40  ;;  %242 = vmatprep.subr.mxu0 %v5179_v19 }
  0x2a   :  { %243 = vmatpush1.msra.mxu0 %v5177_v18  ;;  %4855 = vmatprep.subr.mxu1 %v5339_v20  ;;  %v194_v20 = vld [vmem:[%s9384_s2 + $0x270] sm:$0xff] }
  0x2b   :  { %912 = vadd.xlane.f32.xlu0 %v911_v9  ;;  %277 = vmatmul.mubr.f32.vlgmr.msra.gmra.mxu0 %v5443_v24 }
  0x2c   :  { %282 = vmatprep.mubr.f32.mxu0 %v9389_v3  ;;  %4871 = vmatpush1.msra.mxu1 %v5337_v17  ;;  %v5535_v17 = vld [vmem:[%s9384_s2 + $0x40] sm:$0xff] }
  0x2d   :  { %4856 = vmatprep.subr.mxu1 %v5222_v35  ;;  %v5502_v35 = vld [vmem:[%s9384_s2 + $0x28] sm:$0xff] }
  0x2e   :  { %4872 = vmatpush1.msra.mxu1 %v5220_v34  ;;  %v188_v34 = vld [vmem:[%s9384_s2 + $0x240] sm:$0xff] }
  0x2f   :  { %283 = vmatmul.mubr.f32.gmra.mxu0 %v5454_v13  ;;  %4857 = vmatprep.subr.mxu1 %v5150_v8  ;;  %v5479_v8 = vld [vmem:[%s9384_s2 + $0x18] sm:$0xff] }
  0x30   :  { %288 = vmatprep.mubr.f32.mxu0 %v9389_v3  ;;  %4873 = vmatpush1.msra.mxu1 %v5142_v5  ;;  %v189_v5 = vld [vmem:[%s9384_s2 + $0x248] sm:$0xff] }
  0x31   :  { %4858 = vmatprep.subr.mxu1 %v5264_v50  ;;  %v5513_v50 = vld [vmem:[%s9384_s2 + $0x30] sm:$0xff] }
  0x32   :  { %4874 = vmatpush1.msra.mxu1 %v5253_v46  ;;  %v191_v46 = vld [vmem:[%s9384_s2 + $0x258] sm:$0xff] }
  0x33   :  { %289 = vmatmul.mubr.f32.gmra.mxu0 %v5465_v29  ;;  %4859 = vmatprep.subr.mxu1 %v5179_v19  ;;  %v5491_v19 = vld [vmem:[%s9384_s2 + $0x20] sm:$0xff] }
  0x34   :  { %294 = vmatprep.mubr.f32.mxu0 %v9389_v3  ;;  %4875 = vmatpush1.msra.mxu1 %v5177_v18  ;;  %v190_v18 = vld [vmem:[%s9384_s2 + $0x250] sm:$0xff] }
  0x35   :  { %709 = vmatmul.mubr.f32.vlgmr.msra.gmra.mxu1 %v188_v34 }
  0x36   :  { %714 = vmatprep.mubr.f32.mxu1 %v9389_v3 }
  0x37   :  { %295 = vmatmul.mubr.f32.gmra.mxu0 %v5479_v8 }
  0x38   :  { %300 = vmatprep.mubr.f32.mxu0 %v9389_v3 }
  0x39   :  { %715 = vmatmul.mubr.f32.gmra.mxu1 %v189_v5 }
  0x3a   :  { %720 = vmatprep.mubr.f32.mxu1 %v9389_v3 }
  0x3b   :  { %301 = vmatmul.mubr.f32.gmra.mxu0 %v5491_v19 }
  0x3c   :  { %306 = vmatprep.mubr.f32.mxu0 %v9389_v3 }
  0x3d   :  { %721 = vmatmul.mubr.f32.gmra.mxu1 %v190_v18  ;;  %v5788_v18 = vld [vmem:[%s9384_s2 + $0x100] sm:$0xff] }
  0x3e   :  { %726 = vmatprep.mubr.f32.mxu1 %v9389_v3 }
  0x3f   :  { %307 = vmatmul.mubr.f32.gmra.mxu0 %v5502_v35 }
  0x40   :  { %312 = vmatprep.mubr.f32.mxu0 %v9389_v3 }
  0x41   :  { %727 = vmatmul.mubr.f32.gmra.mxu1 %v191_v46 }
  0x42   :  { %732 = vmatprep.mubr.f32.mxu1 %v9389_v3 }
  0x43   :  { %313 = vmatmul.mubr.f32.gmra.mxu0 %v5513_v50 }
  0x44   :  { %318 = vmatprep.mubr.f32.mxu0 %v9389_v3 }
  0x45   :  { %733 = vmatmul.mubr.f32.gmra.mxu1 %v192_v55 }
  0x46   :  { %738 = vmatprep.mubr.f32.mxu1 %v9389_v3 }
  0x47   :  { %319 = vmatmul.mubr.f32.gmra.mxu0 %v5524_v60 }
  0x48   :  { %324 = vmatprep.mubr.f32.mxu0 %v9389_v3 }
  0x49   :  { %739 = vmatmul.mubr.f32.gmra.mxu1 %v193_v61  ;;  %v5795_v61 = vld [vmem:[%s9384_s2 + $0x108] sm:$0xff] }
  0x4a   :  { %744 = vmatprep.mubr.f32.mxu1 %v9389_v3 }
  0x4b   :  { %325 = vmatmul.mubr.f32.gmra.mxu0 %v5535_v17 }
  0x4c   :  { %330 = vmatprep.mubr.f32.mxu0 %v9389_v3 }
  0x4d   :  { %745 = vmatmul.mubr.f32.gmra.mxu1 %v194_v20 }
  0x4e   :  { %750 = vmatprep.mubr.f32.mxu1 %v9389_v3 }
  0x4f   :  { %331 = vmatmul.mubr.f32.gmra.mxu0 %v5546_v26 }
  0x50   :  { %336 = vmatprep.mubr.f32.mxu0 %v9389_v3 }
  0x51   :  { %751 = vmatmul.mubr.f32.gmra.mxu1 %v195_v27 }
  0x52   :  { %756 = vmatprep.mubr.f32.mxu1 %v9389_v3 }
  0x53   :  { %337 = vmatmul.mubr.f32.gmra.mxu0 %v5557_v28 }
  0x54   :  { %342 = vmatprep.mubr.f32.mxu0 %v9389_v3 }
  0x55   :  { %757 = vmatmul.mubr.f32.gmra.mxu1 %v196_v30  ;;  %v5802_v30 = vld [vmem:[%s9384_s2 + $0x110] sm:$0xff] }
  0x56   :  { %762 = vmatprep.mubr.f32.mxu1 %v9389_v3 }
  0x57   :  { %343 = vmatmul.mubr.f32.gmra.mxu0 %v5568_v31 }
  0x58   :  { %348 = vmatprep.mubr.f32.mxu0 %v9389_v3 }
  0x59   :  { %763 = vmatmul.mubr.f32.gmra.mxu1 %v197_v32 }
  0x5a   :  { %768 = vmatprep.mubr.f32.mxu1 %v9389_v3 }
  0x5b   :  { %349 = vmatmul.mubr.f32.gmra.mxu0 %v5579_v33 }
  0x5c   :  { %354 = vmatprep.mubr.f32.mxu0 %v9389_v3 }
  0x5d   :  { %769 = vmatmul.mubr.f32.gmra.mxu1 %v198_v36 }
  0x5e   :  { %774 = vmatprep.mubr.f32.mxu1 %v9389_v3 }
  0x5f   :  { %355 = vmatmul.mubr.f32.gmra.mxu0 %v5590_v37 }
  0x60   :  { %360 = vmatprep.mubr.f32.mxu0 %v9389_v3 }
  0x61   :  { %775 = vmatmul.mubr.f32.gmra.mxu1 %v199_v38 }
  0x62   :  { %780 = vmatprep.mubr.f32.mxu1 %v9389_v3 }
  0x63   :  { %361 = vmatmul.mubr.f32.gmra.mxu0 %v5601_v41 }
  0x64   :  { %366 = vmatprep.mubr.f32.mxu0 %v9389_v3 }
  0x65   :  { %781 = vmatmul.mubr.f32.gmra.mxu1 %v200_v42  ;;  %v5809_v42 = vld [vmem:[%s9384_s2 + $0x118] sm:$0xff] }
  0x66   :  { %786 = vmatprep.mubr.f32.mxu1 %v9389_v3 }
  0x67   :  { %367 = vmatmul.mubr.f32.gmra.mxu0 %v5612_v43 }
  0x68   :  { %372 = vmatprep.mubr.f32.mxu0 %v9389_v3 }
  0x69   :  { %787 = vmatmul.mubr.f32.gmra.mxu1 %v201_v44 }
  0x6a   :  { %792 = vmatprep.mubr.f32.mxu1 %v9389_v3 }
  0x6b   :  { %373 = vmatmul.mubr.f32.gmra.mxu0 %v5623_v45 }
  0x6c   :  { %378 = vmatprep.mubr.f32.mxu0 %v9389_v3 }
  0x6d   :  { %793 = vmatmul.mubr.f32.gmra.mxu1 %v202_v47 }
  0x6e   :  { %798 = vmatprep.mubr.f32.mxu1 %v9389_v3 }
  0x6f   :  { %379 = vmatmul.mubr.f32.gmra.mxu0 %v5634_v48 }
  0x70   :  { %384 = vmatprep.mubr.f32.mxu0 %v9389_v3 }
  0x71   :  { %799 = vmatmul.mubr.f32.gmra.mxu1 %v203_v49  ;;  %v5816_v49 = vld [vmem:[%s9384_s2 + $0x120] sm:$0xff] }
  0x72   :  { %804 = vmatprep.mubr.f32.mxu1 %v9389_v3 }
  0x73   :  { %385 = vmatmul.mubr.f32.gmra.mxu0 %v5645_v52 }
  0x74   :  { %390 = vmatprep.mubr.f32.mxu0 %v9389_v3 }
  0x75   :  { %805 = vmatmul.mubr.f32.gmra.mxu1 %v204_v53 }
  0x76   :  { %810 = vmatprep.mubr.f32.mxu1 %v9389_v3 }
  0x77   :  { %391 = vmatmul.mubr.f32.gmra.mxu0 %v5656_v54 }
  0x78   :  { %396 = vmatprep.mubr.f32.mxu0 %v9389_v3 }
  0x79   :  { %811 = vmatmul.mubr.f32.gmra.mxu1 %v205_v56 }
  0x7a   :  { %816 = vmatprep.mubr.f32.mxu1 %v9389_v3 }
  0x7b   :  { %397 = vmatmul.mubr.f32.gmra.mxu0 %v5667_v57 }
  0x7c   :  { %402 = vmatprep.mubr.f32.mxu0 %v9389_v3 }
  0x7d   :  { %817 = vmatmul.mubr.f32.gmra.mxu1 %v206_v58  ;;  %v5823_v58 = vld [vmem:[%s9384_s2 + $0x128] sm:$0xff] }
  0x7e   :  { %822 = vmatprep.mubr.f32.mxu1 %v9389_v3 }
  0x7f   :  { %403 = vmatmul.mubr.f32.gmra.mxu0 %v5678_v59 }
  0x80   :  { %408 = vmatprep.mubr.f32.mxu0 %v9389_v3 }
  0x81   :  { %823 = vmatmul.mubr.f32.gmra.mxu1 %v207_v62 }
  0x82   :  { %828 = vmatprep.mubr.f32.mxu1 %v9389_v3 }
  0x83   :  { %409 = vmatmul.mubr.f32.gmra.mxu0 %v5689_v63 }
  0x84   :  { %414 = vmatprep.mubr.f32.mxu0 %v9389_v3 }
  0x85   :  { %829 = vmatmul.mubr.f32.gmra.mxu1 %v208_v0 }
  0x86   :  { %834 = vmatprep.mubr.f32.mxu1 %v9389_v3 }
  0x87   :  { %415 = vmatmul.mubr.f32.gmra.mxu0 %v5700_v1 }
  0x88   :  { %420 = vmatprep.mubr.f32.mxu0 %v9389_v3 }
  0x89   :  { %835 = vmatmul.mubr.f32.gmra.mxu1 %v209_v4  ;;  %v5830_v4 = vld [vmem:[%s9384_s2 + $0x130] sm:$0xff] }
  0x8a   :  { %840 = vmatprep.mubr.f32.mxu1 %v9389_v3 }
  0x8b   :  { %421 = vmatmul.mubr.f32.gmra.mxu0 %v5711_v6 }
  0x8c   :  { %426 = vmatprep.mubr.f32.mxu0 %v9389_v3 }
  0x8d   :  { %841 = vmatmul.mubr.f32.gmra.mxu1 %v210_v7 }
  0x8e   :  { %846 = vmatprep.mubr.f32.mxu1 %v9389_v3 }
  0x8f   :  { %427 = vmatmul.mubr.f32.gmra.mxu0 %v5722_v10 }
  0x90   :  { %432 = vmatprep.mubr.f32.mxu0 %v9389_v3 }
  0x91   :  { %847 = vmatmul.mubr.f32.gmra.mxu1 %v211_v12  ;;  %v5735_v15 = vpop.xlane.xlu1 %864 }
  0x92   :  { %4700 = vmatprep.mubr.f32.mxu1 %v5443_v24  ;;  %v5781_v24 = vld [vmem:[%s9384_s2 + $0xf8] sm:$0xff] }
  0x93   :  { %433 = vmatmul.mubr.f32.gmra.mxu0 %v5733_v14  ;;  %v5739_v16 = vpop.xlane.xlu0 %856 }
  0x94   :  { %438 = vmatprep.mubr.f32.mxu0 %v9389_v3 }
  0x97   :  { %v5747_v22 = vpop.xlane.xlu1 %868  ;;  %439 = vmatmul.mubr.f32.gmra.mxu0 %v5745_v21 }
  0x98   :  { %444 = vmatprep.mubr.f32.mxu0 %v9389_v3 }
  0x9a   :  { %v5756_v23 = vpop.xlane.xlu0 %860 }
  0x9b   :  { %445 = vmatmul.mubr.f32.gmra.mxu0 %v5754_v2 }
  0x9c   :  { %v5759_v11 = vpop.xlane.xlu1 %876  ;;  %450 = vmatprep.mubr.f32.mxu0 %v9389_v3 }
  0x9f   :  { %v5767_v25 = vpop.xlane.xlu0 %872  ;;  %451 = vmatmul.mubr.f32.gmra.mxu0 %v5765_v39 }
  0xa0   :  { %456 = vmatprep.mubr.f32.mxu0 %v9389_v3 }
  0xa2   :  { %v885_v40 = vpop.xlane.xlu1 %884 }
  0xa3   :  { %457 = vmatmul.mubr.f32.gmra.mxu0 %v5774_v51  ;;  %v926_v12 = vmul.f32 0.0051020407, %v885_v40  ;;  %v5845_v40 = vld [vmem:[%s9384_s2 + $0x140] sm:$0xff] }
  0xa4   :  { %v881_v9 = vpop.xlane.xlu0 %880  ;;  %462 = vmatprep.mubr.f32.mxu0 %v9389_v3 }
  0xa6   :  { %v893_v34 = vpop.xlane.xlu1 %892 }
  0xa7   :  { %463 = vmatmul.mubr.f32.gmra.mxu0 %v5781_v24  ;;  %v928_v0 = vmul.f32 0.0051020407, %v893_v34  ;;  %v5837_v34 = vld [vmem:[%s9384_s2 + $0x138] sm:$0xff] }
  0xa8   :  { %v889_v5 = vpop.xlane.xlu0 %888  ;;  %468 = vmatprep.mubr.f32.mxu0 %v9389_v3 }
  0xa9   :  { %v927_v7 = vmul.f32 0.0051020407, %v889_v5  ;;  %v923_v5 = vmul.f32 0.0051020407, %v5767_v25  ;;  %v920_v25 = vmul.f32 0.0051020407, %v5756_v23 }
  0xaa   :  { %v901_v46 = vpop.xlane.xlu1 %900 }
  0xab   :  { %469 = vmatmul.mubr.f32.gmra.mxu0 %v5788_v18  ;;  %v930_v56 = vmul.f32 0.0051020407, %v901_v46  ;;  %v925_v46 = vmul.f32 0.0051020407, %v881_v9  ;;  %v922_v9 = vmul.f32 0.0051020407, %v5747_v22 }
  0xac   :  { %v897_v55 = vpop.xlane.xlu0 %896  ;;  %474 = vmatprep.mubr.f32.mxu0 %v9389_v3  ;;  %v5863_v22 = vld [vmem:[%s9384_s2 + $0x150] sm:$0xff] }
  0xad   :  { %v929_v62 = vmul.f32 0.0051020407, %v897_v55  ;;  %v924_v55 = vmul.f32 0.0051020407, %v5759_v11  ;;  %v5854_v11 = vld [vmem:[%s9384_s2 + $0x148] sm:$0xff] }
  0xae   :  { %v909_v20 = vpop.xlane.xlu1 %908 }
  0xaf   :  { %475 = vmatmul.mubr.f32.gmra.mxu0 %v5795_v61  ;;  %v932_v47 = vmul.f32 0.0051020407, %v909_v20  ;;  %v921_v20 = vmul.f32 0.0051020407, %v5735_v15  ;;  %v5871_v15 = vld [vmem:[%s9384_s2 + $0x158] sm:$0xff] }
  0xb0   :  { %v905_v27 = vpop.xlane.xlu0 %904  ;;  %480 = vmatprep.mubr.f32.mxu0 %v9389_v3 }
  0xb1   :  { %v931_v53 = vmul.f32 0.0051020407, %v905_v27  ;;  %v919_v27 = vmul.f32 0.0051020407, %v5739_v16  ;;  %v5882_v16 = vld [vmem:[%s9384_s2 + $0x160] sm:$0xff] }
  0xb2   :  { %v917_v32 = vpop.xlane.xlu1 %916 }
  0xb3   :  { %v934_v36 = vmul.f32 0.0051020407, %v917_v32  ;;  %481 = vmatmul.mubr.f32.gmra.mxu0 %v5802_v30  ;;  %v5953_v32 = vld [vmem:[%s9384_s2 + $0x190] sm:$0xff] }
  0xb4   :  { %v913_v38 = vpop.xlane.xlu0 %912  ;;  %486 = vmatprep.mubr.f32.mxu0 %v9389_v3 }
  0xb5   :  { %v933_v44 = vmul.f32 0.0051020407, %v913_v38  ;;  %4668 = vmatprep.subr.mxu1 %v934_v36 }
  0xb6   :  { %4669 = vmatpush3.msra.mxu1 %v934_v36 }
  0xb7   :  { %4670 = vmatprep.subr.mxu1 %v933_v44  ;;  %487 = vmatmul.mubr.f32.gmra.mxu0 %v5809_v42 }
  0xb8   :  { %4671 = vmatpush3.msra.mxu1 %v933_v44  ;;  %492 = vmatprep.mubr.f32.mxu0 %v9389_v3 }
  0xb9   :  { %4672 = vmatprep.subr.mxu1 %v932_v47 }
  0xba   :  { %4673 = vmatpush3.msra.mxu1 %v932_v47 }
  0xbb   :  { %4674 = vmatprep.subr.mxu1 %v931_v53  ;;  %493 = vmatmul.mubr.f32.gmra.mxu0 %v5816_v49 }
  0xbc   :  { %4675 = vmatpush3.msra.mxu1 %v931_v53  ;;  %498 = vmatprep.mubr.f32.mxu0 %v9389_v3  ;;  %v5971_v53 = vld [vmem:[%s9384_s2 + $0x198] sm:$0xff] }
  0xbd   :  { %4676 = vmatprep.subr.mxu1 %v930_v56 }
  0xbe   :  { %4677 = vmatpush3.msra.mxu1 %v930_v56 }
  0xbf   :  { %4678 = vmatprep.subr.mxu1 %v929_v62  ;;  %499 = vmatmul.mubr.f32.gmra.mxu0 %v5823_v58 }
  0xc0   :  { %4679 = vmatpush3.msra.mxu1 %v929_v62  ;;  %504 = vmatprep.mubr.f32.mxu0 %v9389_v3 }
  0xc1   :  { %4680 = vmatprep.subr.mxu1 %v928_v0 }
  0xc2   :  { %4681 = vmatpush3.msra.mxu1 %v928_v0 }
  0xc3   :  { %4682 = vmatprep.subr.mxu1 %v927_v7  ;;  %505 = vmatmul.mubr.f32.gmra.mxu0 %v5830_v4 }
  0xc4   :  { %4683 = vmatpush3.msra.mxu1 %v927_v7  ;;  %510 = vmatprep.mubr.f32.mxu0 %v9389_v3 }
  0xc5   :  { %4684 = vmatprep.subr.mxu1 %v926_v12 }
  0xc6   :  { %4685 = vmatpush3.msra.mxu1 %v926_v12 }
  0xc7   :  { %4686 = vmatprep.subr.mxu1 %v925_v46  ;;  %511 = vmatmul.mubr.f32.gmra.mxu0 %v5837_v34 }
  0xc8   :  { %4687 = vmatpush3.msra.mxu1 %v925_v46  ;;  %516 = vmatprep.mubr.f32.mxu0 %v9389_v3 }
  0xc9   :  { %4688 = vmatprep.subr.mxu1 %v924_v55 }
  0xca   :  { %4689 = vmatpush3.msra.mxu1 %v924_v55 }
  0xcb   :  { %4690 = vmatprep.subr.mxu1 %v923_v5  ;;  %517 = vmatmul.mubr.f32.gmra.mxu0 %v5845_v40 }
  0xcc   :  { %4691 = vmatpush3.msra.mxu1 %v923_v5  ;;  %522 = vmatprep.mubr.f32.mxu0 %v9389_v3  ;;  %v5996_v5 = vld [vmem:[%s9384_s2 + $0x1a0] sm:$0xff] }
  0xcd   :  { %4692 = vmatprep.subr.mxu1 %v922_v9 }
  0xce   :  { %4693 = vmatpush3.msra.mxu1 %v922_v9 }
  0xcf   :  { %4694 = vmatprep.subr.mxu1 %v921_v20  ;;  %523 = vmatmul.mubr.f32.gmra.mxu0 %v5854_v11 }
  0xd0   :  { %4695 = vmatpush3.msra.mxu1 %v921_v20  ;;  %528 = vmatprep.mubr.f32.mxu0 %v9389_v3 }
  0xd1   :  { %4696 = vmatprep.subr.mxu1 %v920_v25 }
  0xd2   :  { %4697 = vmatpush3.msra.mxu1 %v920_v25 }
  0xd3   :  { %4698 = vmatprep.subr.mxu1 %v919_v27  ;;  %529 = vmatmul.mubr.f32.gmra.mxu0 %v5863_v22 }
  0xd4   :  { %4699 = vmatpush3.msra.mxu1 %v919_v27  ;;  %534 = vmatprep.mubr.f32.mxu0 %v9389_v3 }
  0xd5   :  { %4701 = vmatmul.mubr.f32.vlgmr.msra.gmra.mxu1 %v5454_v13  ;;  %v5891_v13 = vld [vmem:[%s9384_s2 + $0x168] sm:$0xff] }
  0xd6   :  { %4703 = vmatprep.mubr.f32.mxu1 %v5465_v29  ;;  %v5900_v29 = vld [vmem:[%s9384_s2 + $0x170] sm:$0xff] }
  0xd7   :  { %535 = vmatmul.mubr.f32.gmra.mxu0 %v5871_v15 }
  0xd8   :  { %540 = vmatprep.mubr.f32.mxu0 %v9389_v3 }
  0xd9   :  { %4704 = vmatmul.mubr.f32.gmra.mxu1 %v5479_v8  ;;  %v5909_v8 = vld [vmem:[%s9384_s2 + $0x178] sm:$0xff] }
  0xda   :  { %4706 = vmatprep.mubr.f32.mxu1 %v5491_v19  ;;  %v5918_v19 = vld [vmem:[%s9384_s2 + $0x180] sm:$0xff] }
  0xdb   :  { %541 = vmatmul.mubr.f32.gmra.mxu0 %v5882_v16 }
  0xdc   :  { %546 = vmatprep.mubr.f32.mxu0 %v9389_v3 }
  0xdd   :  { %4707 = vmatmul.mubr.f32.gmra.mxu1 %v5502_v35 }
  0xde   :  { %4709 = vmatprep.mubr.f32.mxu1 %v5513_v50 }
  0xdf   :  { %547 = vmatmul.mubr.f32.gmra.mxu0 %v5891_v13 }
  0xe0   :  { %552 = vmatprep.mubr.f32.mxu0 %v9389_v3 }
  0xe1   :  { %4710 = vmatmul.mubr.f32.gmra.mxu1 %v5524_v60 }
  0xe2   :  { %4712 = vmatprep.mubr.f32.mxu1 %v5535_v17 }
  0xe3   :  { %553 = vmatmul.mubr.f32.gmra.mxu0 %v5900_v29 }
  0xe4   :  { %558 = vmatprep.mubr.f32.mxu0 %v9389_v3 }
  0xe5   :  { %4713 = vmatmul.mubr.f32.gmra.mxu1 %v5546_v26  ;;  %v5935_v26 = vld [vmem:[%s9384_s2 + $0x188] sm:$0xff] }
  0xe6   :  { %4715 = vmatprep.mubr.f32.mxu1 %v5557_v28 }
  0xe7   :  { %559 = vmatmul.mubr.f32.gmra.mxu0 %v5909_v8 }
  0xe8   :  { %564 = vmatprep.mubr.f32.mxu0 %v9389_v3 }
  0xe9   :  { %4716 = vmatmul.mubr.f32.gmra.mxu1 %v5568_v31 }
  0xea   :  { %4718 = vmatprep.mubr.f32.mxu1 %v5579_v33 }
  0xeb   :  { %v5920_v35 = vpop.f32.mrf.mxu0  ;;  %565 = vmatmul.mubr.f32.gmra.mxu0 %v5918_v19 }
  0xec   :  { %570 = vmatprep.mubr.f32.mxu0 %v9389_v3  ;;  %v1480_v50 = vmul.f32 %v5920_v35, %v5920_v35 }
  0xed   :  { %4719 = vmatmul.mubr.f32.gmra.mxu1 %v5590_v37  ;;  %v5927_v60 = vpop.f32.mrf.mxu0 }
  0xee   :  { %v1481_v17 = vmul.f32 %v5927_v60, %v5927_v60  ;;  %4721 = vmatprep.mubr.f32.mxu1 %v5601_v41 }
  0xef   :  { %v5937_v28 = vpop.f32.mrf.mxu0  ;;  %571 = vmatmul.mubr.f32.gmra.mxu0 %v5935_v26 }
  0xf0   :  { %v1672_v31 = vsel %vm853_vm0, %v1481_v17, 0.0  ;;  %576 = vmatprep.mubr.f32.mxu0 %v9389_v3  ;;  %v1482_v33 = vmul.f32 %v5937_v28, %v5937_v28 }
  0xf1   :  { %4722 = vmatmul.mubr.f32.gmra.mxu1 %v5612_v43  ;;  %v5945_v37 = vpop.f32.mrf.mxu0  ;;  %v1673_v41 = vadd.f32 %v1672_v31, %v1480_v50 }
  0xf2   :  { %v1483_v23 = vmul.f32 %v5945_v37, %v5945_v37  ;;  %4724 = vmatprep.mubr.f32.mxu1 %v5623_v45 }
  0xf3   :  { %v5955_v36 = vpop.f32.mrf.mxu0  ;;  %1674 = vadd.xlane.f32.xlu0 %v1673_v41  ;;  %577 = vmatmul.mubr.f32.gmra.mxu0 %v5953_v32 }
  0xf4   :  { %v1676_v43 = vsel %vm853_vm0, %v1483_v23, 0.0  ;;  %582 = vmatprep.mubr.f32.mxu0 %v9389_v3 }
  0xf5   :  { %4725 = vmatmul.mubr.f32.gmra.mxu1 %v5634_v48  ;;  %v5961_v38 = vpop.f32.mrf.mxu0  ;;  %v5963_v44 = vpop.f32.mrf.mxu1  ;;  %v1677_v45 = vadd.f32 %v1676_v43, %v1482_v33 }
  0xf6   :  { %9575 = vst [vmem:[#allocation2_spill] sm:$0xff] %v5963_v44  ;;  %v1485_v47 = vmul.f32 %v5961_v38, %v5961_v38  ;;  %4727 = vmatprep.mubr.f32.mxu1 %v5645_v52  ;;  %v1624_v48 = vmul.f32 %v5963_v44, %v5963_v44  ;;  %v1484_v52 = vmul.f32 %v5955_v36, %v5955_v36 }
  0xf7   :  { %v5973_v56 = vpop.f32.mrf.mxu0  ;;  %v5977_v62 = vpop.f32.mrf.mxu1  ;;  %1678 = vadd.xlane.f32.xlu1 %v1677_v45  ;;  %583 = vmatmul.mubr.f32.gmra.mxu0 %v5971_v53 }
  0xf8   :  { %9576 = vst [vmem:[#allocation3_spill] sm:$0xff] %v5977_v62  ;;  %v1625_v0 = vmul.f32 %v5977_v62, %v5977_v62  ;;  %588 = vmatprep.mubr.f32.mxu0 %v9389_v3  ;;  %v1680_v55 = vsel %vm853_vm0, %v1485_v47, 0.0  ;;  %v1486_v33 = vmul.f32 %v5973_v56, %v5973_v56 }
  0xf9   :  { %4728 = vmatmul.mubr.f32.gmra.mxu1 %v5656_v54  ;;  %v5986_v7 = vpop.f32.mrf.mxu0  ;;  %v5988_v12 = vpop.f32.mrf.mxu1  ;;  %v1681_v17 = vadd.f32 %v1680_v55, %v1484_v52 }
  0xfa   :  { %9577 = vst [vmem:[#allocation4_spill] sm:$0xff] %v5988_v12  ;;  %4730 = vmatprep.mubr.f32.mxu1 %v5667_v57  ;;  %v1960_v46 = vsel %vm853_vm0, %v1625_v0, 0.0  ;;  %v1487_v9 = vmul.f32 %v5986_v7, %v5986_v7  ;;  %v1626_v25 = vmul.f32 %v5988_v12, %v5988_v12 }
  0xfb   :  { %v6000_v20 = vpop.f32.mrf.mxu0  ;;  %v1961_v54 = vadd.f32 %v1960_v46, %v1624_v48  ;;  %v6004_v27 = vpop.f32.mrf.mxu1  ;;  %589 = vmatmul.mubr.f32.gmra.mxu0 %v5996_v5 }
  0xfc   :  { %9578 = vst [vmem:[#allocation5_spill] sm:$0xff] %v6004_v27  ;;  %v1627_v57 = vmul.f32 %v6004_v27, %v6004_v27  ;;  %594 = vmatprep.mubr.f32.mxu0 %v9389_v3  ;;  %v1684_v0 = vsel %vm853_vm0, %v1487_v9, 0.0  ;;  %v1488_v52 = vmul.f32 %v6000_v20, %v6000_v20 }
  0xfd   :  { %4731 = vmatmul.mubr.f32.gmra.mxu1 %v5678_v59  ;;  %v6011_v50 = vpop.f32.mrf.mxu0  ;;  %1962 = vadd.xlane.f32.xlu0 %v1961_v54  ;;  %v6013_v31 = vpop.f32.mrf.mxu1  ;;  %v6024_v59 = vld [vmem:[%s9384_s2 + $0x1a8] sm:$0xff]  ;;  %v1685_v9 = vadd.f32 %v1684_v0, %v1486_v33 }
  0xfe   :  { %9579 = vst [vmem:[#allocation6_spill] sm:$0xff] %v6013_v31  ;;  %v1489_v41 = vmul.f32 %v6011_v50, %v6011_v50  ;;  %4733 = vmatprep.mubr.f32.mxu1 %v5689_v63  ;;  %v1964_v23 = vsel %vm853_vm0, %v1627_v57, 0.0  ;;  %v1628_v45 = vmul.f32 %v6013_v31, %v6013_v31  ;;  %v6050_v57 = vld [vmem:[%s9384_s2 + $0x1b0] sm:$0xff] }
  0xff   :  { %v6026_v43 = vpop.f32.mrf.mxu0  ;;  %v6030_v47 = vpop.f32.mrf.mxu1  ;;  %v1965_v48 = vadd.f32 %v1964_v23, %v1626_v25  ;;  %595 = vmatmul.mubr.f32.gmra.mxu0 %v6024_v59 }
 0x100   :  { %9580 = vst [vmem:[#allocation7_spill] sm:$0xff] %v6030_v47  ;;  %v1629_v63 = vmul.f32 %v6030_v47, %v6030_v47  ;;  %600 = vmatprep.mubr.f32.mxu0 %v9389_v3  ;;  %v1688_v25 = vsel %vm853_vm0, %v1489_v41, 0.0  ;;  %v1490_v47 = vmul.f32 %v6026_v43, %v6026_v43 }
 0x101   :  { %4734 = vmatmul.mubr.f32.gmra.mxu1 %v5700_v1  ;;  %v6040_v46 = vpop.f32.mrf.mxu0  ;;  %1682 = vadd.xlane.f32.xlu0 %v1681_v17  ;;  %v6042_v55 = vpop.f32.mrf.mxu1 }
 0x102   :  { %9581 = vst [vmem:[#allocation8_spill] sm:$0xff] %v6042_v55  ;;  %4736 = vmatprep.mubr.f32.mxu1 %v5711_v6  ;;  %1966 = vadd.xlane.f32.xlu1 %v1965_v48  ;;  %v1968_v54 = vsel %vm853_vm0, %v1629_v63, 0.0  ;;  %v1491_v1 = vmul.f32 %v6040_v46, %v6040_v46  ;;  %v1630_v17 = vmul.f32 %v6042_v55, %v6042_v55 }
 0x103   :  { %v6054_v23 = vpop.f32.mrf.mxu0  ;;  %v6058_v6 = vpop.f32.mrf.mxu1  ;;  %v1969_v33 = vadd.f32 %v1968_v54, %v1628_v45  ;;  %601 = vmatmul.mubr.f32.gmra.mxu0 %v6050_v57  ;;  %v1689_v63 = vadd.f32 %v1688_v25, %v1488_v52 }
 0x104   :  { %9582 = vst [vmem:[#allocation9_spill] sm:$0xff] %v6058_v6  ;;  %v1631_v41 = vmul.f32 %v6058_v6, %v6058_v6  ;;  %606 = vmatprep.mubr.f32.mxu0 %v9389_v3  ;;  %v1692_v31 = vsel %vm853_vm0, %v1491_v1, 0.0 }
 0x105   :  { %4737 = vmatmul.mubr.f32.gmra.mxu1 %v5722_v10  ;;  %v6065_v48 = vpop.f32.mrf.mxu0  ;;  %v6067_v0 = vpop.f32.mrf.mxu1  ;;  %1970 = vadd.xlane.f32.xlu0 %v1969_v33  ;;  %v6078_v10 = vld [vmem:[%s9384_s2 + $0x1b8] sm:$0xff]  ;;  %v1693_v1 = vadd.f32 %v1692_v31, %v1490_v47 }
 0x106   :  { %9583 = vst [vmem:[#allocation10_spill] sm:$0xff] %v6067_v0  ;;  %v1493_v45 = vmul.f32 %v6065_v48, %v6065_v48  ;;  %4739 = vmatprep.mubr.f32.mxu1 %v5733_v14  ;;  %1686 = vadd.xlane.f32.xlu1 %v1685_v9  ;;  %v1972_v54 = vsel %vm853_vm0, %v1631_v41, 0.0  ;;  %v1632_v52 = vmul.f32 %v6067_v0, %v6067_v0  ;;  %v9585_v9 = vmov 0.0  }
 0x107   :  { %v6080_v3 = vpop.f32.mrf.mxu0  ;;  %v6084_v25 = vpop.f32.mrf.mxu1  ;;  %v1973_v33 = vadd.f32 %v1972_v54, %v1630_v17  ;;  %607 = vmatmul.mubr.f32.gmra.mxu0 %v6078_v10  ;;  %v1492_v41 = vmul.f32 %v6054_v23, %v6054_v23 }
 0x108   :  { %9584 = vst [vmem:[#allocation11_spill] sm:$0xff] %v6084_v25  ;;  %v1633_v14 = vmul.f32 %v6084_v25, %v6084_v25  ;;  %612 = vmatprep.mubr.f32.mxu0 %v9585_v9  ;;  %v1696_v54 = vsel %vm853_vm0, %v1493_v45, 0.0  ;;  %v6104_v25 = vld [vmem:[%s9384_s2 + $0x1c0] sm:$0xff] }
 0x109   :  { %4740 = vmatmul.mubr.f32.gmra.mxu1 %v5745_v21  ;;  %v6094_v62 = vpop.f32.mrf.mxu0  ;;  %v6096_v0 = vpop.f32.mrf.mxu1  ;;  %1690 = vadd.xlane.f32.xlu0 %v1689_v63 }
 0x10a   :  { %9586 = vst [vmem:[#allocation12_spill] sm:$0xff] %v6096_v0  ;;  %4742 = vmatprep.mubr.f32.mxu1 %v5754_v2  ;;  %1974 = vadd.xlane.f32.xlu1 %v1973_v33  ;;  %v1976_v17 = vsel %vm853_vm0, %v1633_v14, 0.0  ;;  %v1495_v21 = vmul.f32 %v6094_v62, %v6094_v62  ;;  %v1634_v63 = vmul.f32 %v6096_v0, %v6096_v0 }
 0x10b   :  { %v6108_v44 = vpop.f32.mrf.mxu0  ;;  %v6112_v2 = vpop.f32.mrf.mxu1  ;;  %v1977_v31 = vadd.f32 %v1976_v17, %v1632_v52  ;;  %613 = vmatmul.mubr.f32.gmra.mxu0 %v6104_v25  ;;  %v1697_v14 = vadd.f32 %v1696_v54, %v1492_v41  ;;  %v1494_v0 = vmul.f32 %v6080_v3, %v6080_v3 }
 0x10c   :  { %9587 = vst [vmem:[#allocation13_spill] sm:$0xff] %v6112_v2  ;;  %v1635_v47 = vmul.f32 %v6112_v2, %v6112_v2  ;;  %618 = vmatprep.mubr.f32.mxu0 %v9585_v9  ;;  %v1700_v6 = vsel %vm853_vm0, %v1495_v21, 0.0 }
 0x10d   :  { %4743 = vmatmul.mubr.f32.gmra.mxu1 %v5765_v39  ;;  %v6119_v45 = vpop.f32.mrf.mxu0  ;;  %v6121_v33 = vpop.f32.mrf.mxu1  ;;  %1978 = vadd.xlane.f32.xlu0 %v1977_v31  ;;  %v6132_v39 = vld [vmem:[%s9384_s2 + $0x1c8] sm:$0xff]  ;;  %v1701_v21 = vadd.f32 %v1700_v6, %v1494_v0 }
 0x10e   :  { %9588 = vst [vmem:[#allocation14_spill] sm:$0xff] %v6121_v33  ;;  %v1497_v52 = vmul.f32 %v6119_v45, %v6119_v45  ;;  %4745 = vmatprep.mubr.f32.mxu1 %v5774_v51  ;;  %1694 = vadd.xlane.f32.xlu1 %v1693_v1  ;;  %v1980_v17 = vsel %vm853_vm0, %v1635_v47, 0.0  ;;  %v1636_v41 = vmul.f32 %v6121_v33, %v6121_v33 }
 0x10f   :  { %v6134_v2 = vpop.f32.mrf.mxu0  ;;  %v6138_v54 = vpop.f32.mrf.mxu1  ;;  %v1981_v31 = vadd.f32 %v1980_v17, %v1634_v63  ;;  %619 = vmatmul.mubr.f32.gmra.mxu0 %v6132_v39  ;;  %v1496_v1 = vmul.f32 %v6108_v44, %v6108_v44 }
 0x110   :  { %9589 = vst [vmem:[#allocation15_spill] sm:$0xff] %v6138_v54  ;;  %v1637_v51 = vmul.f32 %v6138_v54, %v6138_v54  ;;  %624 = vmatprep.mubr.f32.mxu0 %v9585_v9  ;;  %v1704_v17 = vsel %vm853_vm0, %v1497_v52, 0.0  ;;  %v6158_v54 = vld [vmem:[%s9384_s2 + $0x1d0] sm:$0xff] }
 0x111   :  { %4746 = vmatmul.mubr.f32.gmra.mxu1 %v5781_v24  ;;  %v6148_v47 = vpop.f32.mrf.mxu0  ;;  %v6150_v33 = vpop.f32.mrf.mxu1  ;;  %1698 = vadd.xlane.f32.xlu0 %v1697_v14 }
 0x112   :  { %9590 = vst [vmem:[#allocation16_spill] sm:$0xff] %v6150_v33  ;;  %4748 = vmatprep.mubr.f32.mxu1 %v5788_v18  ;;  %1982 = vadd.xlane.f32.xlu1 %v1981_v31  ;;  %v1984_v63 = vsel %vm853_vm0, %v1637_v51, 0.0  ;;  %v1499_v24 = vmul.f32 %v6148_v47, %v6148_v47  ;;  %v1638_v14 = vmul.f32 %v6150_v33, %v6150_v33 }
 0x113   :  { %v6162_v55 = vpop.f32.mrf.mxu0  ;;  %v6166_v18 = vpop.f32.mrf.mxu1  ;;  %v1985_v6 = vadd.f32 %v1984_v63, %v1636_v41  ;;  %625 = vmatmul.mubr.f32.gmra.mxu0 %v6158_v54  ;;  %v1705_v51 = vadd.f32 %v1704_v17, %v1496_v1  ;;  %v1498_v33 = vmul.f32 %v6134_v2, %v6134_v2 }
 0x114   :  { %9591 = vst [vmem:[#allocation17_spill] sm:$0xff] %v6166_v18  ;;  %v1639_v0 = vmul.f32 %v6166_v18, %v6166_v18  ;;  %630 = vmatprep.mubr.f32.mxu0 %v9585_v9  ;;  %v1708_v27 = vsel %vm853_vm0, %v1499_v24, 0.0 }
 0x115   :  { %4749 = vmatmul.mubr.f32.gmra.mxu1 %v5795_v61  ;;  %v6173_v52 = vpop.f32.mrf.mxu0  ;;  %v6175_v31 = vpop.f32.mrf.mxu1  ;;  %1986 = vadd.xlane.f32.xlu0 %v1985_v6  ;;  %v6186_v61 = vld [vmem:[%s9384_s2 + $0x1d8] sm:$0xff]  ;;  %v1709_v24 = vadd.f32 %v1708_v27, %v1498_v33 }
 0x116   :  { %9592 = vst [vmem:[#allocation18_spill] sm:$0xff] %v6175_v31  ;;  %v1501_v41 = vmul.f32 %v6173_v52, %v6173_v52  ;;  %4751 = vmatprep.mubr.f32.mxu1 %v5802_v30  ;;  %1702 = vadd.xlane.f32.xlu1 %v1701_v21  ;;  %v1988_v63 = vsel %vm853_vm0, %v1639_v0, 0.0  ;;  %v1640_v1 = vmul.f32 %v6175_v31, %v6175_v31 }
 0x117   :  { %v6188_v18 = vpop.f32.mrf.mxu0  ;;  %v6192_v17 = vpop.f32.mrf.mxu1  ;;  %v1989_v6 = vadd.f32 %v1988_v63, %v1638_v14  ;;  %631 = vmatmul.mubr.f32.gmra.mxu0 %v6186_v61  ;;  %v1500_v21 = vmul.f32 %v6162_v55, %v6162_v55 }
 0x118   :  { %9593 = vst [vmem:[#allocation19_spill] sm:$0xff] %v6192_v17  ;;  %v1641_v30 = vmul.f32 %v6192_v17, %v6192_v17  ;;  %636 = vmatprep.mubr.f32.mxu0 %v9585_v9  ;;  %v1712_v63 = vsel %vm853_vm0, %v1501_v41, 0.0  ;;  %v6212_v17 = vld [vmem:[%s9384_s2 + $0x1e0] sm:$0xff] }
 0x119   :  { %4752 = vmatmul.mubr.f32.gmra.mxu1 %v5809_v42  ;;  %v6202_v0 = vpop.f32.mrf.mxu0  ;;  %v6204_v31 = vpop.f32.mrf.mxu1  ;;  %1706 = vadd.xlane.f32.xlu0 %v1705_v51 }
 0x11a   :  { %9594 = vst [vmem:[#allocation20_spill] sm:$0xff] %v6204_v31  ;;  %4754 = vmatprep.mubr.f32.mxu1 %v5816_v49  ;;  %1990 = vadd.xlane.f32.xlu1 %v1989_v6  ;;  %v1992_v14 = vsel %vm853_vm0, %v1641_v30, 0.0  ;;  %v1503_v42 = vmul.f32 %v6202_v0, %v6202_v0  ;;  %v1642_v51 = vmul.f32 %v6204_v31, %v6204_v31 }
 0x11b   :  { %v6216_v12 = vpop.f32.mrf.mxu0  ;;  %v6220_v49 = vpop.f32.mrf.mxu1  ;;  %v1993_v27 = vadd.f32 %v1992_v14, %v1640_v1  ;;  %637 = vmatmul.mubr.f32.gmra.mxu0 %v6212_v17  ;;  %v1713_v30 = vadd.f32 %v1712_v63, %v1500_v21  ;;  %v1502_v31 = vmul.f32 %v6188_v18, %v6188_v18 }
 0x11c   :  { %9595 = vst [vmem:[#allocation21_spill] sm:$0xff] %v6216_v12  ;;  %9596 = vst [vmem:[#allocation22_spill] sm:$0xff] %v6220_v49  ;;  %v1643_v33 = vmul.f32 %v6220_v49, %v6220_v49  ;;  %642 = vmatprep.mubr.f32.mxu0 %v9585_v9 }
 0x11d   :  { %4755 = vmatmul.mubr.f32.gmra.mxu1 %v5823_v58  ;;  %v6227_v41 = vpop.f32.mrf.mxu0  ;;  %v6229_v6 = vpop.f32.mrf.mxu1  ;;  %1994 = vadd.xlane.f32.xlu0 %v1993_v27  ;;  %v6240_v58 = vld [vmem:[%s9384_s2 + $0x1e8] sm:$0xff] }
 0x11e   :  { %9597 = vst [vmem:[#allocation23_spill] sm:$0xff] %v6227_v41  ;;  %9598 = vst [vmem:[#allocation24_spill] sm:$0xff] %v6229_v6  ;;  %v1505_v1 = vmul.f32 %v6227_v41, %v6227_v41  ;;  %4757 = vmatprep.mubr.f32.mxu1 %v5830_v4  ;;  %1710 = vadd.xlane.f32.xlu1 %v1709_v24  ;;  %v1996_v14 = vsel %vm853_vm0, %v1643_v33, 0.0  ;;  %v1644_v21 = vmul.f32 %v6229_v6, %v6229_v6 }
 0x11f   :  { %v6242_v49 = vpop.f32.mrf.mxu0  ;;  %v6246_v63 = vpop.f32.mrf.mxu1  ;;  %v1997_v27 = vadd.f32 %v1996_v14, %v1642_v51  ;;  %v1716_v41 = vsel %vm853_vm0, %v1503_v42, 0.0  ;;  %643 = vmatmul.mubr.f32.gmra.mxu0 %v6240_v58  ;;  %v1504_v24 = vmul.f32 %v6216_v12, %v6216_v12 }
 0x120   :  { %9599 = vst [vmem:[#allocation25_spill] sm:$0xff] %v6242_v49  ;;  %9600 = vst [vmem:[#allocation26_spill] sm:$0xff] %v6246_v63  ;;  %v1645_v4 = vmul.f32 %v6246_v63, %v6246_v63  ;;  %648 = vmatprep.mubr.f32.mxu0 %v9585_v9  ;;  %v1717_v42 = vadd.f32 %v1716_v41, %v1502_v31  ;;  %v1720_v14 = vsel %vm853_vm0, %v1505_v1, 0.0  ;;  %v6266_v63 = vld [vmem:[%s9384_s2 + $0x1f0] sm:$0xff] }
 0x121   :  { %4758 = vmatmul.mubr.f32.gmra.mxu1 %v5837_v34  ;;  %v6256_v33 = vpop.f32.mrf.mxu0  ;;  %v6258_v6 = vpop.f32.mrf.mxu1  ;;  %1714 = vadd.xlane.f32.xlu0 %v1713_v30 }
 0x122   :  { %9601 = vst [vmem:[#allocation27_spill] sm:$0xff] %v6256_v33  ;;  %9602 = vst [vmem:[#allocation28_spill] sm:$0xff] %v6258_v6  ;;  %4760 = vmatprep.mubr.f32.mxu1 %v5845_v40  ;;  %1998 = vadd.xlane.f32.xlu1 %v1997_v27  ;;  %v2000_v51 = vsel %vm853_vm0, %v1645_v4, 0.0  ;;  %v1507_v34 = vmul.f32 %v6256_v33, %v6256_v33  ;;  %v1646_v30 = vmul.f32 %v6258_v6, %v6258_v6 }
 0x123   :  { %v6270_v12 = vpop.f32.mrf.mxu0  ;;  %v6274_v40 = vpop.f32.mrf.mxu1  ;;  %v2001_v31 = vadd.f32 %v2000_v51, %v1644_v21  ;;  %649 = vmatmul.mubr.f32.gmra.mxu0 %v6266_v63  ;;  %v1721_v4 = vadd.f32 %v1720_v14, %v1504_v24  ;;  %v1506_v6 = vmul.f32 %v6242_v49, %v6242_v49 }
 0x124   :  { %9603 = vst [vmem:[#allocation29_spill] sm:$0xff] %v6270_v12  ;;  %9604 = vst [vmem:[#allocation30_spill] sm:$0xff] %v6274_v40  ;;  %v1647_v41 = vmul.f32 %v6274_v40, %v6274_v40  ;;  %654 = vmatprep.mubr.f32.mxu0 %v9585_v9 }
 0x125   :  { %4761 = vmatmul.mubr.f32.gmra.mxu1 %v5854_v11  ;;  %v6281_v1 = vpop.f32.mrf.mxu0  ;;  %v6283_v27 = vpop.f32.mrf.mxu1  ;;  %2002 = vadd.xlane.f32.xlu0 %v2001_v31  ;;  %v6294_v11 = vld [vmem:[%s9384_s2 + $0x1f8] sm:$0xff] }
 0x126   :  { %9605 = vst [vmem:[#allocation31_spill] sm:$0xff] %v6281_v1  ;;  %9606 = vst [vmem:[#allocation32_spill] sm:$0xff] %v6283_v27  ;;  %4763 = vmatprep.mubr.f32.mxu1 %v5863_v22  ;;  %v1509_v21 = vmul.f32 %v6281_v1, %v6281_v1  ;;  %1718 = vadd.xlane.f32.xlu1 %v1717_v42  ;;  %v2004_v51 = vsel %vm853_vm0, %v1647_v41, 0.0  ;;  %v1648_v24 = vmul.f32 %v6283_v27, %v6283_v27 }
 0x127   :  { %v6296_v40 = vpop.f32.mrf.mxu0  ;;  %v6300_v14 = vpop.f32.mrf.mxu1  ;;  %v2005_v31 = vadd.f32 %v2004_v51, %v1646_v30  ;;  %v1724_v22 = vsel %vm853_vm0, %v1507_v34, 0.0  ;;  %655 = vmatmul.mubr.f32.gmra.mxu0 %v6294_v11  ;;  %v1508_v41 = vmul.f32 %v6270_v12, %v6270_v12 }
 0x128   :  { %9607 = vst [vmem:[#allocation33_spill] sm:$0xff] %v6300_v14  ;;  %v1649_v42 = vmul.f32 %v6300_v14, %v6300_v14  ;;  %660 = vmatprep.mubr.f32.mxu0 %v9585_v9  ;;  %v1725_v34 = vadd.f32 %v1724_v22, %v1506_v6  ;;  %v1728_v51 = vsel %vm853_vm0, %v1509_v21, 0.0  ;;  %v5097_v6 = vmov 0  }
 0x129   :  { %4764 = vmatmul.mubr.f32.gmra.mxu1 %v5871_v15  ;;  %v6310_v1 = vpop.f32.mrf.mxu0  ;;  %v6312_v27 = vpop.f32.mrf.mxu1  ;;  %1722 = vadd.xlane.f32.xlu0 %v1721_v4  ;;  %v1510_v22 = vmul.f32 %v6296_v40, %v6296_v40 }
 0x12a   :  { %9608 = vst [vmem:[#allocation34_spill] sm:$0xff] %v6310_v1  ;;  %9609 = vst [vmem:[#allocation35_spill] sm:$0xff] %v6312_v27  ;;  %4766 = vmatprep.mubr.f32.mxu1 %v5882_v16  ;;  %2006 = vadd.xlane.f32.xlu1 %v2005_v31  ;;  %v2008_v30 = vsel %vm853_vm0, %v1649_v42, 0.0  ;;  %v1511_v14 = vmul.f32 %v6310_v1, %v6310_v1  ;;  %v1650_v15 = vmul.f32 %v6312_v27, %v6312_v27  ;;  %v6328_v16 = vld [vmem:[%s9384_s2 + $0x200] sm:$0xff] }
 0x12b   :  { %v6319_v33 = vpop.f32.mrf.mxu0  ;;  %v6323_v12 = vpop.f32.mrf.mxu1  ;;  %v2009_v49 = vadd.f32 %v2008_v30, %v1648_v24  ;;  %4879 = vset.pattern.permute.xlu1 %v5097_v6  ;;  %4878 = vset.pattern.permute.xlu0 %v5097_v6  ;;  %v1729_v24 = vadd.f32 %v1728_v51, %v1508_v41 }
 0x12c   :  { %9610 = vst [vmem:[#allocation36_spill] sm:$0xff] %v6319_v33  ;;  %9611 = vst [vmem:[#allocation37_spill] sm:$0xff] %v6323_v12  ;;  %v1651_v4 = vmul.f32 %v6323_v12, %v6323_v12  ;;  %661 = vmatmul.mubr.f32.gmra.mxu0 %v6328_v16  ;;  %v1732_v41 = vsel %vm853_vm0, %v1511_v14, 0.0  ;;  %v1512_v51 = vmul.f32 %v6319_v33, %v6319_v33 }
 0x12d   :  { %4767 = vmatmul.mubr.f32.gmra.mxu1 %v5891_v13  ;;  %v6334_v21 = vpop.f32.mrf.mxu0  ;;  %v6336_v31 = vpop.f32.mrf.mxu1  ;;  %2010 = vadd.xlane.f32.xlu0 %v2009_v49 }
 0x12e   :  { %9612 = vst [vmem:[#allocation38_spill] sm:$0xff] %v6334_v21  ;;  %9613 = vst [vmem:[#allocation39_spill] sm:$0xff] %v6336_v31  ;;  %4769 = vmatprep.mubr.f32.mxu1 %v5900_v29  ;;  %v1513_v42 = vmul.f32 %v6334_v21, %v6334_v21  ;;  %1726 = vadd.xlane.f32.xlu1 %v1725_v34  ;;  %v2012_v30 = vsel %vm853_vm0, %v1651_v4, 0.0  ;;  %v1652_v13 = vmul.f32 %v6336_v31, %v6336_v31  ;;  %v6354_v29 = vld [vmem:[%s9384_s2 + $0x208] sm:$0xff] }
 0x12f   :  { %v6344_v6 = vpop.f32.mrf.mxu0  ;;  %v6348_v12 = vpop.f32.mrf.mxu1  ;;  %v2013_v49 = vadd.f32 %v2012_v30, %v1650_v15  ;;  %666 = vmatprep.mubr.f32.mxu0 %v9585_v9  ;;  %v1733_v4 = vadd.f32 %v1732_v41, %v1510_v22 }
 0x130   :  { %9614 = vst [vmem:[#allocation40_spill] sm:$0xff] %v6344_v6  ;;  %9615 = vst [vmem:[#allocation41_spill] sm:$0xff] %v6348_v12  ;;  %v1653_v34 = vmul.f32 %v6348_v12, %v6348_v12  ;;  %667 = vmatmul.mubr.f32.gmra.mxu0 %v6354_v29  ;;  %v1736_v12 = vsel %vm853_vm0, %v1513_v42, 0.0 }
 0x131   :  { %4770 = vmatmul.mubr.f32.gmra.mxu1 %v5909_v8  ;;  %v6363_v15 = vpop.f32.mrf.mxu0  ;;  %v6365_v14 = vpop.f32.mrf.mxu1  ;;  %1730 = vadd.xlane.f32.xlu0 %v1729_v24 }
 0x132   :  { %9616 = vst [vmem:[#allocation42_spill] sm:$0xff] %v6363_v15  ;;  %9617 = vst [vmem:[#allocation43_spill] sm:$0xff] %v6365_v14  ;;  %4772 = vmatprep.mubr.f32.mxu1 %v5918_v19  ;;  %2014 = vadd.xlane.f32.xlu1 %v2013_v49  ;;  %v2016_v30 = vsel %vm853_vm0, %v1653_v34, 0.0  ;;  %v1515_v31 = vmul.f32 %v6363_v15, %v6363_v15  ;;  %v1654_v8 = vmul.f32 %v6365_v14, %v6365_v14  ;;  %v6381_v19 = vld [vmem:[%s9384_s2 + $0x210] sm:$0xff] }
 0x133   :  { %v6372_v27 = vpop.f32.mrf.mxu0  ;;  %v6376_v21 = vpop.f32.mrf.mxu1  ;;  %v2017_v33 = vadd.f32 %v2016_v30, %v1652_v13  ;;  %672 = vmatprep.mubr.f32.mxu0 %v9585_v9  ;;  %v1737_v13 = vadd.f32 %v1736_v12, %v1512_v51  ;;  %v1514_v49 = vmul.f32 %v6344_v6, %v6344_v6  ;;  %v6407_v12 = vld [vmem:[%s9384_s2 + $0x218] sm:$0xff] }
 0x134   :  { %9618 = vst [vmem:[#allocation44_spill] sm:$0xff] %v6372_v27  ;;  %9619 = vst [vmem:[#allocation45_spill] sm:$0xff] %v6376_v21  ;;  %v1655_v24 = vmul.f32 %v6376_v21, %v6376_v21  ;;  %673 = vmatmul.mubr.f32.gmra.mxu0 %v6381_v19 }
 0x135   :  { %4773 = vmatmul.mubr.f32.gmra.mxu1 %v5935_v26  ;;  %v6388_v22 = vpop.f32.mrf.mxu0  ;;  %v6390_v42 = vpop.f32.mrf.mxu1  ;;  %2018 = vadd.xlane.f32.xlu0 %v2017_v33 }
 0x136   :  { %9620 = vst [vmem:[#allocation46_spill] sm:$0xff] %v6388_v22  ;;  %9621 = vst [vmem:[#allocation47_spill] sm:$0xff] %v6390_v42  ;;  %4775 = vmatprep.mubr.f32.mxu1 %v5953_v32  ;;  %v1517_v41 = vmul.f32 %v6388_v22, %v6388_v22  ;;  %1734 = vadd.xlane.f32.xlu1 %v1733_v4  ;;  %v2020_v34 = vsel %vm853_vm0, %v1655_v24, 0.0  ;;  %v1656_v26 = vmul.f32 %v6390_v42, %v6390_v42 }
 0x137   :  { %v6398_v30 = vpop.f32.mrf.mxu0  ;;  %v6402_v21 = vpop.f32.mrf.mxu1  ;;  %v2021_v33 = vadd.f32 %v2020_v34, %v1654_v8  ;;  %v1740_v32 = vsel %vm853_vm0, %v1515_v31, 0.0  ;;  %678 = vmatprep.mubr.f32.mxu0 %v9585_v9  ;;  %v1516_v4 = vmul.f32 %v6372_v27, %v6372_v27 }
 0x138   :  { %9622 = vst [vmem:[#allocation48_spill] sm:$0xff] %v6398_v30  ;;  %9623 = vst [vmem:[#allocation49_spill] sm:$0xff] %v6402_v21  ;;  %v1657_v51 = vmul.f32 %v6402_v21, %v6402_v21  ;;  %679 = vmatmul.mubr.f32.gmra.mxu0 %v6407_v12  ;;  %v1741_v31 = vadd.f32 %v1740_v32, %v1514_v49  ;;  %v1744_v21 = vsel %vm853_vm0, %v1517_v41, 0.0 }
 0x139   :  { %4776 = vmatmul.mubr.f32.gmra.mxu1 %v5971_v53  ;;  %v6417_v8 = vpop.f32.mrf.mxu0  ;;  %v6419_v24 = vpop.f32.mrf.mxu1  ;;  %1738 = vadd.xlane.f32.xlu0 %v1737_v13  ;;  %v1745_v32 = vadd.f32 %v1744_v21, %v1516_v4  ;;  %v6461_v21 = vld [vmem:[%s9384_s2 + $0x228] sm:$0xff] }
 0x13a   :  { %9624 = vst [vmem:[#allocation50_spill] sm:$0xff] %v6417_v8  ;;  %9625 = vst [vmem:[#allocation51_spill] sm:$0xff] %v6419_v24  ;;  %4778 = vmatprep.mubr.f32.mxu1 %v5996_v5  ;;  %2022 = vadd.xlane.f32.xlu1 %v2021_v33  ;;  %v2024_v34 = vsel %vm853_vm0, %v1657_v51, 0.0  ;;  %v1519_v42 = vmul.f32 %v6417_v8, %v6417_v8  ;;  %v1658_v53 = vmul.f32 %v6419_v24, %v6419_v24  ;;  %v6435_v5 = vld [vmem:[%s9384_s2 + $0x220] sm:$0xff] }
 0x13b   :  { %v6426_v14 = vpop.f32.mrf.mxu0  ;;  %v6430_v22 = vpop.f32.mrf.mxu1  ;;  %v2025_v13 = vadd.f32 %v2024_v34, %v1656_v26  ;;  %684 = vmatprep.mubr.f32.mxu0 %v9585_v9  ;;  %v1518_v51 = vmul.f32 %v6398_v30, %v6398_v30 }
 0x13c   :  { %9626 = vst [vmem:[#allocation52_spill] sm:$0xff] %v6426_v14  ;;  %9627 = vst [vmem:[#allocation53_spill] sm:$0xff] %v6430_v22  ;;  %v1659_v49 = vmul.f32 %v6430_v22, %v6430_v22  ;;  %685 = vmatmul.mubr.f32.gmra.mxu0 %v6435_v5 }
 0x13d   :  { %4779 = vmatmul.mubr.f32.gmra.mxu1 %v6024_v59  ;;  %v6442_v41 = vpop.f32.mrf.mxu0  ;;  %v6444_v33 = vpop.f32.mrf.mxu1  ;;  %2026 = vadd.xlane.f32.xlu0 %v2025_v13  ;;  %v1520_v13 = vmul.f32 %v6426_v14, %v6426_v14 }
 0x13e   :  { %9628 = vst [vmem:[#allocation54_spill] sm:$0xff] %v6442_v41  ;;  %9629 = vst [vmem:[#allocation55_spill] sm:$0xff] %v6444_v33  ;;  %4781 = vmatprep.mubr.f32.mxu1 %v6050_v57  ;;  %v1521_v26 = vmul.f32 %v6442_v41, %v6442_v41  ;;  %1742 = vadd.xlane.f32.xlu1 %v1741_v31  ;;  %v2028_v34 = vsel %vm853_vm0, %v1659_v49, 0.0  ;;  %v1660_v59 = vmul.f32 %v6444_v33, %v6444_v33 }
 0x13f   :  { %v6452_v22 = vpop.f32.mrf.mxu0  ;;  %v6456_v24 = vpop.f32.mrf.mxu1  ;;  %v2029_v4 = vadd.f32 %v2028_v34, %v1658_v53  ;;  %v1748_v57 = vsel %vm853_vm0, %v1519_v42, 0.0  ;;  %690 = vmatprep.mubr.f32.mxu0 %v9585_v9 }
 0x140   :  { %9630 = vst [vmem:[#allocation56_spill] sm:$0xff] %v6452_v22  ;;  %9631 = vst [vmem:[#allocation57_spill] sm:$0xff] %v6456_v24  ;;  %v1661_v31 = vmul.f32 %v6456_v24, %v6456_v24  ;;  %691 = vmatmul.mubr.f32.gmra.mxu0 %v6461_v21  ;;  %v1749_v42 = vadd.f32 %v1748_v57, %v1518_v51  ;;  %v1752_v34 = vsel %vm853_vm0, %v1521_v26, 0.0 }
 0x141   :  { %4782 = vmatmul.mubr.f32.gmra.mxu1 %v6078_v10  ;;  %v6471_v49 = vpop.f32.mrf.mxu0  ;;  %v6473_v33 = vpop.f32.mrf.mxu1  ;;  %1746 = vadd.xlane.f32.xlu0 %v1745_v32  ;;  %v1753_v57 = vadd.f32 %v1752_v34, %v1520_v13 }
 0x142   :  { %9632 = vst [vmem:[#allocation58_spill] sm:$0xff] %v6471_v49  ;;  %9633 = vst [vmem:[#allocation59_spill] sm:$0xff] %v6473_v33  ;;  %4784 = vmatprep.mubr.f32.mxu1 %v6104_v25  ;;  %2030 = vadd.xlane.f32.xlu1 %v2029_v4  ;;  %v2032_v53 = vsel %vm853_vm0, %v1661_v31, 0.0  ;;  %v1523_v24 = vmul.f32 %v6471_v49, %v6471_v49  ;;  %v1662_v10 = vmul.f32 %v6473_v33, %v6473_v33  ;;  %v6489_v25 = vld [vmem:[%s9384_s2 + $0x230] sm:$0xff] }
 0x143   :  { %v6480_v41 = vpop.f32.mrf.mxu0  ;;  %v6484_v14 = vpop.f32.mrf.mxu1  ;;  %v2033_v32 = vadd.f32 %v2032_v53, %v1660_v59  ;;  %696 = vmatprep.mubr.f32.mxu0 %v9585_v9  ;;  %v1522_v31 = vmul.f32 %v6452_v22, %v6452_v22 }
 0x144   :  { %9634 = vst [vmem:[#allocation60_spill] sm:$0xff] %v6480_v41  ;;  %9635 = vst [vmem:[#allocation61_spill] sm:$0xff] %v6484_v14  ;;  %v1663_v51 = vmul.f32 %v6484_v14, %v6484_v14  ;;  %697 = vmatmul.mubr.f32.gmra.mxu0 %v6489_v25 }
 0x145   :  { %4785 = vmatmul.mubr.f32.gmra.mxu1 %v6132_v39  ;;  %v6496_v26 = vpop.f32.mrf.mxu0  ;;  %v6498_v4 = vpop.f32.mrf.mxu1  ;;  %2034 = vadd.xlane.f32.xlu0 %v2033_v32  ;;  %v6511_v39 = vld [vmem:[%s9384_s2 + $0x238] sm:$0xff] }
 0x146   :  { %9636 = vst [vmem:[#allocation62_spill] sm:$0xff] %v6496_v26  ;;  %9637 = vst [vmem:[#allocation63_spill] sm:$0xff] %v6498_v4  ;;  %4787 = vmatprep.mubr.f32.mxu1 %v6158_v54  ;;  %v1525_v59 = vmul.f32 %v6496_v26, %v6496_v26  ;;  %1750 = vadd.xlane.f32.xlu1 %v1749_v42  ;;  %v2036_v53 = vsel %vm853_vm0, %v1663_v51, 0.0  ;;  %v1664_v13 = vmul.f32 %v6498_v4, %v6498_v4 }
 0x147   :  { %v6506_v14 = vpop.f32.mrf.mxu0  ;;  %v6515_v34 = vpop.f32.mrf.mxu1  ;;  %v2037_v32 = vadd.f32 %v2036_v53, %v1662_v10  ;;  %v1756_v54 = vsel %vm853_vm0, %v1523_v24, 0.0  ;;  %702 = vmatprep.mubr.f32.mxu0 %v9585_v9  ;;  %v1524_v51 = vmul.f32 %v6480_v41, %v6480_v41 }
 0x148   :  { %9638 = vst [vmem:[#allocation64_spill] sm:$0xff] %v6506_v14  ;;  %9639 = vst [vmem:[#allocation65_spill] sm:$0xff] %v6515_v34  ;;  %v1665_v42 = vmul.f32 %v6515_v34, %v6515_v34  ;;  %703 = vmatmul.mubr.f32.gmra.mxu0 %v6511_v39  ;;  %v1757_v24 = vadd.f32 %v1756_v54, %v1522_v31  ;;  %v1760_v10 = vsel %vm853_vm0, %v1525_v59, 0.0 }
 0x149   :  { %4788 = vmatmul.mubr.f32.gmra.mxu1 %v6186_v61  ;;  %v6525_v33 = vpop.f32.mrf.mxu0  ;;  %v6527_v4 = vpop.f32.mrf.mxu1  ;;  %1754 = vadd.xlane.f32.xlu0 %v1753_v57  ;;  %v1761_v59 = vadd.f32 %v1760_v10, %v1524_v51 }
 0x14a   :  { %9640 = vst [vmem:[#allocation66_spill] sm:$0xff] %v6525_v33  ;;  %9641 = vst [vmem:[#allocation67_spill] sm:$0xff] %v6527_v4  ;;  %4790 = vmatprep.mubr.f32.mxu1 %v6212_v17  ;;  %2038 = vadd.xlane.f32.xlu1 %v2037_v32  ;;  %v2040_v9 = vsel %vm853_vm0, %v1665_v42, 0.0  ;;  %v1527_v53 = vmul.f32 %v6525_v33, %v6525_v33  ;;  %v1666_v61 = vmul.f32 %v6527_v4, %v6527_v4 }
 0x14b   :  { %v6534_v34 = vpop.f32.mrf.mxu0  ;;  %v6538_v26 = vpop.f32.mrf.mxu1  ;;  %v2041_v41 = vadd.f32 %v2040_v9, %v1664_v13  ;;  %v1526_v32 = vmul.f32 %v6506_v14, %v6506_v14 }
 0x14c   :  { %9642 = vst [vmem:[#allocation68_spill] sm:$0xff] %v6534_v34  ;;  %9643 = vst [vmem:[#allocation69_spill] sm:$0xff] %v6538_v26  ;;  %v1667_v17 = vmul.f32 %v6538_v26, %v6538_v26  ;;  %v1764_v51 = vsel %vm853_vm0, %v1527_v53, 0.0 }
 0x14d   :  { %4791 = vmatmul.mubr.f32.gmra.mxu1 %v6240_v58  ;;  %v6543_v57 = vpop.f32.mrf.mxu0  ;;  %v6545_v31 = vpop.f32.mrf.mxu1  ;;  %2042 = vadd.xlane.f32.xlu0 %v2041_v41 }
 0x14e   :  { %9644 = vst [vmem:[#allocation70_spill] sm:$0xff] %v6543_v57  ;;  %9645 = vst [vmem:[#allocation71_spill] sm:$0xff] %v6545_v31  ;;  %4793 = vmatprep.mubr.f32.mxu1 %v6266_v63  ;;  %v1529_v54 = vmul.f32 %v6543_v57, %v6543_v57  ;;  %1758 = vadd.xlane.f32.xlu1 %v1757_v24  ;;  %v2044_v13 = vsel %vm853_vm0, %v1667_v17, 0.0  ;;  %v1668_v58 = vmul.f32 %v6545_v31, %v6545_v31 }
 0x14f   :  { %v6553_v42 = vpop.f32.mrf.mxu0  ;;  %v6557_v9 = vpop.f32.mrf.mxu1  ;;  %v2045_v41 = vadd.f32 %v2044_v13, %v1666_v61  ;;  %v1528_v63 = vmul.f32 %v6534_v34, %v6534_v34  ;;  %v1765_v31 = vadd.f32 %v1764_v51, %v1526_v32 }
 0x150   :  { %9646 = vst [vmem:[#allocation72_spill] sm:$0xff] %v6553_v42  ;;  %9647 = vst [vmem:[#allocation73_spill] sm:$0xff] %v6557_v9  ;;  %v1669_v10 = vmul.f32 %v6557_v9, %v6557_v9  ;;  %v1768_v53 = vsel %vm853_vm0, %v1529_v54, 0.0 }
 0x151   :  { %4794 = vmatmul.mubr.f32.gmra.mxu1 %v6294_v11  ;;  %v6565_v24 = vpop.f32.mrf.mxu0  ;;  %v6567_v17 = vpop.f32.mrf.mxu1  ;;  %1762 = vadd.xlane.f32.xlu0 %v1761_v59  ;;  %v1769_v54 = vadd.f32 %v1768_v53, %v1528_v63 }
 0x152   :  { %9648 = vst [vmem:[#allocation74_spill] sm:$0xff] %v6565_v24  ;;  %9649 = vst [vmem:[#allocation75_spill] sm:$0xff] %v6567_v17  ;;  %4796 = vmatprep.mubr.f32.mxu1 %v6328_v16  ;;  %2046 = vadd.xlane.f32.xlu1 %v2045_v41  ;;  %v2048_v61 = vsel %vm853_vm0, %v1669_v10, 0.0  ;;  %v1531_v13 = vmul.f32 %v6565_v24, %v6565_v24  ;;  %v1670_v11 = vmul.f32 %v6567_v17, %v6567_v17 }
 0x153   :  { %v6574_v9 = vpop.f32.mrf.mxu0  ;;  %v6578_v26 = vpop.f32.mrf.mxu1  ;;  %v2049_v4 = vadd.f32 %v2048_v61, %v1668_v58  ;;  %v1530_v41 = vmul.f32 %v6553_v42, %v6553_v42 }
 0x154   :  { %9650 = vst [vmem:[#allocation76_spill] sm:$0xff] %v6574_v9  ;;  %9651 = vst [vmem:[#allocation77_spill] sm:$0xff] %v6578_v26  ;;  %v1671_v16 = vmul.f32 %v6578_v26, %v6578_v26  ;;  %v1532_v59 = vmul.f32 %v6574_v9, %v6574_v9  ;;  %v1772_v61 = vsel %vm853_vm0, %v1531_v13, 0.0 }
 0x155   :  { %4797 = vmatmul.mubr.f32.gmra.mxu1 %v6354_v29  ;;  %v6585_v32 = vpop.f32.mrf.mxu0  ;;  %2050 = vadd.xlane.f32.xlu0 %v2049_v4  ;;  %v1773_v53 = vadd.f32 %v1772_v61, %v1530_v41  ;;  %v5073_v61 = vld [vmem:[%s9384_s2 + $0x248] sm:$0xff] }
 0x156   :  { %9652 = vst [vmem:[#allocation78_spill] sm:$0xff] %v6585_v32  ;;  %4799 = vmatprep.mubr.f32.mxu1 %v6381_v19  ;;  %v1533_v58 = vmul.f32 %v6585_v32, %v6585_v32  ;;  %1766 = vadd.xlane.f32.xlu1 %v1765_v31  ;;  %v2052_v51 = vsel %vm853_vm0, %v1671_v16, 0.0 }
 0x157   :  { %v6593_v10 = vpop.f32.mrf.mxu0  ;;  %v2053_v29 = vadd.f32 %v2052_v51, %v1670_v11 }
 0x158   :  { %9653 = vst [vmem:[#allocation79_spill] sm:$0xff] %v6593_v10  ;;  %v1776_v26 = vsel %vm853_vm0, %v1533_v58, 0.0  ;;  %v1534_v19 = vmul.f32 %v6593_v10, %v6593_v10 }
 0x159   :  { %4800 = vmatmul.mubr.f32.gmra.mxu1 %v6407_v12  ;;  %v6598_v4 = vpop.f32.mrf.mxu0  ;;  %1770 = vadd.xlane.f32.xlu0 %v1769_v54  ;;  %v1777_v63 = vadd.f32 %v1776_v26, %v1532_v59 }
 0x15a   :  { %9654 = vst [vmem:[#allocation80_spill] sm:$0xff] %v6598_v4  ;;  %4802 = vmatprep.mubr.f32.mxu1 %v6435_v5  ;;  %v1535_v31 = vmul.f32 %v6598_v4, %v6598_v4  ;;  %2054 = vadd.xlane.f32.xlu1 %v2053_v29 }
 0x15b   :  { %v6605_v11 = vpop.f32.mrf.mxu0 }
 0x15c   :  { %9655 = vst [vmem:[#allocation81_spill] sm:$0xff] %v6605_v11  ;;  %v1780_v13 = vsel %vm853_vm0, %v1535_v31, 0.0  ;;  %v1536_v12 = vmul.f32 %v6605_v11, %v6605_v11 }
 0x15d   :  { %4803 = vmatmul.mubr.f32.gmra.mxu1 %v6461_v21  ;;  %v6611_v26 = vpop.f32.mrf.mxu0  ;;  %1778 = vadd.xlane.f32.xlu0 %v1777_v63  ;;  %v1781_v16 = vadd.f32 %v1780_v13, %v1534_v19 }
 0x15e   :  { %9656 = vst [vmem:[#allocation82_spill] sm:$0xff] %v6611_v26  ;;  %4805 = vmatprep.mubr.f32.mxu1 %v6489_v25  ;;  %v1537_v5 = vmul.f32 %v6611_v26, %v6611_v26  ;;  %1774 = vadd.xlane.f32.xlu1 %v1773_v53  ;;  %v5072_v25 = vld [vmem:[%s9384_s2 + $0x240] sm:$0xff]  ;;  %v5074_v53 = vld [vmem:[%s9384_s2 + $0x250] sm:$0xff] }
 0x15f   :  { %v6616_v59 = vpop.f32.mrf.mxu0 }
 0x160   :  { %9657 = vst [vmem:[#allocation83_spill] sm:$0xff] %v6616_v59  ;;  %v1784_v54 = vsel %vm853_vm0, %v1537_v5, 0.0  ;;  %v1538_v21 = vmul.f32 %v6616_v59, %v6616_v59 }
 0x161   :  { %4806 = vmatmul.mubr.f32.gmra.mxu1 %v6511_v39  ;;  %v6622_v41 = vpop.f32.mrf.mxu0  ;;  %v1785_v58 = vadd.f32 %v1784_v54, %v1536_v12 }
 0x162   :  { %9658 = vst [vmem:[#allocation84_spill] sm:$0xff] %v6622_v41  ;;  %4808 = vmatprep.mubr.f32.mxu1 %v5072_v25  ;;  %v1539_v51 = vmul.f32 %v6622_v41, %v6622_v41  ;;  %1782 = vadd.xlane.f32.xlu1 %v1781_v16  ;;  %v5075_v16 = vld [vmem:[%s9384_s2 + $0x258] sm:$0xff]  ;;  %v5076_v25 = vld [vmem:[%s9384_s2 + $0x260] sm:$0xff] }
 0x163   :  { %v6629_v29 = vpop.f32.mrf.mxu0  ;;  %1786 = vadd.xlane.f32.xlu0 %v1785_v58 }
 0x164   :  { %9659 = vst [vmem:[#allocation85_spill] sm:$0xff] %v6629_v29  ;;  %v1788_v39 = vsel %vm853_vm0, %v1539_v51, 0.0  ;;  %v1540_v63 = vmul.f32 %v6629_v29, %v6629_v29 }
 0x165   :  { %4809 = vmatmul.mubr.f32.gmra.mxu1 %v5073_v61  ;;  %v6637_v19 = vpop.f32.mrf.mxu0  ;;  %v1789_v31 = vadd.f32 %v1788_v39, %v1538_v21 }
 0x166   :  { %9660 = vst [vmem:[#allocation86_spill] sm:$0xff] %v6637_v19  ;;  %4811 = vmatprep.mubr.f32.mxu1 %v5074_v53  ;;  %v1541_v13 = vmul.f32 %v6637_v19, %v6637_v19 }
 0x167   :  { %v6644_v12 = vpop.f32.mrf.mxu0  ;;  %1790 = vadd.xlane.f32.xlu1 %v1789_v31  ;;  %v5077_v31 = vld [vmem:[%s9384_s2 + $0x268] sm:$0xff] }
 0x168   :  { %9661 = vst [vmem:[#allocation87_spill] sm:$0xff] %v6644_v12  ;;  %v1792_v5 = vsel %vm853_vm0, %v1541_v13, 0.0  ;;  %v1542_v54 = vmul.f32 %v6644_v12, %v6644_v12 }
 0x169   :  { %4812 = vmatmul.mubr.f32.gmra.mxu1 %v5075_v16  ;;  %v6652_v21 = vpop.f32.mrf.mxu0  ;;  %v1793_v58 = vadd.f32 %v1792_v5, %v1540_v63  ;;  %v5078_v5 = vld [vmem:[%s9384_s2 + $0x270] sm:$0xff] }
 0x16a   :  { %9662 = vst [vmem:[#allocation88_spill] sm:$0xff] %v6652_v21  ;;  %4814 = vmatprep.mubr.f32.mxu1 %v5076_v25  ;;  %v1543_v51 = vmul.f32 %v6652_v21, %v6652_v21 }
 0x16b   :  { %v6659_v39 = vpop.f32.mrf.mxu0  ;;  %1794 = vadd.xlane.f32.xlu0 %v1793_v58 }
 0x16c   :  { %9663 = vst [vmem:[#allocation89_spill] sm:$0xff] %v6659_v39  ;;  %v1796_v61 = vsel %vm853_vm0, %v1543_v51, 0.0  ;;  %v1544_v63 = vmul.f32 %v6659_v39, %v6659_v39  ;;  %v5079_v51 = vld [vmem:[%s9384_s2 + $0x278] sm:$0xff] }
 0x16d   :  { %4815 = vmatmul.mubr.f32.gmra.mxu1 %v5077_v31  ;;  %v6667_v53 = vpop.f32.mrf.mxu0  ;;  %v1797_v13 = vadd.f32 %v1796_v61, %v1542_v54 }
 0x16e   :  { %9664 = vst [vmem:[#allocation90_spill] sm:$0xff] %v6667_v53  ;;  %4817 = vmatprep.mubr.f32.mxu1 %v5078_v5  ;;  %v1545_v16 = vmul.f32 %v6667_v53, %v6667_v53  ;;  %v5080_v5 = vld [vmem:[%s9384_s2 + $0x280] sm:$0xff] }
 0x16f   :  { %v6674_v58 = vpop.f32.mrf.mxu0  ;;  %1798 = vadd.xlane.f32.xlu1 %v1797_v13 }
 0x170   :  { %9665 = vst [vmem:[#allocation91_spill] sm:$0xff] %v6674_v58  ;;  %v1800_v25 = vsel %vm853_vm0, %v1545_v16, 0.0  ;;  %v1546_v54 = vmul.f32 %v6674_v58, %v6674_v58 }
 0x171   :  { %4818 = vmatmul.mubr.f32.gmra.mxu1 %v5079_v51  ;;  %v6682_v61 = vpop.f32.mrf.mxu0  ;;  %v1801_v31 = vadd.f32 %v1800_v25, %v1544_v63  ;;  %v5081_v51 = vld [vmem:[%s9384_s2 + $0x288] sm:$0xff] }
 0x172   :  { %9666 = vst [vmem:[#allocation92_spill] sm:$0xff] %v6682_v61  ;;  %4820 = vmatprep.mubr.f32.mxu1 %v5080_v5  ;;  %v1547_v13 = vmul.f32 %v6682_v61, %v6682_v61  ;;  %v5082_v5 = vld [vmem:[%s9384_s2 + $0x290] sm:$0xff] }
 0x173   :  { %v6689_v16 = vpop.f32.mrf.mxu0  ;;  %1802 = vadd.xlane.f32.xlu0 %v1801_v31 }
 0x174   :  { %9667 = vst [vmem:[#allocation93_spill] sm:$0xff] %v6689_v16  ;;  %v1804_v17 = vsel %vm853_vm0, %v1547_v13, 0.0  ;;  %v1548_v63 = vmul.f32 %v6689_v16, %v6689_v16 }
 0x175   :  { %4821 = vmatmul.mubr.f32.gmra.mxu1 %v5081_v51  ;;  %v6697_v25 = vpop.f32.mrf.mxu0  ;;  %v1805_v53 = vadd.f32 %v1804_v17, %v1546_v54  ;;  %v5083_v51 = vld [vmem:[%s9384_s2 + $0x298] sm:$0xff] }
 0x176   :  { %9668 = vst [vmem:[#allocation94_spill] sm:$0xff] %v6697_v25  ;;  %4823 = vmatprep.mubr.f32.mxu1 %v5082_v5  ;;  %v1549_v31 = vmul.f32 %v6697_v25, %v6697_v25  ;;  %v5084_v5 = vld [vmem:[%s9384_s2 + $0x2a0] sm:$0xff] }
 0x177   :  { %v6704_v13 = vpop.f32.mrf.mxu0  ;;  %1806 = vadd.xlane.f32.xlu1 %v1805_v53 }
 0x178   :  { %9669 = vst [vmem:[#allocation95_spill] sm:$0xff] %v6704_v13  ;;  %v1808_v39 = vsel %vm853_vm0, %v1549_v31, 0.0  ;;  %v1550_v17 = vmul.f32 %v6704_v13, %v6704_v13 }
 0x179   :  { %4824 = vmatmul.mubr.f32.gmra.mxu1 %v5083_v51  ;;  %v6712_v54 = vpop.f32.mrf.mxu0  ;;  %v1809_v16 = vadd.f32 %v1808_v39, %v1548_v63  ;;  %v5085_v51 = vld [vmem:[%s9384_s2 + $0x2a8] sm:$0xff] }
 0x17a   :  { %9670 = vst [vmem:[#allocation96_spill] sm:$0xff] %v6712_v54  ;;  %4826 = vmatprep.mubr.f32.mxu1 %v5084_v5  ;;  %v1551_v53 = vmul.f32 %v6712_v54, %v6712_v54  ;;  %v5086_v5 = vld [vmem:[%s9384_s2 + $0x2b0] sm:$0xff] }
 0x17b   :  { %v6719_v31 = vpop.f32.mrf.mxu0  ;;  %1810 = vadd.xlane.f32.xlu0 %v1809_v16 }
 0x17c   :  { %9671 = vst [vmem:[#allocation97_spill] sm:$0xff] %v6719_v31  ;;  %v1812_v25 = vsel %vm853_vm0, %v1551_v53, 0.0  ;;  %v1552_v39 = vmul.f32 %v6719_v31, %v6719_v31  ;;  %v5087_v31 = vld [vmem:[%s9384_s2 + $0x2b8] sm:$0xff] }
 0x17d   :  { %4827 = vmatmul.mubr.f32.gmra.mxu1 %v5085_v51  ;;  %v6727_v63 = vpop.f32.mrf.mxu0  ;;  %v1813_v19 = vadd.f32 %v1812_v25, %v1550_v17  ;;  %v6737_v51 = vpop.xlane.xlu0 %1674 }
 0x17e   :  { %9672 = vst [vmem:[#allocation98_spill] sm:$0xff] %v6727_v63  ;;  %4829 = vmatprep.mubr.f32.mxu1 %v5086_v5  ;;  %v1553_v16 = vmul.f32 %v6727_v63, %v6727_v63  ;;  %v5088_v63 = vld [vmem:[%s9384_s2 + $0x2c0] sm:$0xff] }
 0x17f   :  { %v6734_v53 = vpop.f32.mrf.mxu0  ;;  %1814 = vadd.xlane.f32.xlu1 %v1813_v19 }
 0x180   :  { %9673 = vst [vmem:[#allocation99_spill] sm:$0xff] %v6734_v53  ;;  %v1816_v29 = vsel %vm853_vm0, %v1553_v16, 0.0  ;;  %v1554_v25 = vmul.f32 %v6734_v53, %v6734_v53 }
 0x181   :  { %4830 = vmatmul.mubr.f32.gmra.mxu1 %v5087_v31  ;;  %v6744_v17 = vpop.f32.mrf.mxu0  ;;  %v1817_v5 = vadd.f32 %v1816_v29, %v1552_v39  ;;  %v5089_v31 = vld [vmem:[%s9384_s2 + $0x2c8] sm:$0xff] }
 0x182   :  { %9674 = vst [vmem:[#allocation100_spill] sm:$0xff] %v6744_v17  ;;  %4832 = vmatprep.mubr.f32.mxu1 %v5088_v63  ;;  %v1555_v19 = vmul.f32 %v6744_v17, %v6744_v17  ;;  %v1679_v63 = vpop.xlane.xlu1 %1678  ;;  %v5090_v17 = vld [vmem:[%s9384_s2 + $0x2d0] sm:$0xff] }
 0x183   :  { %v6751_v16 = vpop.f32.mrf.mxu0  ;;  %1818 = vadd.xlane.f32.xlu0 %v1817_v5 }
 0x184   :  { %9675 = vst [vmem:[#allocation101_spill] sm:$0xff] %v6751_v16  ;;  %v1820_v54 = vsel %vm853_vm0, %v1555_v19, 0.0  ;;  %v1556_v29 = vmul.f32 %v6751_v16, %v6751_v16 }
 0x185   :  { %4833 = vmatmul.mubr.f32.gmra.mxu1 %v5089_v31  ;;  %v6759_v39 = vpop.f32.mrf.mxu0  ;;  %v1821_v53 = vadd.f32 %v1820_v54, %v1554_v25  ;;  %v5091_v54 = vld [vmem:[%s9384_s2 + $0x2d8] sm:$0xff] }
 0x186   :  { %9676 = vst [vmem:[#allocation102_spill] sm:$0xff] %v6759_v39  ;;  %4835 = vmatprep.mubr.f32.mxu1 %v5090_v17  ;;  %v1557_v5 = vmul.f32 %v6759_v39, %v6759_v39  ;;  %v6766_v19 = vpop.xlane.xlu0 %1962  ;;  %v5092_v39 = vld [vmem:[%s9384_s2 + $0x2e0] sm:$0xff] }
 0x187   :  { %9677 = vst [vmem:[#allocation103_spill] sm:$0xff] %v6766_v19  ;;  %v6768_v13 = vpop.f32.mrf.mxu0  ;;  %1822 = vadd.xlane.f32.xlu1 %v1821_v53 }
 0x188   :  { %9678 = vst [vmem:[#allocation104_spill] sm:$0xff] %v6768_v13  ;;  %v1824_v31 = vsel %vm853_vm0, %v1557_v5, 0.0  ;;  %v1558_v25 = vmul.f32 %v6768_v13, %v6768_v13 }
 0x189   :  { %4836 = vmatmul.mubr.f32.gmra.mxu1 %v5091_v54  ;;  %v6776_v16 = vpop.f32.mrf.mxu0  ;;  %v1825_v17 = vadd.f32 %v1824_v31, %v1556_v29  ;;  %v5093_v29 = vld [vmem:[%s9384_s2 + $0x2e8] sm:$0xff] }
 0x18a   :  { %9679 = vst [vmem:[#allocation105_spill] sm:$0xff] %v6776_v16  ;;  %4838 = vmatprep.mubr.f32.mxu1 %v5092_v39  ;;  %v1559_v53 = vmul.f32 %v6776_v16, %v6776_v16  ;;  %v1683_v5 = vpop.xlane.xlu0 %1682  ;;  %v5094_v16 = vld [vmem:[%s9384_s2 + $0x2f0] sm:$0xff] }
 0x18b   :  { %v6783_v61 = vpop.f32.mrf.mxu0  ;;  %1826 = vadd.xlane.f32.xlu0 %v1825_v17  ;;  %v6785_v58 = vpop.xlane.xlu1 %1966 }
 0x18c   :  { %9680 = vst [vmem:[#allocation106_spill] sm:$0xff] %v6783_v61  ;;  %9681 = vst [vmem:[#allocation107_spill] sm:$0xff] %v6785_v58  ;;  %v1828_v54 = vsel %vm853_vm0, %v1559_v53, 0.0  ;;  %v1560_v31 = vmul.f32 %v6783_v61, %v6783_v61 }
 0x18d   :  { %4839 = vmatmul.mubr.f32.gmra.mxu1 %v5093_v29  ;;  %v6793_v39 = vpop.f32.mrf.mxu0  ;;  %v1829_v13 = vadd.f32 %v1828_v54, %v1558_v25  ;;  %v5095_v25 = vld [vmem:[%s9384_s2 + $0x2f8] sm:$0xff] }
 0x18e   :  { %9682 = vst [vmem:[#allocation108_spill] sm:$0xff] %v6793_v39  ;;  %4841 = vmatprep.mubr.f32.mxu1 %v5094_v16  ;;  %v1561_v17 = vmul.f32 %v6793_v39, %v6793_v39  ;;  %v6800_v53 = vpop.xlane.xlu0 %1970 }
 0x18f   :  { %9683 = vst [vmem:[#allocation109_spill] sm:$0xff] %v6800_v53  ;;  %v6802_v21 = vpop.f32.mrf.mxu0  ;;  %1830 = vadd.xlane.f32.xlu1 %v1829_v13  ;;  %v6804_v29 = vpop.xlane.xlu1 %1686 }
 0x190   :  { %9684 = vst [vmem:[#allocation110_spill] sm:$0xff] %v6802_v21  ;;  %v1832_v61 = vsel %vm853_vm0, %v1561_v17, 0.0  ;;  %v1562_v16 = vmul.f32 %v6802_v21, %v6802_v21  ;;  %v2057_v21 = vmul.f32 0.0051020407, %v1679_v63 }
 0x191   :  { %4842 = vmatmul.mubr.f32.gmra.mxu1 %v5095_v25  ;;  %v6812_v54 = vpop.f32.mrf.mxu0  ;;  %v1833_v39 = vadd.f32 %v1832_v61, %v1560_v31 }
 0x192   :  { %9685 = vst [vmem:[#allocation111_spill] sm:$0xff] %v6812_v54  ;;  %v1563_v12 = vmul.f32 %v6812_v54, %v6812_v54  ;;  %v6816_v41 = vpop.xlane.xlu0 %1690 }
 0x193   :  { %1834 = vadd.xlane.f32.xlu0 %v1833_v39  ;;  %v6818_v13 = vpop.xlane.xlu1 %1974  ;;  %v2056_v39 = vmul.f32 0.0051020407, %v6737_v51 }
 0x194   :  { %9686 = vst [vmem:[#allocation112_spill] sm:$0xff] %v6818_v13  ;;  %v1836_v17 = vsel %vm853_vm0, %v1563_v12, 0.0 }
 0x195   :  { %v6821_v59 = vpop.f32.mrf.mxu1  ;;  %v1837_v26 = vadd.f32 %v1836_v17, %v1562_v16 }
 0x196   :  { %v2153_v25 = vmul.f32 %v6821_v59, %v6821_v59  ;;  %v6825_v11 = vpop.xlane.xlu0 %1978 }
 0x197   :  { %9687 = vst [vmem:[#allocation113_spill] sm:$0xff] %v6825_v11  ;;  %v1001_v61 = vpop.f32.mrf.mxu1  ;;  %1838 = vadd.xlane.f32.xlu1 %v1837_v26  ;;  %v6827_v31 = vpop.xlane.xlu1 %1694  ;;  %v2058_v11 = vmul.f32 0.0051020407, %v1683_v5 }
 0x198   :  { %v2249_v54 = vsub.f32 %v2057_v21, %v2153_v25  ;;  %v2152_v4 = vmul.f32 %v1001_v61, %v1001_v61 }
 0x199   :  { %v6830_v10 = vpop.f32.mrf.mxu1 }
 0x19a   :  { %v2441_v12 = vadd.f32 0.001, %v2249_v54  ;;  %v2248_v32 = vsub.f32 %v2056_v39, %v2152_v4  ;;  %v6832_v9 = vpop.xlane.xlu0 %1698 }
 0x19b   :  { %v6834_v16 = vpop.f32.mrf.mxu1  ;;  %v6836_v17 = vpop.xlane.xlu1 %1982 }
 0x19c   :  { %9688 = vst [vmem:[#allocation114_spill] sm:$0xff] %v6836_v17  ;;  %4880 = vrsqrt.f32 %v2441_v12  ;;  %v2440_v63 = vadd.f32 0.001, %v2248_v32  ;;  %v2154_v26 = vmul.f32 %v6834_v16, %v6834_v16  ;;  %v2345_v32 = vld [vmem:[%s9385_s3 + $0x8] sm:$0xff] }
 0x19e   :  { %4882 = vrsqrt.f32 %v2440_v63  ;;  %v2250_v21 = vsub.f32 %v2058_v11, %v2154_v26  ;;  %v6842_v53 = vpop.xlane.xlu0 %1986  ;;  %v2344_v11 = vld [vmem:[%s9385_s3] sm:$0xff] }
 0x19f   :  { %v6840_v25 = vpop.xlane.xlu1 %1702  ;;  %9689 = vst [vmem:[#allocation115_spill] sm:$0xff] %v6842_v53  ;;  %v2728_v53 = vld [vmem:[%s9386_s4] sm:$0xff] }
 0x1a0   :  { %v2442_v51 = vadd.f32 0.001, %v2250_v21 }
 0x1a2   :  { %4884 = vrsqrt.f32 %v2442_v51  ;;  %v6846_v54 = vpop.xlane.xlu0 %1706 }
 0x1a3   :  { %v6844_v4 = vpop.xlane.xlu1 %1990 }
 0x1a4   :  { %9690 = vst [vmem:[#allocation116_spill] sm:$0xff] %v6844_v4 }
 0x1a6   :  { %v6858_v51 = vpop.xlane.xlu0 %1994 }
 0x1a7   :  { %v6851_v39 = vpop.xlane.xlu1 %1710  ;;  %9692 = vst [vmem:[#allocation118_spill] sm:$0xff] %v6858_v51 }
 0x1a9   :  { %v4881_v12 = vpop.eup %4880 }
 0x1aa   :  { %v2633_v5 = vmul.f32 %v4881_v12, %v2345_v32  ;;  %v2346_v32 = vld [vmem:[%s9385_s3 + $0x10] sm:$0xff]  ;;  %v6868_v12 = vpop.xlane.xlu0 %1714 }
 0x1ab   :  { %v4883_v63 = vpop.eup %4882  ;;  %v6856_v26 = vpop.xlane.xlu1 %1998 }
 0x1ac   :  { %9691 = vst [vmem:[#allocation117_spill] sm:$0xff] %v6856_v26  ;;  %3023 = vperm.xlu1 %4879, %v2633_v5   ;;  %v2632_v21 = vmul.f32 %v4883_v63, %v2344_v11  ;;  %v6874_v26 = vpop.f32.mrf.mxu0 }
 0x1ad   :  { %9695 = vst [vmem:[#allocation121_spill] sm:$0xff] %v6874_v26 }
 0x1ae   :  { %3018 = vperm.xlu0 %4878, %v2632_v21   ;;  %v2824_v4 = vmul.f32 %v2632_v21, %v1001_v61  ;;  %v6872_v51 = vpop.xlane.xlu0 %2002 }
 0x1af   :  { %v6863_v19 = vpop.xlane.xlu1 %1718  ;;  %v4885_v24 = vpop.eup %4884  ;;  %9694 = vst [vmem:[#allocation120_spill] sm:$0xff] %v6872_v51 }
 0x1b0   :  { %v2920_v17 = vsub.f32 %v2728_v53, %v2824_v4  ;;  %v2634_v11 = vmul.f32 %v4885_v24, %v2346_v32  ;;  %v6880_v53 = vpop.f32.mrf.mxu0  ;;  %v1564_v24 = vmul.f32 %v6874_v26, %v6874_v26  ;;  %v2059_v26 = vmul.f32 0.0051020407, %v6804_v29 }
 0x1b1   :  { %9696 = vst [vmem:[#allocation122_spill] sm:$0xff] %v6880_v53 }
 0x1b2   :  { %3690 = vperm.xlu1 %4879, %v2920_v17   ;;  %v6878_v21 = vpop.xlane.xlu0 %1722  ;;  %v1565_v17 = vmul.f32 %v6880_v53, %v6880_v53  ;;  %v6893_v13 = vpop.f32.mrf.mxu0 }
 0x1b3   :  { %v6870_v63 = vpop.xlane.xlu1 %2006  ;;  %9699 = vst [vmem:[#allocation125_spill] sm:$0xff] %v6893_v13  ;;  %v6901_v53 = vpop.f32.mrf.mxu1 }
 0x1b4   :  { %9693 = vst [vmem:[#allocation119_spill] sm:$0xff] %v6870_v63  ;;  %v1840_v32 = vsel %vm853_vm0, %v1565_v17, 0.0 }
 0x1b5   :  { %v1841_v63 = vadd.f32 %v1840_v32, %v1564_v24  ;;  %v6910_v32 = vpop.f32.mrf.mxu1 }
 0x1b6   :  { %3028 = vperm.xlu1 %4879, %v2634_v11   ;;  %v6886_v42 = vpop.xlane.xlu0 %2010 }
 0x1b7   :  { %v6876_v61 = vpop.xlane.xlu1 %1726  ;;  %9698 = vst [vmem:[#allocation124_spill] sm:$0xff] %v6886_v42  ;;  %v6903_v42 = vpop.f32.mrf.mxu0 }
 0x1b8   :  { %9701 = vst [vmem:[#allocation127_spill] sm:$0xff] %v6903_v42  ;;  %v1567_v24 = vmul.f32 %v6903_v42, %v6903_v42  ;;  %v6983_v27 = vpop.f32.mrf.mxu1 }
 0x1ba   :  { %v6895_v58 = vpop.xlane.xlu0 %1730  ;;  %v1844_v49 = vsel %vm853_vm0, %v1567_v24, 0.0 }
 0x1bb   :  { %v6882_v4 = vpop.xlane.xlu1 %2014 }
 0x1bc   :  { %9697 = vst [vmem:[#allocation123_spill] sm:$0xff] %v6882_v4  ;;  %v2155_v4 = vmul.f32 %v6830_v10, %v6830_v10 }
 0x1be   :  { %v6906_v17 = vpop.xlane.xlu0 %2018  ;;  %v2251_v34 = vsub.f32 %v2059_v26, %v2155_v4  ;;  %v2060_v26 = vmul.f32 0.0051020407, %v6816_v41 }
 0x1bf   :  { %v6891_v51 = vpop.xlane.xlu1 %1734  ;;  %9702 = vst [vmem:[#allocation128_spill] sm:$0xff] %v6906_v17 }
 0x1c0   :  { %v2443_v14 = vadd.f32 0.001, %v2251_v34  ;;  %v2729_v34 = vld [vmem:[%s9386_s4 + $0x8] sm:$0xff] }
 0x1c2   :  { %v6919_v29 = vpop.xlane.xlu0 %1738  ;;  %4886 = vrsqrt.f32 %v2443_v14 }
 0x1c3   :  { %v6899_v57 = vpop.xlane.xlu1 %2022 }
 0x1c4   :  { %9700 = vst [vmem:[#allocation126_spill] sm:$0xff] %v6899_v57  ;;  %v2156_v57 = vmul.f32 %v6910_v32, %v6910_v32 }
 0x1c6   :  { %v2252_v42 = vsub.f32 %v2060_v26, %v2156_v57  ;;  %v6924_v22 = vpop.xlane.xlu0 %2026  ;;  %v2347_v57 = vld [vmem:[%s9385_s3 + $0x18] sm:$0xff]  ;;  %v2348_v26 = vld [vmem:[%s9385_s3 + $0x20] sm:$0xff] }
 0x1c7   :  { %v6912_v33 = vpop.xlane.xlu1 %1742  ;;  %9704 = vst [vmem:[#allocation130_spill] sm:$0xff] %v6924_v22 }
 0x1c8   :  { %v2444_v8 = vadd.f32 0.001, %v2252_v42 }
 0x1ca   :  { %4888 = vrsqrt.f32 %v2444_v8  ;;  %v6932_v41 = vpop.xlane.xlu0 %1746  ;;  %v2730_v8 = vld [vmem:[%s9386_s4 + $0x10] sm:$0xff] }
 0x1cb   :  { %v6922_v17 = vpop.xlane.xlu1 %2030 }
 0x1cc   :  { %9703 = vst [vmem:[#allocation129_spill] sm:$0xff] %v6922_v17 }
 0x1cd   :  { %1842 = vadd.xlane.f32.xlu0 %v1841_v63  ;;  %v1566_v63 = vmul.f32 %v6893_v13, %v6893_v13  ;;  %v2825_v13 = vmul.f32 %v6821_v59, %v2633_v5  ;;  %v2826_v5 = vmul.f32 %v2634_v11, %v6834_v16 }
 0x1ce   :  { %v6939_v42 = vpop.xlane.xlu0 %2034 }
 0x1cf   :  { %v1845_v4 = vadd.f32 %v1844_v49, %v1566_v63  ;;  %v6930_v24 = vpop.xlane.xlu1 %1750  ;;  %v2921_v30 = vsub.f32 %v2729_v34, %v2825_v13  ;;  %v4887_v49 = vpop.eup %4886  ;;  %9706 = vst [vmem:[#allocation132_spill] sm:$0xff] %v6939_v42 }
 0x1d0   :  { %v2635_v59 = vmul.f32 %v4887_v49, %v2347_v57  ;;  %v6952_v34 = vpop.f32.mrf.mxu0 }
 0x1d1   :  { %9707 = vst [vmem:[#allocation133_spill] sm:$0xff] %v6952_v34 }
 0x1d2   :  { %v6958_v57 = vpop.f32.mrf.mxu0 }
 0x1d3   :  { %v6934_v14 = vpop.xlane.xlu1 %2038  ;;  %9710 = vst [vmem:[#allocation136_spill] sm:$0xff] %v6958_v57 }
 0x1d4   :  { %9705 = vst [vmem:[#allocation131_spill] sm:$0xff] %v6934_v14 }
 0x1d7   :  { %v6945_v13 = vpop.xlane.xlu1 %1758  ;;  %v4889_v63 = vpop.eup %4888 }
 0x1d8   :  { %v2636_v49 = vmul.f32 %v4889_v63, %v2348_v26 }
 0x1da   :  { %1846 = vadd.xlane.f32.xlu1 %v1845_v4  ;;  %v6950_v4 = vpop.xlane.xlu0 %1754 }
 0x1db   :  { %v6954_v16 = vpop.xlane.xlu1 %2046 }
 0x1dc   :  { %9708 = vst [vmem:[#allocation134_spill] sm:$0xff] %v6954_v16 }
 0x1de   :  { %v6956_v11 = vpop.xlane.xlu0 %2042 }
 0x1df   :  { %9709 = vst [vmem:[#allocation135_spill] sm:$0xff] %v6956_v11  ;;  %v6960_v42 = vpop.xlane.xlu1 %1766 }
 0x1e0   :  { %9711 = vst [vmem:[#allocation137_spill] sm:$0xff] %v6960_v42 }
 0x1e2   :  { %v6966_v22 = vpop.xlane.xlu0 %1762 }
 0x1e3   :  { %3695 = vperm.xlu0 %4878, %v2921_v30   ;;  %v2922_v30 = vsub.f32 %v2730_v8, %v2826_v5  ;;  %v1569_v5 = vmul.f32 %v6958_v57, %v6958_v57  ;;  %v1568_v8 = vmul.f32 %v6952_v34, %v6952_v34  ;;  %v6969_v63 = vpop.xlane.xlu1 %2054  ;;  %v6979_v57 = vpop.f32.mrf.mxu0  ;;  %v2157_v34 = vmul.f32 %v6901_v53, %v6901_v53 }
 0x1e4   :  { %9712 = vst [vmem:[#allocation138_spill] sm:$0xff] %v6969_v63  ;;  %9717 = vst [vmem:[#allocation143_spill] sm:$0xff] %v6979_v57  ;;  %v1570_v6 = vmul.f32 %v6979_v57, %v6979_v57 }
 0x1e6   :  { %v6971_v16 = vpop.xlane.xlu0 %2050 }
 0x1e7   :  { %9713 = vst [vmem:[#allocation139_spill] sm:$0xff] %v6971_v16  ;;  %v6973_v11 = vpop.xlane.xlu1 %1774 }
 0x1e8   :  { %9714 = vst [vmem:[#allocation140_spill] sm:$0xff] %v6973_v11  ;;  %v6996_v11 = vpop.f32.mrf.mxu1 }
 0x1ea   :  { %v6975_v14 = vpop.xlane.xlu0 %1770 }
 0x1eb   :  { %3033 = vperm.xlu1 %4879, %v2635_v59   ;;  %9715 = vst [vmem:[#allocation141_spill] sm:$0xff] %v6975_v14  ;;  %v6977_v17 = vpop.xlane.xlu1 %1782 }
 0x1ec   :  { %9716 = vst [vmem:[#allocation142_spill] sm:$0xff] %v6977_v17 }
 0x1ef   :  { %3700 = vperm.xlu1 %4879, %v2922_v30   ;;  %v1848_v30 = vsel %vm853_vm0, %v1569_v5, 0.0  ;;  %v6985_v5 = vpop.xlane.xlu0 %1778 }
 0x1f0   :  { %v1849_v26 = vadd.f32 %v1848_v30, %v1568_v8  ;;  %9718 = vst [vmem:[#allocation144_spill] sm:$0xff] %v6985_v5  ;;  %v6987_v63 = vpop.xlane.xlu1 %1790  ;;  %v6989_v8 = vpop.f32.mrf.mxu0  ;;  %v2061_v30 = vmul.f32 0.0051020407, %v6827_v31 }
 0x1f1   :  { %9719 = vst [vmem:[#allocation145_spill] sm:$0xff] %v6987_v63  ;;  %9720 = vst [vmem:[#allocation146_spill] sm:$0xff] %v6989_v8  ;;  %v1571_v17 = vmul.f32 %v6989_v8, %v6989_v8  ;;  %v2158_v63 = vmul.f32 %v6996_v11, %v6996_v11  ;;  %v2731_v8 = vld [vmem:[%s9386_s4 + $0x18] sm:$0xff] }
 0x1f3   :  { %3038 = vperm.xlu1 %4879, %v2636_v49   ;;  %v6992_v16 = vpop.xlane.xlu0 %1786  ;;  %v1852_v31 = vsel %vm853_vm0, %v1571_v17, 0.0 }
 0x1f4   :  { %9721 = vst [vmem:[#allocation147_spill] sm:$0xff] %v6992_v16  ;;  %v1853_v16 = vadd.f32 %v1852_v31, %v1570_v6  ;;  %v2732_v31 = vld [vmem:[%s9386_s4 + $0x20] sm:$0xff] }
 0x1f7   :  { %v7004_v14 = vpop.xlane.xlu0 %1794 }
 0x1f8   :  { %v6998_v15 = vpop.xlane.xlu1 %1798  ;;  %9723 = vst [vmem:[#allocation149_spill] sm:$0xff] %v7004_v14 }
 0x1f9   :  { %9722 = vst [vmem:[#allocation148_spill] sm:$0xff] %v6998_v15  ;;  %v2062_v15 = vmul.f32 0.0051020407, %v6832_v9 }
 0x1fb   :  { %v2254_v57 = vsub.f32 %v2062_v15, %v2158_v63  ;;  %v7033_v63 = vpop.f32.mrf.mxu0 }
 0x1fc   :  { %v7014_v42 = vpop.xlane.xlu0 %1802  ;;  %9730 = vst [vmem:[#allocation156_spill] sm:$0xff] %v7033_v63 }
 0x1fd   :  { %v2446_v17 = vadd.f32 0.001, %v2254_v57  ;;  %v2828_v57 = vmul.f32 %v2636_v49, %v6910_v32 }
 0x202   :  { %1850 = vadd.xlane.f32.xlu0 %v1849_v26  ;;  %v2253_v26 = vsub.f32 %v2061_v30, %v2157_v34  ;;  %v2827_v34 = vmul.f32 %v6830_v10, %v2635_v59  ;;  %v7008_v30 = vpop.xlane.xlu1 %1806 }
 0x203   :  { %9724 = vst [vmem:[#allocation150_spill] sm:$0xff] %v7008_v30 }
 0x204   :  { %v2445_v5 = vadd.f32 0.001, %v2253_v26  ;;  %v2923_v26 = vsub.f32 %v2731_v8, %v2827_v34  ;;  %v7018_v10 = vpop.xlane.xlu0 %1810 }
 0x206   :  { %4890 = vrsqrt.f32 %v2445_v5 }
 0x207   :  { %4892 = vrsqrt.f32 %v2446_v17 }
 0x208   :  { %v7016_v1 = vpop.xlane.xlu1 %1814 }
 0x20c   :  { %v7022_v30 = vpop.xlane.xlu0 %1818 }
 0x20d   :  { %9726 = vst [vmem:[#allocation152_spill] sm:$0xff] %v7022_v30 }
 0x210   :  { %v7020_v59 = vpop.xlane.xlu1 %1822 }
 0x211   :  { %9725 = vst [vmem:[#allocation151_spill] sm:$0xff] %v7020_v59 }
 0x213   :  { %v4891_v15 = vpop.eup %4890 }
 0x214   :  { %v7026_v6 = vpop.xlane.xlu0 %1826 }
 0x215   :  { %9728 = vst [vmem:[#allocation154_spill] sm:$0xff] %v7026_v6  ;;  %v4893_v6 = vpop.eup %4892 }
 0x217   :  { %1854 = vadd.xlane.f32.xlu1 %v1853_v16  ;;  %v2349_v16 = vld [vmem:[%s9385_s3 + $0x28] sm:$0xff] }
 0x218   :  { %3705 = vperm.xlu0 %4878, %v2923_v26   ;;  %v7024_v14 = vpop.xlane.xlu1 %1830  ;;  %v2637_v8 = vmul.f32 %v4891_v15, %v2349_v16  ;;  %v7041_v26 = vpop.f32.mrf.mxu0 }
 0x219   :  { %9727 = vst [vmem:[#allocation153_spill] sm:$0xff] %v7024_v14  ;;  %9732 = vst [vmem:[#allocation158_spill] sm:$0xff] %v7041_v26  ;;  %v2350_v14 = vld [vmem:[%s9385_s3 + $0x30] sm:$0xff]  ;;  %v1573_v32 = vmul.f32 %v7041_v26, %v7041_v26 }
 0x21c   :  { %v7036_v5 = vpop.xlane.xlu0 %1834 }
 0x21d   :  { %9731 = vst [vmem:[#allocation157_spill] sm:$0xff] %v7036_v5  ;;  %v2638_v5 = vmul.f32 %v4893_v6, %v2350_v14  ;;  %v2159_v14 = vmul.f32 %v6983_v27, %v6983_v27  ;;  %v2829_v6 = vmul.f32 %v6901_v53, %v2637_v8 }
 0x220   :  { %v7028_v9 = vpop.xlane.xlu1 %1838 }
 0x221   :  { %9729 = vst [vmem:[#allocation155_spill] sm:$0xff] %v7028_v9  ;;  %v2924_v9 = vsub.f32 %v2732_v31, %v2828_v57  ;;  %v1572_v57 = vmul.f32 %v7033_v63, %v7033_v63  ;;  %v1856_v31 = vsel %vm853_vm0, %v1573_v32, 0.0  ;;  %v2063_v32 = vmul.f32 0.0051020407, %v6840_v25 }
 0x227   :  { %v3024_v34 = vpop.permute.xlu1 %3023 }
 0x228   :  { %3043 = vperm.xlu1 %4879, %v2637_v8   ;;  %v3499_v26 = vmul.f32 %v3024_v34, %v5945_v37 }
 0x229   :  { %v3019_v17 = vpop.permute.xlu0 %3018 }
 0x22a   :  { %v3496_v49 = vmul.f32 %v3019_v17, %v5920_v35  ;;  %v3497_v15 = vmul.f32 %v3019_v17, %v5927_v60  ;;  %v1857_v35 = vadd.f32 %v1856_v31, %v1572_v57  ;;  %v7060_v60 = vpop.f32.mrf.mxu0 }
 0x22b   :  { %9733 = vst [vmem:[#allocation159_spill] sm:$0xff] %v7060_v60  ;;  %v1574_v53 = vmul.f32 %v7060_v60, %v7060_v60 }
 0x22c   :  { %3710 = vperm.xlu1 %4879, %v2924_v9   ;;  %v7065_v9 = vpop.f32.mrf.mxu1  ;;  %v7070_v17 = vpop.f32.mrf.mxu0 }
 0x22d   :  { %v3691_v16 = vpop.permute.xlu1 %3690  ;;  %9734 = vst [vmem:[#allocation160_spill] sm:$0xff] %v7070_v17 }
 0x22e   :  { %v4168_v30 = vadd.f32 %v3691_v16, %v3496_v49  ;;  %v4169_v59 = vadd.f32 %v3691_v16, %v3497_v15  ;;  %v1575_v15 = vmul.f32 %v7070_v17, %v7070_v17  ;;  %v7075_v16 = vpop.f32.mrf.mxu1 }
 0x22f   :  { %v2160_v8 = vmul.f32 %v7075_v16, %v7075_v16 }
 0x230   :  { %3048 = vperm.xlu1 %4879, %v2638_v5   ;;  %4360 = vst [vmem:[%s9387_s5] sm:$0xff] %v4168_v30  ;;  %4361 = vst.msk [vmem:[%s9387_s5 + $0x8] sm:$0xff] %vm853_vm0, %v4169_v59  ;;  %v2733_v30 = vld [vmem:[%s9386_s4 + $0x28] sm:$0xff]  ;;  %v2255_v59 = vsub.f32 %v2063_v32, %v2159_v14  ;;  %v1860_v31 = vsel %vm853_vm0, %v1575_v15, 0.0  ;;  %v7085_v32 = vpop.f32.mrf.mxu0 }
 0x231   :  { %v2925_v49 = vsub.f32 %v2733_v30, %v2829_v6  ;;  %v1861_v25 = vadd.f32 %v1860_v31, %v1574_v53  ;;  %9735 = vst [vmem:[#allocation161_spill] sm:$0xff] %v7085_v32  ;;  %v3029_v15 = vpop.permute.xlu1 %3028 }
 0x232   :  { %v2447_v57 = vadd.f32 0.001, %v2255_v59  ;;  %v7089_v59 = vpop.f32.mrf.mxu0 }
 0x233   :  { %9736 = vst [vmem:[#allocation162_spill] sm:$0xff] %v7089_v59 }
 0x234   :  { %4894 = vrsqrt.f32 %v2447_v57 }
 0x237   :  { %1858 = vadd.xlane.f32.xlu0 %v1857_v35  ;;  %v2064_v35 = vmul.f32 0.0051020407, %v6846_v54 }
 0x239   :  { %v2256_v14 = vsub.f32 %v2064_v35, %v2160_v8  ;;  %v2351_v8 = vld [vmem:[%s9385_s3 + $0x38] sm:$0xff] }
 0x23b   :  { %v2448_v6 = vadd.f32 0.001, %v2256_v14  ;;  %v2161_v14 = vmul.f32 %v7065_v9, %v7065_v9 }
 0x23d   :  { %4896 = vrsqrt.f32 %v2448_v6 }
 0x241   :  { %v4895_v53 = vpop.eup %4894 }
 0x24d   :  { %3715 = vperm.xlu0 %4878, %v2925_v49   ;;  %v3498_v49 = vmul.f32 %v3024_v34, %v5937_v28  ;;  %v1577_v28 = vmul.f32 %v7089_v59, %v7089_v59  ;;  %v2830_v34 = vmul.f32 %v2638_v5, %v6996_v11  ;;  %v2352_v11 = vld [vmem:[%s9385_s3 + $0x40] sm:$0xff]  ;;  %v2065_v5 = vmul.f32 0.0051020407, %v6851_v39 }
 0x24f   :  { %v1864_v57 = vsel %vm853_vm0, %v1577_v28, 0.0  ;;  %v2257_v28 = vsub.f32 %v2065_v5, %v2161_v14  ;;  %v2066_v5 = vmul.f32 0.0051020407, %v6868_v12 }
 0x251   :  { %v2449_v39 = vadd.f32 0.001, %v2257_v28 }
 0x253   :  { %4898 = vrsqrt.f32 %v2449_v39 }
 0x254   :  { %1862 = vadd.xlane.f32.xlu1 %v1861_v25  ;;  %v4897_v25 = vpop.eup %4896 }
 0x256   :  { %v7083_v30 = vpop.xlane.xlu0 %1842 }
 0x25e   :  { %v3696_v63 = vpop.permute.xlu0 %3695 }
 0x25f   :  { %v4170_v17 = vadd.f32 %v3696_v63, %v3498_v49  ;;  %v4171_v54 = vadd.f32 %v3696_v63, %v3499_v26  ;;  %v2639_v63 = vmul.f32 %v4895_v53, %v2351_v8  ;;  %v1576_v26 = vmul.f32 %v7085_v32, %v7085_v32  ;;  %v9802_v32 = vld [vmem:[#allocation52_spill] sm:$0xff] }
 0x260   :  { %v3500_v49 = vmul.f32 %v3029_v15, %v5955_v36  ;;  %v2640_v8 = vmul.f32 %v4897_v25, %v2352_v11  ;;  %v7136_v25 = vpop.f32.mrf.mxu0 }
 0x261   :  { %4362 = vst [vmem:[%s9387_s5 + $0x10] sm:$0xff] %v4170_v17  ;;  %4363 = vst.msk [vmem:[%s9387_s5 + $0x18] sm:$0xff] %vm853_vm0, %v4171_v54  ;;  %v2734_v17 = vld [vmem:[%s9386_s4 + $0x30] sm:$0xff]  ;;  %v1865_v6 = vadd.f32 %v1864_v57, %v1576_v26  ;;  %v3501_v54 = vmul.f32 %v3029_v15, %v5961_v38  ;;  %v2831_v36 = vmul.f32 %v6983_v27, %v2639_v63  ;;  %v2735_v38 = vld [vmem:[%s9386_s4 + $0x38] sm:$0xff]  ;;  %v4899_v26 = vpop.eup %4898  ;;  %v7131_v57 = vpop.f32.mrf.mxu1 }
 0x262   :  { %v2926_v35 = vsub.f32 %v2734_v17, %v2830_v34  ;;  %9737 = vst [vmem:[#allocation163_spill] sm:$0xff] %v7136_v25  ;;  %v7140_v11 = vpop.f32.mrf.mxu0 }
 0x263   :  { %v7103_v37 = vpop.xlane.xlu1 %1846  ;;  %v2927_v15 = vsub.f32 %v2735_v38, %v2831_v36  ;;  %9738 = vst [vmem:[#allocation164_spill] sm:$0xff] %v7140_v11 }
 0x265   :  { %3053 = vperm.xlu1 %4879, %v2639_v63   ;;  %v1579_v63 = vmul.f32 %v7140_v11, %v7140_v11 }
 0x267   :  { %v3034_v31 = vpop.permute.xlu1 %3033 }
 0x268   :  { %v3502_v39 = vmul.f32 %v3034_v31, %v5973_v56  ;;  %v3503_v36 = vmul.f32 %v3034_v31, %v5986_v7  ;;  %v2832_v31 = vmul.f32 %v2640_v8, %v7075_v16  ;;  %v2354_v16 = vld [vmem:[%s9385_s3 + $0x50] sm:$0xff] }
 0x269   :  { %3720 = vperm.xlu1 %4879, %v2926_v35   ;;  %v2353_v35 = vld [vmem:[%s9385_s3 + $0x48] sm:$0xff] }
 0x26a   :  { %v2641_v14 = vmul.f32 %v4899_v26, %v2353_v35 }
 0x26b   :  { %v3701_v53 = vpop.permute.xlu1 %3700 }
 0x26c   :  { %v4172_v34 = vadd.f32 %v3701_v53, %v3500_v49  ;;  %v4173_v17 = vadd.f32 %v3701_v53, %v3501_v54  ;;  %1866 = vadd.xlane.f32.xlu0 %v1865_v6  ;;  %v7138_v6 = vpop.f32.mrf.mxu1  ;;  %v1578_v49 = vmul.f32 %v7136_v25, %v7136_v25  ;;  %v1868_v53 = vsel %vm853_vm0, %v1579_v63, 0.0  ;;  %v2736_v63 = vld [vmem:[%s9386_s4 + $0x40] sm:$0xff] }
 0x26d   :  { %3058 = vperm.xlu1 %4879, %v2640_v8   ;;  %v2162_v27 = vmul.f32 %v7138_v6, %v7138_v6 }
 0x26e   :  { %4364 = vst [vmem:[%s9387_s5 + $0x20] sm:$0xff] %v4172_v34  ;;  %4365 = vst.msk [vmem:[%s9387_s5 + $0x28] sm:$0xff] %vm853_vm0, %v4173_v17  ;;  %v1869_v34 = vadd.f32 %v1868_v53, %v1578_v49 }
 0x26f   :  { %v2258_v54 = vsub.f32 %v2066_v5, %v2162_v27  ;;  %v3039_v7 = vpop.permute.xlu1 %3038 }
 0x271   :  { %v2450_v17 = vadd.f32 0.001, %v2258_v54  ;;  %v2928_v54 = vsub.f32 %v2736_v63, %v2832_v31 }
 0x273   :  { %4900 = vrsqrt.f32 %v2450_v17  ;;  %v2067_v17 = vmul.f32 0.0051020407, %v6863_v19  ;;  %v2833_v19 = vmul.f32 %v7065_v9, %v2641_v14 }
 0x280   :  { %v4901_v53 = vpop.eup %4900 }
 0x282   :  { %3725 = vperm.xlu0 %4878, %v2927_v15   ;;  %v7154_v15 = vpop.f32.mrf.mxu0 }
 0x283   :  { %9739 = vst [vmem:[#allocation165_spill] sm:$0xff] %v7154_v15  ;;  %v1580_v27 = vmul.f32 %v7154_v15, %v7154_v15 }
 0x284   :  { %v7163_v35 = vpop.f32.mrf.mxu0 }
 0x285   :  { %9740 = vst [vmem:[#allocation166_spill] sm:$0xff] %v7163_v35  ;;  %v1581_v56 = vmul.f32 %v7163_v35, %v7163_v35 }
 0x286   :  { %3063 = vperm.xlu0 %4878, %v2641_v14   ;;  %v2068_v14 = vmul.f32 0.0051020407, %v6878_v21 }
 0x287   :  { %v1872_v5 = vsel %vm853_vm0, %v1581_v56, 0.0 }
 0x28b   :  { %v7150_v28 = vpop.xlane.xlu0 %1850 }
 0x291   :  { %1870 = vadd.xlane.f32.xlu1 %v1869_v34  ;;  %v2163_v34 = vmul.f32 %v7131_v57, %v7131_v57 }
 0x293   :  { %v3706_v38 = vpop.permute.xlu0 %3705 }
 0x294   :  { %v4174_v12 = vadd.f32 %v3706_v38, %v3502_v39  ;;  %v4175_v26 = vadd.f32 %v3706_v38, %v3503_v36  ;;  %v1873_v39 = vadd.f32 %v1872_v5, %v1580_v27  ;;  %v2642_v36 = vmul.f32 %v4901_v53, %v2354_v16  ;;  %v7195_v27 = vpop.f32.mrf.mxu1  ;;  %v2355_v5 = vld [vmem:[%s9385_s3 + $0x58] sm:$0xff] }
 0x295   :  { %v2259_v38 = vsub.f32 %v2067_v17, %v2163_v34 }
 0x296   :  { %4366 = vst [vmem:[%s9387_s5 + $0x30] sm:$0xff] %v4174_v12  ;;  %4367 = vst.msk [vmem:[%s9387_s5 + $0x38] sm:$0xff] %vm853_vm0, %v4175_v26  ;;  %v3504_v12 = vmul.f32 %v3039_v7, %v6000_v20  ;;  %v3505_v26 = vmul.f32 %v3039_v7, %v6011_v50  ;;  %v2737_v20 = vld [vmem:[%s9386_s4 + $0x48] sm:$0xff] }
 0x297   :  { %v2451_v31 = vadd.f32 0.001, %v2259_v38  ;;  %v2929_v50 = vsub.f32 %v2737_v20, %v2833_v19 }
 0x299   :  { %4902 = vrsqrt.f32 %v2451_v31 }
 0x2a0   :  { %v7174_v49 = vpop.xlane.xlu1 %1854 }
 0x2a2   :  { %3730 = vperm.xlu1 %4879, %v2928_v54   ;;  %v7200_v54 = vpop.f32.mrf.mxu0 }
 0x2a3   :  { %9741 = vst [vmem:[#allocation167_spill] sm:$0xff] %v7200_v54  ;;  %v1582_v16 = vmul.f32 %v7200_v54, %v7200_v54 }
 0x2a4   :  { %v3044_v8 = vpop.permute.xlu1 %3043  ;;  %v7204_v34 = vpop.f32.mrf.mxu0 }
 0x2a5   :  { %1874 = vadd.xlane.f32.xlu0 %v1873_v39  ;;  %9742 = vst [vmem:[#allocation168_spill] sm:$0xff] %v7204_v34  ;;  %v1583_v17 = vmul.f32 %v7204_v34, %v7204_v34  ;;  %v9809_v34 = vld [vmem:[#allocation58_spill] sm:$0xff] }
 0x2a6   :  { %3068 = vperm.xlu1 %4879, %v2642_v36   ;;  %v4903_v7 = vpop.eup %4902 }
 0x2a7   :  { %v2643_v53 = vmul.f32 %v4903_v7, %v2355_v5  ;;  %v2738_v5 = vld [vmem:[%s9386_s4 + $0x50] sm:$0xff] }
 0x2a8   :  { %v3711_v56 = vpop.permute.xlu1 %3710 }
 0x2a9   :  { %v4176_v63 = vadd.f32 %v3711_v56, %v3504_v12  ;;  %v4177_v35 = vadd.f32 %v3711_v56, %v3505_v26  ;;  %v1876_v12 = vsel %vm853_vm0, %v1583_v17, 0.0  ;;  %v3506_v26 = vmul.f32 %v3044_v8, %v6026_v43 }
 0x2aa   :  { %v3507_v56 = vmul.f32 %v3044_v8, %v6040_v46  ;;  %v2834_v8 = vmul.f32 %v2642_v36, %v7138_v6  ;;  %v2356_v6 = vld [vmem:[%s9385_s3 + $0x60] sm:$0xff] }
 0x2ab   :  { %4368 = vst [vmem:[%s9387_s5 + $0x40] sm:$0xff] %v4176_v63  ;;  %4369 = vst.msk [vmem:[%s9387_s5 + $0x48] sm:$0xff] %vm853_vm0, %v4177_v35  ;;  %v7202_v35 = vpop.f32.mrf.mxu1  ;;  %v1877_v63 = vadd.f32 %v1876_v12, %v1582_v16  ;;  %v2069_v12 = vmul.f32 0.0051020407, %v6876_v61 }
 0x2ac   :  { %v2164_v9 = vmul.f32 %v7202_v35, %v7202_v35  ;;  %v2930_v17 = vsub.f32 %v2738_v5, %v2834_v8 }
 0x2ae   :  { %v2260_v38 = vsub.f32 %v2068_v14, %v2164_v9  ;;  %v3049_v14 = vpop.permute.xlu1 %3048 }
 0x2b0   :  { %v2452_v19 = vadd.f32 0.001, %v2260_v38  ;;  %v2165_v38 = vmul.f32 %v7195_v27, %v7195_v27 }
 0x2b2   :  { %4904 = vrsqrt.f32 %v2452_v19 }
 0x2bb   :  { %3735 = vperm.xlu0 %4878, %v2929_v50   ;;  %v7225_v50 = vpop.f32.mrf.mxu0 }
 0x2bc   :  { %9743 = vst [vmem:[#allocation169_spill] sm:$0xff] %v7225_v50  ;;  %v1584_v7 = vmul.f32 %v7225_v50, %v7225_v50 }
 0x2bd   :  { %v7227_v43 = vpop.f32.mrf.mxu0 }
 0x2be   :  { %9744 = vst [vmem:[#allocation170_spill] sm:$0xff] %v7227_v43  ;;  %v1585_v46 = vmul.f32 %v7227_v43, %v7227_v43 }
 0x2bf   :  { %3073 = vperm.xlu0 %4878, %v2643_v53   ;;  %v4905_v16 = vpop.eup %4904 }
 0x2c0   :  { %v7211_v39 = vpop.xlane.xlu0 %1858  ;;  %v1880_v9 = vsel %vm853_vm0, %v1585_v46, 0.0 }
 0x2c8   :  { %v3716_v31 = vpop.permute.xlu0 %3715 }
 0x2c9   :  { %v4178_v20 = vadd.f32 %v3716_v31, %v3506_v26  ;;  %v4179_v21 = vadd.f32 %v3716_v31, %v3507_v56  ;;  %v1881_v26 = vadd.f32 %v1880_v9, %v1584_v7  ;;  %v2644_v56 = vmul.f32 %v4905_v16, %v2356_v6  ;;  %v2357_v9 = vld [vmem:[%s9385_s3 + $0x68] sm:$0xff] }
 0x2ca   :  { %1878 = vadd.xlane.f32.xlu1 %v1877_v63  ;;  %v2261_v31 = vsub.f32 %v2069_v12, %v2165_v38  ;;  %v2835_v7 = vmul.f32 %v7131_v57, %v2643_v53 }
 0x2cb   :  { %4370 = vst [vmem:[%s9387_s5 + $0x50] sm:$0xff] %v4178_v20  ;;  %4371 = vst.msk [vmem:[%s9387_s5 + $0x58] sm:$0xff] %vm853_vm0, %v4179_v21  ;;  %v3508_v20 = vmul.f32 %v3049_v14, %v6054_v23  ;;  %v3509_v21 = vmul.f32 %v3049_v14, %v6065_v48  ;;  %v2739_v23 = vld [vmem:[%s9386_s4 + $0x58] sm:$0xff]  ;;  %v7262_v14 = vpop.f32.mrf.mxu0 }
 0x2cc   :  { %v2453_v19 = vadd.f32 0.001, %v2261_v31  ;;  %v2931_v48 = vsub.f32 %v2739_v23, %v2835_v7  ;;  %9745 = vst [vmem:[#allocation171_spill] sm:$0xff] %v7262_v14 }
 0x2cd   :  { %v7268_v12 = vpop.f32.mrf.mxu0 }
 0x2ce   :  { %4906 = vrsqrt.f32 %v2453_v19  ;;  %9746 = vst [vmem:[#allocation172_spill] sm:$0xff] %v7268_v12  ;;  %v1587_v6 = vmul.f32 %v7268_v12, %v7268_v12 }
 0x2d0   :  { %v1884_v7 = vsel %vm853_vm0, %v1587_v6, 0.0 }
 0x2db   :  { %3740 = vperm.xlu1 %4879, %v2930_v17   ;;  %v4907_v5 = vpop.eup %4906  ;;  %v7264_v17 = vpop.f32.mrf.mxu1 }
 0x2dc   :  { %v2645_v16 = vmul.f32 %v4907_v5, %v2357_v9  ;;  %v2740_v9 = vld [vmem:[%s9386_s4 + $0x60] sm:$0xff] }
 0x2dd   :  { %v7244_v36 = vpop.xlane.xlu1 %1862  ;;  %v7270_v57 = vpop.f32.mrf.mxu1 }
 0x2de   :  { %1882 = vadd.xlane.f32.xlu0 %v1881_v26  ;;  %v2166_v53 = vmul.f32 %v7270_v57, %v7270_v57  ;;  %v2070_v26 = vmul.f32 0.0051020407, %v6895_v58  ;;  %v7289_v58 = vpop.f32.mrf.mxu0 }
 0x2df   :  { %3078 = vperm.xlu1 %4879, %v2644_v56   ;;  %9747 = vst [vmem:[#allocation173_spill] sm:$0xff] %v7289_v58  ;;  %v1588_v5 = vmul.f32 %v7289_v58, %v7289_v58 }
 0x2e1   :  { %v3054_v63 = vpop.permute.xlu1 %3053 }
 0x2e2   :  { %v3510_v31 = vmul.f32 %v3054_v63, %v6080_v3  ;;  %v3511_v19 = vmul.f32 %v3054_v63, %v6094_v62  ;;  %v7291_v63 = vpop.f32.mrf.mxu0 }
 0x2e3   :  { %9748 = vst [vmem:[#allocation174_spill] sm:$0xff] %v7291_v63  ;;  %v1589_v23 = vmul.f32 %v7291_v63, %v7291_v63 }
 0x2e5   :  { %v3721_v46 = vpop.permute.xlu1 %3720 }
 0x2e6   :  { %v4180_v61 = vadd.f32 %v3721_v46, %v3508_v20  ;;  %v4181_v8 = vadd.f32 %v3721_v46, %v3509_v21  ;;  %v1586_v20 = vmul.f32 %v7262_v14, %v7262_v14  ;;  %v2262_v46 = vsub.f32 %v2070_v26, %v2166_v53  ;;  %v9808_v14 = vld [vmem:[#allocation56_spill] sm:$0xff] }
 0x2e7   :  { %v1888_v53 = vsel %vm853_vm0, %v1589_v23, 0.0 }
 0x2e8   :  { %4372 = vst [vmem:[%s9387_s5 + $0x60] sm:$0xff] %v4180_v61  ;;  %4373 = vst.msk [vmem:[%s9387_s5 + $0x68] sm:$0xff] %vm853_vm0, %v4181_v8  ;;  %v1885_v3 = vadd.f32 %v1884_v7, %v1586_v20  ;;  %v2454_v62 = vadd.f32 0.001, %v2262_v46  ;;  %v1889_v20 = vadd.f32 %v1888_v53, %v1588_v5  ;;  %v2359_v53 = vld [vmem:[%s9385_s3 + $0x78] sm:$0xff] }
 0x2ea   :  { %4908 = vrsqrt.f32 %v2454_v62 }
 0x2f4   :  { %3745 = vperm.xlu0 %4878, %v2931_v48   ;;  %v2836_v48 = vmul.f32 %v2644_v56, %v7202_v35  ;;  %v2358_v35 = vld [vmem:[%s9385_s3 + $0x70] sm:$0xff]  ;;  %v3059_v56 = vpop.permute.xlu1 %3058 }
 0x2f5   :  { %v7266_v38 = vpop.xlane.xlu0 %1866  ;;  %v3512_v7 = vmul.f32 %v3059_v56, %v6108_v44  ;;  %v2741_v44 = vld [vmem:[%s9386_s4 + $0x68] sm:$0xff] }
 0x2f6   :  { %v2932_v26 = vsub.f32 %v2740_v9, %v2836_v48  ;;  %v2837_v48 = vmul.f32 %v7195_v27, %v2645_v16 }
 0x2f7   :  { %v4909_v6 = vpop.eup %4908 }
 0x2f8   :  { %3083 = vperm.xlu0 %4878, %v2645_v16  }
 0x2fd   :  { %v3726_v21 = vpop.permute.xlu0 %3725 }
 0x2fe   :  { %v4182_v61 = vadd.f32 %v3726_v21, %v3510_v31  ;;  %v4183_v8 = vadd.f32 %v3726_v21, %v3511_v19  ;;  %v2167_v31 = vmul.f32 %v7264_v17, %v7264_v17  ;;  %v2071_v19 = vmul.f32 0.0051020407, %v6891_v51 }
 0x2ff   :  { %v2646_v21 = vmul.f32 %v4909_v6, %v2358_v35  ;;  %v7328_v6 = vpop.f32.mrf.mxu1  ;;  %v2072_v35 = vmul.f32 0.0051020407, %v6919_v29 }
 0x300   :  { %4374 = vst [vmem:[%s9387_s5 + $0x70] sm:$0xff] %v4182_v61  ;;  %4375 = vst.msk [vmem:[%s9387_s5 + $0x78] sm:$0xff] %vm853_vm0, %v4183_v8  ;;  %v2263_v46 = vsub.f32 %v2071_v19, %v2167_v31 }
 0x301   :  { %v3064_v9 = vpop.permute.xlu0 %3063  ;;  %v7334_v16 = vpop.f32.mrf.mxu1 }
 0x302   :  { %v2455_v8 = vadd.f32 0.001, %v2263_v46  ;;  %v3514_v46 = vmul.f32 %v3064_v9, %v6134_v2 }
 0x303   :  { %1886 = vadd.xlane.f32.xlu1 %v1885_v3  ;;  %v3513_v3 = vmul.f32 %v3059_v56, %v6119_v45  ;;  %v2933_v45 = vsub.f32 %v2741_v44, %v2837_v48 }
 0x304   :  { %4910 = vrsqrt.f32 %v2455_v8  ;;  %v3515_v8 = vmul.f32 %v3064_v9, %v6148_v47 }
 0x311   :  { %v4911_v5 = vpop.eup %4910 }
 0x312   :  { %v2647_v31 = vmul.f32 %v4911_v5, %v2359_v53  ;;  %v2838_v5 = vmul.f32 %v2646_v21, %v7270_v57  ;;  %v2742_v53 = vld [vmem:[%s9386_s4 + $0x70] sm:$0xff]  ;;  %v2360_v57 = vld [vmem:[%s9385_s3 + $0x80] sm:$0xff] }
 0x314   :  { %3750 = vperm.xlu1 %4879, %v2932_v26   ;;  %v7326_v26 = vpop.f32.mrf.mxu0 }
 0x315   :  { %9749 = vst [vmem:[#allocation175_spill] sm:$0xff] %v7326_v26 }
 0x316   :  { %v7332_v27 = vpop.f32.mrf.mxu0 }
 0x317   :  { %1890 = vadd.xlane.f32.xlu0 %v1889_v20  ;;  %9751 = vst [vmem:[#allocation177_spill] sm:$0xff] %v7332_v27  ;;  %v2168_v20 = vmul.f32 %v7334_v16, %v7334_v16  ;;  %v1591_v56 = vmul.f32 %v7332_v27, %v7332_v27 }
 0x318   :  { %3088 = vperm.xlu1 %4879, %v2646_v21   ;;  %v7353_v29 = vpop.f32.mrf.mxu0 }
 0x319   :  { %v1892_v48 = vsel %vm853_vm0, %v1591_v56, 0.0  ;;  %9752 = vst [vmem:[#allocation178_spill] sm:$0xff] %v7353_v29  ;;  %v1592_v9 = vmul.f32 %v7353_v29, %v7353_v29 }
 0x31a   :  { %v7308_v61 = vpop.xlane.xlu1 %1870  ;;  %v7355_v44 = vpop.f32.mrf.mxu0 }
 0x31b   :  { %9753 = vst [vmem:[#allocation179_spill] sm:$0xff] %v7355_v44 }
 0x31e   :  { %v3731_v62 = vpop.permute.xlu1 %3730 }
 0x31f   :  { %v4184_v51 = vadd.f32 %v3731_v62, %v3512_v7  ;;  %v4185_v23 = vadd.f32 %v3731_v62, %v3513_v3  ;;  %v1590_v7 = vmul.f32 %v7326_v26, %v7326_v26  ;;  %v2264_v62 = vsub.f32 %v2072_v35, %v2168_v20 }
 0x320   :  { %v2934_v35 = vsub.f32 %v2742_v53, %v2838_v5  ;;  %v2839_v5 = vmul.f32 %v7264_v17, %v2647_v31 }
 0x321   :  { %4376 = vst [vmem:[%s9387_s5 + $0x80] sm:$0xff] %v4184_v51  ;;  %4377 = vst.msk [vmem:[%s9387_s5 + $0x88] sm:$0xff] %vm853_vm0, %v4185_v23  ;;  %v1893_v2 = vadd.f32 %v1892_v48, %v1590_v7  ;;  %v2456_v47 = vadd.f32 0.001, %v2264_v62 }
 0x322   :  { %v3069_v21 = vpop.permute.xlu1 %3068 }
 0x323   :  { %4912 = vrsqrt.f32 %v2456_v47  ;;  %v3516_v48 = vmul.f32 %v3069_v21, %v6162_v55  ;;  %v2743_v55 = vld [vmem:[%s9386_s4 + $0x78] sm:$0xff] }
 0x32d   :  { %3755 = vperm.xlu0 %4878, %v2933_v45   ;;  %v1593_v45 = vmul.f32 %v7355_v44, %v7355_v44 }
 0x32e   :  { %v7330_v19 = vpop.xlane.xlu0 %1874 }
 0x32f   :  { %9750 = vst [vmem:[#allocation176_spill] sm:$0xff] %v7330_v19  ;;  %v1896_v20 = vsel %vm853_vm0, %v1593_v45, 0.0 }
 0x330   :  { %v4913_v56 = vpop.eup %4912  ;;  %v1897_v7 = vadd.f32 %v1896_v20, %v1592_v9  ;;  %v2361_v20 = vld [vmem:[%s9385_s3 + $0x88] sm:$0xff] }
 0x331   :  { %3093 = vperm.xlu0 %4878, %v2647_v31  }
 0x336   :  { %v3736_v3 = vpop.permute.xlu0 %3735 }
 0x337   :  { %v4186_v51 = vadd.f32 %v3736_v3, %v3514_v46  ;;  %v4187_v23 = vadd.f32 %v3736_v3, %v3515_v8  ;;  %v2169_v46 = vmul.f32 %v7328_v6, %v7328_v6  ;;  %v2073_v8 = vmul.f32 0.0051020407, %v6912_v33 }
 0x338   :  { %v2648_v3 = vmul.f32 %v4913_v56, %v2360_v57  ;;  %v7392_v56 = vpop.f32.mrf.mxu1  ;;  %v2074_v57 = vmul.f32 0.0051020407, %v6932_v41 }
 0x339   :  { %4378 = vst [vmem:[%s9387_s5 + $0x90] sm:$0xff] %v4186_v51  ;;  %4379 = vst.msk [vmem:[%s9387_s5 + $0x98] sm:$0xff] %vm853_vm0, %v4187_v23  ;;  %v2265_v62 = vsub.f32 %v2073_v8, %v2169_v46 }
 0x33a   :  { %v3074_v53 = vpop.permute.xlu0 %3073  ;;  %v7398_v31 = vpop.f32.mrf.mxu1 }
 0x33b   :  { %v2457_v23 = vadd.f32 0.001, %v2265_v62  ;;  %v3518_v62 = vmul.f32 %v3074_v53, %v6188_v18 }
 0x33c   :  { %1894 = vadd.xlane.f32.xlu1 %v1893_v2  ;;  %v3517_v2 = vmul.f32 %v3069_v21, %v6173_v52  ;;  %v2935_v52 = vsub.f32 %v2743_v55, %v2839_v5 }
 0x33d   :  { %4914 = vrsqrt.f32 %v2457_v23  ;;  %v3519_v23 = vmul.f32 %v3074_v53, %v6202_v0 }
 0x34a   :  { %v4915_v9 = vpop.eup %4914 }
 0x34b   :  { %v2649_v46 = vmul.f32 %v4915_v9, %v2361_v20  ;;  %v2840_v9 = vmul.f32 %v2648_v3, %v7334_v16  ;;  %v2744_v20 = vld [vmem:[%s9386_s4 + $0x80] sm:$0xff]  ;;  %v2362_v16 = vld [vmem:[%s9385_s3 + $0x90] sm:$0xff] }
 0x34d   :  { %3760 = vperm.xlu1 %4879, %v2934_v35   ;;  %v7390_v35 = vpop.f32.mrf.mxu0 }
 0x34e   :  { %9754 = vst [vmem:[#allocation180_spill] sm:$0xff] %v7390_v35 }
 0x34f   :  { %v7396_v17 = vpop.f32.mrf.mxu0 }
 0x350   :  { %1898 = vadd.xlane.f32.xlu0 %v1897_v7  ;;  %9756 = vst [vmem:[#allocation182_spill] sm:$0xff] %v7396_v17  ;;  %v2170_v7 = vmul.f32 %v7398_v31, %v7398_v31  ;;  %v1595_v21 = vmul.f32 %v7396_v17, %v7396_v17 }
 0x351   :  { %3098 = vperm.xlu1 %4879, %v2648_v3   ;;  %v7417_v41 = vpop.f32.mrf.mxu0 }
 0x352   :  { %v1900_v5 = vsel %vm853_vm0, %v1595_v21, 0.0  ;;  %9757 = vst [vmem:[#allocation183_spill] sm:$0xff] %v7417_v41  ;;  %v1596_v53 = vmul.f32 %v7417_v41, %v7417_v41 }
 0x353   :  { %v7372_v51 = vpop.xlane.xlu1 %1878  ;;  %v7419_v55 = vpop.f32.mrf.mxu0 }
 0x354   :  { %9758 = vst [vmem:[#allocation184_spill] sm:$0xff] %v7419_v55 }
 0x357   :  { %v3741_v47 = vpop.permute.xlu1 %3740 }
 0x358   :  { %v4188_v33 = vadd.f32 %v3741_v47, %v3516_v48  ;;  %v4189_v45 = vadd.f32 %v3741_v47, %v3517_v2  ;;  %v1594_v48 = vmul.f32 %v7390_v35, %v7390_v35  ;;  %v2266_v47 = vsub.f32 %v2074_v57, %v2170_v7 }
 0x359   :  { %v2936_v57 = vsub.f32 %v2744_v20, %v2840_v9  ;;  %v2841_v20 = vmul.f32 %v7328_v6, %v2649_v46 }
 0x35a   :  { %4380 = vst [vmem:[%s9387_s5 + $0xa0] sm:$0xff] %v4188_v33  ;;  %4381 = vst.msk [vmem:[%s9387_s5 + $0xa8] sm:$0xff] %vm853_vm0, %v4189_v45  ;;  %v1901_v18 = vadd.f32 %v1900_v5, %v1594_v48  ;;  %v2458_v0 = vadd.f32 0.001, %v2266_v47  ;;  %v9759_v5 = vld [vmem:[#allocation21_spill] sm:$0xff] }
 0x35b   :  { %v3079_v3 = vpop.permute.xlu1 %3078 }
 0x35c   :  { %4916 = vrsqrt.f32 %v2458_v0  ;;  %v9760_v0 = vld [vmem:[#allocation23_spill] sm:$0xff] }
 0x366   :  { %3765 = vperm.xlu0 %4878, %v2935_v52   ;;  %v1597_v52 = vmul.f32 %v7419_v55, %v7419_v55 }
 0x367   :  { %v7394_v8 = vpop.xlane.xlu0 %1882 }
 0x368   :  { %9755 = vst [vmem:[#allocation181_spill] sm:$0xff] %v7394_v8  ;;  %v1904_v7 = vsel %vm853_vm0, %v1597_v52, 0.0  ;;  %v3521_v52 = vmul.f32 %v3079_v3, %v9760_v0  ;;  %v9764_v0 = vld [vmem:[#allocation25_spill] sm:$0xff] }
 0x369   :  { %v4917_v21 = vpop.eup %4916  ;;  %v1905_v48 = vadd.f32 %v1904_v7, %v1596_v53  ;;  %v2745_v7 = vld [vmem:[%s9386_s4 + $0x88] sm:$0xff] }
 0x36a   :  { %3103 = vperm.xlu0 %4878, %v2649_v46  }
 0x36f   :  { %v3746_v2 = vpop.permute.xlu0 %3745 }
 0x370   :  { %v4190_v33 = vadd.f32 %v3746_v2, %v3518_v62  ;;  %v4191_v45 = vadd.f32 %v3746_v2, %v3519_v23  ;;  %v2171_v62 = vmul.f32 %v7392_v56, %v7392_v56  ;;  %v2075_v23 = vmul.f32 0.0051020407, %v6930_v24 }
 0x371   :  { %v2650_v2 = vmul.f32 %v4917_v21, %v2362_v16  ;;  %v7456_v16 = vpop.f32.mrf.mxu1 }
 0x372   :  { %4382 = vst [vmem:[%s9387_s5 + $0xb0] sm:$0xff] %v4190_v33  ;;  %4383 = vst.msk [vmem:[%s9387_s5 + $0xb8] sm:$0xff] %vm853_vm0, %v4191_v45  ;;  %v2267_v47 = vsub.f32 %v2075_v23, %v2171_v62  ;;  %v2363_v23 = vld [vmem:[%s9385_s3 + $0x98] sm:$0xff] }
 0x373   :  { %v3084_v62 = vpop.permute.xlu0 %3083  ;;  %v7462_v46 = vpop.f32.mrf.mxu1 }
 0x374   :  { %v2459_v45 = vadd.f32 0.001, %v2267_v47 }
 0x375   :  { %1902 = vadd.xlane.f32.xlu1 %v1901_v18  ;;  %v3520_v18 = vmul.f32 %v3079_v3, %v9759_v5  ;;  %v2076_v5 = vmul.f32 0.0051020407, %v6950_v4 }
 0x376   :  { %4918 = vrsqrt.f32 %v2459_v45  ;;  %v2172_v45 = vmul.f32 %v7462_v46, %v7462_v46 }
 0x383   :  { %v4919_v21 = vpop.eup %4918 }
 0x384   :  { %v2651_v3 = vmul.f32 %v4919_v21, %v2363_v23 }
 0x386   :  { %3770 = vperm.xlu1 %4879, %v2936_v57   ;;  %v2937_v57 = vsub.f32 %v2745_v7, %v2841_v20  ;;  %v2268_v7 = vsub.f32 %v2076_v5, %v2172_v45 }
 0x389   :  { %1906 = vadd.xlane.f32.xlu0 %v1905_v48  ;;  %v7454_v48 = vpop.f32.mrf.mxu0 }
 0x38a   :  { %3108 = vperm.xlu1 %4879, %v2650_v2   ;;  %9761 = vst [vmem:[#allocation21_spill] sm:$0xff] %v7454_v48 }
 0x38b   :  { %v7460_v6 = vpop.f32.mrf.mxu0 }
 0x38c   :  { %v7436_v33 = vpop.xlane.xlu1 %1886  ;;  %9763 = vst [vmem:[#allocation185_spill] sm:$0xff] %v7460_v6 }
 0x390   :  { %v3751_v9 = vpop.permute.xlu1 %3750 }
 0x391   :  { %v4192_v24 = vadd.f32 %v3751_v9, %v3520_v18  ;;  %v4193_v53 = vadd.f32 %v3751_v9, %v3521_v52  ;;  %v1599_v18 = vmul.f32 %v7460_v6, %v7460_v6  ;;  %v3522_v52 = vmul.f32 %v3084_v62, %v9764_v0  ;;  %v9765_v9 = vld [vmem:[#allocation27_spill] sm:$0xff]  ;;  %v7481_v0 = vpop.f32.mrf.mxu0 }
 0x392   :  { %9766 = vst [vmem:[#allocation25_spill] sm:$0xff] %v7481_v0 }
 0x393   :  { %4384 = vst [vmem:[%s9387_s5 + $0xc0] sm:$0xff] %v4192_v24  ;;  %4385 = vst.msk [vmem:[%s9387_s5 + $0xc8] sm:$0xff] %vm853_vm0, %v4193_v53  ;;  %v3523_v24 = vmul.f32 %v3084_v62, %v9765_v9  ;;  %v1598_v53 = vmul.f32 %v7454_v48, %v7454_v48  ;;  %v1908_v23 = vsel %vm853_vm0, %v1599_v18, 0.0  ;;  %v2460_v62 = vadd.f32 0.001, %v2268_v7  ;;  %v7483_v45 = vpop.f32.mrf.mxu0  ;;  %v2746_v9 = vld [vmem:[%s9386_s4 + $0x90] sm:$0xff] }
 0x394   :  { %9767 = vst [vmem:[#allocation27_spill] sm:$0xff] %v7483_v45  ;;  %v1601_v5 = vmul.f32 %v7483_v45, %v7483_v45  ;;  %v2842_v18 = vmul.f32 %v2650_v2, %v7398_v31  ;;  %v2173_v7 = vmul.f32 %v7456_v16, %v7456_v16  ;;  %v2364_v31 = vld [vmem:[%s9385_s3 + $0xa0] sm:$0xff]  ;;  %v3089_v2 = vpop.permute.xlu1 %3088  ;;  %v9769_v45 = vld [vmem:[#allocation31_spill] sm:$0xff] }
 0x395   :  { %v1909_v4 = vadd.f32 %v1908_v23, %v1598_v53  ;;  %4920 = vrsqrt.f32 %v2460_v62 }
 0x396   :  { %v2938_v53 = vsub.f32 %v2746_v9, %v2842_v18  ;;  %v9768_v18 = vld [vmem:[#allocation29_spill] sm:$0xff] }
 0x397   :  { %v3524_v9 = vmul.f32 %v3089_v2, %v9768_v18 }
 0x39f   :  { %3775 = vperm.xlu0 %4878, %v2937_v57  }
 0x3a0   :  { %v7458_v47 = vpop.xlane.xlu0 %1890 }
 0x3a1   :  { %9762 = vst [vmem:[#allocation23_spill] sm:$0xff] %v7458_v47 }
 0x3a3   :  { %3113 = vperm.xlu0 %4878, %v2651_v3  }
 0x3a8   :  { %v3756_v20 = vpop.permute.xlu0 %3755 }
 0x3a9   :  { %v4194_v57 = vadd.f32 %v3756_v20, %v3522_v52  ;;  %v4195_v21 = vadd.f32 %v3756_v20, %v3523_v24  ;;  %v1600_v52 = vmul.f32 %v7481_v0, %v7481_v0  ;;  %v1912_v24 = vsel %vm853_vm0, %v1601_v5, 0.0  ;;  %v4921_v20 = vpop.eup %4920 }
 0x3aa   :  { %v2652_v23 = vmul.f32 %v4921_v20, %v2364_v31  ;;  %v3525_v0 = vmul.f32 %v3089_v2, %v9769_v45 }
 0x3ab   :  { %4386 = vst [vmem:[%s9387_s5 + $0xd0] sm:$0xff] %v4194_v57  ;;  %4387 = vst.msk [vmem:[%s9387_s5 + $0xd8] sm:$0xff] %vm853_vm0, %v4195_v21  ;;  %v2077_v57 = vmul.f32 0.0051020407, %v6945_v13  ;;  %v1913_v21 = vadd.f32 %v1912_v24, %v1600_v52  ;;  %v2843_v24 = vmul.f32 %v7392_v56, %v2651_v3 }
 0x3ae   :  { %1910 = vadd.xlane.f32.xlu1 %v1909_v4  ;;  %v2269_v4 = vsub.f32 %v2077_v57, %v2173_v7  ;;  %v3094_v7 = vpop.permute.xlu0 %3093  ;;  %v7520_v57 = vpop.f32.mrf.mxu1 }
 0x3af   :  { %v3526_v18 = vmul.f32 %v3094_v7, %v6296_v40 }
 0x3b0   :  { %v2461_v5 = vadd.f32 0.001, %v2269_v4  ;;  %v7526_v3 = vpop.f32.mrf.mxu1  ;;  %v2078_v4 = vmul.f32 0.0051020407, %v6966_v22 }
 0x3b1   :  { %v2174_v2 = vmul.f32 %v7526_v3, %v7526_v3 }
 0x3b2   :  { %4922 = vrsqrt.f32 %v2461_v5 }
 0x3bf   :  { %3780 = vperm.xlu1 %4879, %v2938_v53   ;;  %v2747_v53 = vld [vmem:[%s9386_s4 + $0x98] sm:$0xff]  ;;  %v4923_v20 = vpop.eup %4922 }
 0x3c0   :  { %v2939_v45 = vsub.f32 %v2747_v53, %v2843_v24  ;;  %v2270_v53 = vsub.f32 %v2078_v4, %v2174_v2 }
 0x3c2   :  { %1914 = vadd.xlane.f32.xlu0 %v1913_v21  ;;  %v2462_v22 = vadd.f32 0.001, %v2270_v53  ;;  %v2175_v53 = vmul.f32 %v7520_v57, %v7520_v57 }
 0x3c3   :  { %3118 = vperm.xlu1 %4879, %v2652_v23  }
 0x3c4   :  { %4924 = vrsqrt.f32 %v2462_v22 }
 0x3c5   :  { %v7500_v62 = vpop.xlane.xlu1 %1894 }
 0x3c9   :  { %v3761_v55 = vpop.permute.xlu1 %3760 }
 0x3ca   :  { %v4196_v13 = vadd.f32 %v3761_v55, %v3524_v9  ;;  %v4197_v52 = vadd.f32 %v3761_v55, %v3525_v0  ;;  %v2365_v55 = vld [vmem:[%s9385_s3 + $0xa8] sm:$0xff]  ;;  %v7518_v0 = vpop.f32.mrf.mxu0  ;;  %v9773_v9 = vld [vmem:[#allocation34_spill] sm:$0xff] }
 0x3cb   :  { %9770 = vst [vmem:[#allocation29_spill] sm:$0xff] %v7518_v0  ;;  %v2653_v21 = vmul.f32 %v4923_v20, %v2365_v55 }
 0x3cc   :  { %4388 = vst [vmem:[%s9387_s5 + $0xe0] sm:$0xff] %v4196_v13  ;;  %4389 = vst.msk [vmem:[%s9387_s5 + $0xe8] sm:$0xff] %vm853_vm0, %v4197_v52  ;;  %v7524_v56 = vpop.f32.mrf.mxu0  ;;  %v3527_v13 = vmul.f32 %v3094_v7, %v9773_v9  ;;  %v1602_v52 = vmul.f32 %v7518_v0, %v7518_v0  ;;  %v2748_v9 = vld [vmem:[%s9386_s4 + $0xa0] sm:$0xff] }
 0x3cd   :  { %9772 = vst [vmem:[#allocation186_spill] sm:$0xff] %v7524_v56  ;;  %v1603_v5 = vmul.f32 %v7524_v56, %v7524_v56  ;;  %v9796_v56 = vld [vmem:[#allocation48_spill] sm:$0xff]  ;;  %v9797_v0 = vld [vmem:[#allocation50_spill] sm:$0xff] }
 0x3ce   :  { %v7545_v7 = vpop.f32.mrf.mxu0 }
 0x3cf   :  { %v1916_v55 = vsel %vm853_vm0, %v1603_v5, 0.0  ;;  %9774 = vst [vmem:[#allocation34_spill] sm:$0xff] %v7545_v7  ;;  %v2844_v5 = vmul.f32 %v2652_v23, %v7462_v46  ;;  %v2366_v46 = vld [vmem:[%s9385_s3 + $0xb0] sm:$0xff]  ;;  %v3099_v23 = vpop.permute.xlu1 %3098 }
 0x3d0   :  { %v1917_v40 = vadd.f32 %v1916_v55, %v1602_v52  ;;  %v7547_v2 = vpop.f32.mrf.mxu0 }
 0x3d1   :  { %9775 = vst [vmem:[#allocation187_spill] sm:$0xff] %v7547_v2  ;;  %v1605_v4 = vmul.f32 %v7547_v2, %v7547_v2  ;;  %v2940_v52 = vsub.f32 %v2748_v9, %v2844_v5  ;;  %v9778_v5 = vld [vmem:[#allocation36_spill] sm:$0xff] }
 0x3d2   :  { %v3528_v9 = vmul.f32 %v3099_v23, %v9778_v5 }
 0x3d8   :  { %3785 = vperm.xlu0 %4878, %v2939_v45  }
 0x3d9   :  { %v7522_v31 = vpop.xlane.xlu0 %1898 }
 0x3da   :  { %9771 = vst [vmem:[#allocation31_spill] sm:$0xff] %v7522_v31 }
 0x3dc   :  { %3123 = vperm.xlu0 %4878, %v2653_v21  }
 0x3e1   :  { %v3766_v24 = vpop.permute.xlu0 %3765 }
 0x3e2   :  { %v4198_v45 = vadd.f32 %v3766_v24, %v3526_v18  ;;  %v4199_v20 = vadd.f32 %v3766_v24, %v3527_v13  ;;  %v1604_v18 = vmul.f32 %v7545_v7, %v7545_v7  ;;  %v1920_v13 = vsel %vm853_vm0, %v1605_v4, 0.0  ;;  %v4925_v24 = vpop.eup %4924  ;;  %v9779_v7 = vld [vmem:[#allocation38_spill] sm:$0xff] }
 0x3e3   :  { %v3529_v41 = vmul.f32 %v3099_v23, %v9779_v7 }
 0x3e4   :  { %4390 = vst [vmem:[%s9387_s5 + $0xf0] sm:$0xff] %v4198_v45  ;;  %4391 = vst.msk [vmem:[%s9387_s5 + $0xf8] sm:$0xff] %vm853_vm0, %v4199_v20  ;;  %v9776_v45 = vld [vmem:[#allocation137_spill] sm:$0xff]  ;;  %v1921_v55 = vadd.f32 %v1920_v13, %v1604_v18 }
 0x3e5   :  { %v2079_v20 = vmul.f32 0.0051020407, %v9776_v45  ;;  %v3104_v45 = vpop.permute.xlu0 %3103 }
 0x3e7   :  { %1918 = vadd.xlane.f32.xlu1 %v1917_v40  ;;  %v2654_v40 = vmul.f32 %v4925_v24, %v2366_v46  ;;  %v2271_v22 = vsub.f32 %v2079_v20, %v2175_v53  ;;  %v2749_v24 = vld [vmem:[%s9386_s4 + $0xa8] sm:$0xff]  ;;  %v7584_v20 = vpop.f32.mrf.mxu1 }
 0x3e9   :  { %v2463_v4 = vadd.f32 0.001, %v2271_v22  ;;  %v9783_v22 = vld [vmem:[#allocation141_spill] sm:$0xff] }
 0x3eb   :  { %4926 = vrsqrt.f32 %v2463_v4  ;;  %v2080_v4 = vmul.f32 0.0051020407, %v9783_v22 }
 0x3f8   :  { %3790 = vperm.xlu1 %4879, %v2940_v52   ;;  %v2845_v52 = vmul.f32 %v7456_v16, %v2653_v21  ;;  %v4927_v53 = vpop.eup %4926  ;;  %v7590_v21 = vpop.f32.mrf.mxu1 }
 0x3f9   :  { %v2176_v23 = vmul.f32 %v7590_v21, %v7590_v21 }
 0x3fa   :  { %v2941_v7 = vsub.f32 %v2749_v24, %v2845_v52 }
 0x3fb   :  { %1922 = vadd.xlane.f32.xlu0 %v1921_v55 }
 0x3fc   :  { %3128 = vperm.xlu1 %4879, %v2654_v40  }
 0x3fe   :  { %v7564_v2 = vpop.xlane.xlu1 %1902 }
 0x3ff   :  { %9777 = vst [vmem:[#allocation137_spill] sm:$0xff] %v7564_v2 }
 0x402   :  { %v3771_v44 = vpop.permute.xlu1 %3770 }
 0x403   :  { %v4200_v18 = vadd.f32 %v3771_v44, %v3528_v9  ;;  %v4201_v13 = vadd.f32 %v3771_v44, %v3529_v41  ;;  %v2367_v44 = vld [vmem:[%s9385_s3 + $0xb8] sm:$0xff]  ;;  %v7582_v41 = vpop.f32.mrf.mxu0  ;;  %v9784_v9 = vld [vmem:[#allocation40_spill] sm:$0xff] }
 0x404   :  { %9780 = vst [vmem:[#allocation36_spill] sm:$0xff] %v7582_v41  ;;  %v2655_v55 = vmul.f32 %v4927_v53, %v2367_v44  ;;  %v1606_v24 = vmul.f32 %v7582_v41, %v7582_v41  ;;  %v2272_v53 = vsub.f32 %v2080_v4, %v2176_v23 }
 0x405   :  { %4392 = vst [vmem:[%s9387_s5 + $0x100] sm:$0xff] %v4200_v18  ;;  %4393 = vst.msk [vmem:[%s9387_s5 + $0x108] sm:$0xff] %vm853_vm0, %v4201_v13  ;;  %v7588_v16 = vpop.f32.mrf.mxu0  ;;  %v3530_v18 = vmul.f32 %v3104_v45, %v9784_v9  ;;  %v9785_v13 = vld [vmem:[#allocation42_spill] sm:$0xff] }
 0x406   :  { %9782 = vst [vmem:[#allocation188_spill] sm:$0xff] %v7588_v16  ;;  %v1607_v5 = vmul.f32 %v7588_v16, %v7588_v16  ;;  %v3531_v52 = vmul.f32 %v3104_v45, %v9785_v13  ;;  %v2464_v45 = vadd.f32 0.001, %v2272_v53 }
 0x407   :  { %v7609_v9 = vpop.f32.mrf.mxu0 }
 0x408   :  { %v1924_v63 = vsel %vm853_vm0, %v1607_v5, 0.0  ;;  %9786 = vst [vmem:[#allocation141_spill] sm:$0xff] %v7609_v9  ;;  %4928 = vrsqrt.f32 %v2464_v45  ;;  %v2846_v5 = vmul.f32 %v2654_v40, %v7526_v3  ;;  %v2368_v3 = vld [vmem:[%s9385_s3 + $0xc0] sm:$0xff]  ;;  %v3109_v40 = vpop.permute.xlu1 %3108  ;;  %v7628_v45 = vpop.f32.mrf.mxu1 }
 0x409   :  { %v1925_v22 = vadd.f32 %v1924_v63, %v1606_v24  ;;  %v7611_v23 = vpop.f32.mrf.mxu0  ;;  %v2177_v24 = vmul.f32 %v7584_v20, %v7584_v20 }
 0x40a   :  { %9787 = vst [vmem:[#allocation40_spill] sm:$0xff] %v7611_v23  ;;  %v1609_v4 = vmul.f32 %v7611_v23, %v7611_v23 }
 0x40c   :  { %v1928_v63 = vsel %vm853_vm0, %v1609_v4, 0.0 }
 0x411   :  { %3795 = vperm.xlu0 %4878, %v2941_v7  }
 0x412   :  { %v7586_v46 = vpop.xlane.xlu0 %1906 }
 0x413   :  { %9781 = vst [vmem:[#allocation38_spill] sm:$0xff] %v7586_v46 }
 0x415   :  { %3133 = vperm.xlu0 %4878, %v2655_v55  }
 0x41a   :  { %v3776_v7 = vpop.permute.xlu0 %3775 }
 0x41b   :  { %v4202_v44 = vadd.f32 %v3776_v7, %v3530_v18  ;;  %v4203_v29 = vadd.f32 %v3776_v7, %v3531_v52  ;;  %v1608_v18 = vmul.f32 %v7609_v9, %v7609_v9  ;;  %v4929_v52 = vpop.eup %4928  ;;  %v9788_v7 = vld [vmem:[#allocation140_spill] sm:$0xff] }
 0x41c   :  { %v2081_v53 = vmul.f32 0.0051020407, %v9788_v7  ;;  %v9790_v9 = vld [vmem:[#allocation44_spill] sm:$0xff] }
 0x41d   :  { %4394 = vst [vmem:[%s9387_s5 + $0x110] sm:$0xff] %v4202_v44  ;;  %4395 = vst.msk [vmem:[%s9387_s5 + $0x118] sm:$0xff] %vm853_vm0, %v4203_v29  ;;  %v2750_v29 = vld [vmem:[%s9386_s4 + $0xb0] sm:$0xff]  ;;  %v1929_v44 = vadd.f32 %v1928_v63, %v1608_v18  ;;  %v3532_v7 = vmul.f32 %v3109_v40, %v9790_v9  ;;  %v9791_v18 = vld [vmem:[#allocation46_spill] sm:$0xff] }
 0x41e   :  { %v2942_v13 = vsub.f32 %v2750_v29, %v2846_v5  ;;  %v2273_v23 = vsub.f32 %v2081_v53, %v2177_v24  ;;  %v7632_v5 = vpop.f32.mrf.mxu1  ;;  %v3533_v63 = vmul.f32 %v3109_v40, %v9791_v18  ;;  %v2847_v24 = vmul.f32 %v7520_v57, %v2655_v55  ;;  %v2751_v53 = vld [vmem:[%s9386_s4 + $0xb8] sm:$0xff]  ;;  %v3114_v40 = vpop.permute.xlu0 %3113 }
 0x41f   :  { %v3535_v43 = vmul.f32 %v3114_v40, %v9797_v0 }
 0x420   :  { %1926 = vadd.xlane.f32.xlu1 %v1925_v22  ;;  %v2656_v22 = vmul.f32 %v4929_v52, %v2368_v3  ;;  %v2465_v29 = vadd.f32 0.001, %v2273_v23  ;;  %v7636_v41 = vpop.f32.mrf.mxu1 }
 0x422   :  { %4930 = vrsqrt.f32 %v2465_v29  ;;  %v7645_v23 = vpop.f32.mrf.mxu1  ;;  %v2369_v29 = vld [vmem:[%s9385_s3 + $0xc8] sm:$0xff] }
 0x424   :  { %v7647_v9 = vpop.f32.mrf.mxu1 }
 0x42f   :  { %v4931_v3 = vpop.eup %4930 }
 0x431   :  { %3800 = vperm.xlu1 %4879, %v2942_v13  }
 0x434   :  { %1930 = vadd.xlane.f32.xlu0 %v1929_v44  ;;  %v2943_v44 = vsub.f32 %v2751_v53, %v2847_v24  ;;  %v9795_v24 = vld [vmem:[#allocation144_spill] sm:$0xff] }
 0x435   :  { %3138 = vperm.xlu1 %4879, %v2656_v22   ;;  %v2082_v53 = vmul.f32 0.0051020407, %v9795_v24 }
 0x437   :  { %v7630_v4 = vpop.xlane.xlu1 %1910 }
 0x438   :  { %9789 = vst [vmem:[#allocation42_spill] sm:$0xff] %v7630_v4 }
 0x43b   :  { %v3781_v16 = vpop.permute.xlu1 %3780 }
 0x43c   :  { %v4204_v13 = vadd.f32 %v3781_v16, %v3532_v7  ;;  %v4205_v52 = vadd.f32 %v3781_v16, %v3533_v63  ;;  %v7653_v16 = vpop.f32.mrf.mxu1  ;;  %v7658_v7 = vpop.f32.mrf.mxu0  ;;  %v2657_v63 = vmul.f32 %v4931_v3, %v2369_v29 }
 0x43d   :  { %9792 = vst [vmem:[#allocation140_spill] sm:$0xff] %v7658_v7  ;;  %v1610_v3 = vmul.f32 %v7658_v7, %v7658_v7 }
 0x43e   :  { %4396 = vst [vmem:[%s9387_s5 + $0x120] sm:$0xff] %v4204_v13  ;;  %4397 = vst.msk [vmem:[%s9387_s5 + $0x128] sm:$0xff] %vm853_vm0, %v4205_v52  ;;  %v7660_v18 = vpop.f32.mrf.mxu1  ;;  %v7664_v55 = vpop.f32.mrf.mxu0  ;;  %v2178_v13 = vmul.f32 %v7632_v5, %v7632_v5 }
 0x43f   :  { %9794 = vst [vmem:[#allocation46_spill] sm:$0xff] %v7664_v55  ;;  %v1611_v58 = vmul.f32 %v7664_v55, %v7664_v55 }
 0x440   :  { %v7668_v52 = vpop.f32.mrf.mxu1  ;;  %v2274_v6 = vsub.f32 %v2082_v53, %v2178_v13  ;;  %v7689_v24 = vpop.f32.mrf.mxu0 }
 0x441   :  { %v1932_v17 = vsel %vm853_vm0, %v1611_v58, 0.0  ;;  %9798 = vst [vmem:[#allocation144_spill] sm:$0xff] %v7689_v24 }
 0x442   :  { %v7677_v50 = vpop.f32.mrf.mxu1  ;;  %v1933_v0 = vadd.f32 %v1932_v17, %v1610_v3  ;;  %v1612_v17 = vmul.f32 %v7689_v24, %v7689_v24  ;;  %v3119_v24 = vpop.permute.xlu1 %3118 }
 0x44a   :  { %3805 = vperm.xlu0 %4878, %v2943_v44   ;;  %v3534_v44 = vmul.f32 %v3114_v40, %v9796_v56  ;;  %v7687_v56 = vpop.f32.mrf.mxu1  ;;  %v2466_v40 = vadd.f32 0.001, %v2274_v6  ;;  %v2752_v6 = vld [vmem:[%s9386_s4 + $0xc0] sm:$0xff] }
 0x44b   :  { %v7662_v57 = vpop.xlane.xlu0 %1914 }
 0x44c   :  { %9793 = vst [vmem:[#allocation44_spill] sm:$0xff] %v7662_v57  ;;  %v7691_v13 = vpop.f32.mrf.mxu1  ;;  %4932 = vrsqrt.f32 %v2466_v40  ;;  %v2179_v40 = vmul.f32 %v7628_v45, %v7628_v45 }
 0x44d   :  { %v2189_v2 = vmul.f32 %v7691_v13, %v7691_v13 }
 0x44e   :  { %3143 = vperm.xlu0 %4878, %v2657_v63   ;;  %v7695_v58 = vpop.f32.mrf.mxu1 }
 0x450   :  { %v7699_v53 = vpop.f32.mrf.mxu1 }
 0x452   :  { %v7708_v3 = vpop.f32.mrf.mxu1 }
 0x453   :  { %v3786_v29 = vpop.permute.xlu0 %3785 }
 0x454   :  { %v4206_v48 = vadd.f32 %v3786_v29, %v3534_v44  ;;  %v4207_v15 = vadd.f32 %v3786_v29, %v3535_v43  ;;  %v7693_v43 = vpop.f32.mrf.mxu0 }
 0x455   :  { %9799 = vst [vmem:[#allocation48_spill] sm:$0xff] %v7693_v43 }
 0x456   :  { %4398 = vst [vmem:[%s9387_s5 + $0x130] sm:$0xff] %v4206_v48  ;;  %4399 = vst.msk [vmem:[%s9387_s5 + $0x138] sm:$0xff] %vm853_vm0, %v4207_v15  ;;  %v1613_v48 = vmul.f32 %v7693_v43, %v7693_v43  ;;  %v2848_v15 = vmul.f32 %v2656_v22, %v7590_v21  ;;  %v9800_v43 = vld [vmem:[#allocation142_spill] sm:$0xff]  ;;  %v2370_v21 = vld [vmem:[%s9385_s3 + $0xd0] sm:$0xff]  ;;  %v7716_v22 = vpop.f32.mrf.mxu1 }
 0x457   :  { %v2083_v55 = vmul.f32 0.0051020407, %v9800_v43  ;;  %v3536_v43 = vmul.f32 %v3119_v24, %v9802_v32 }
 0x458   :  { %v1936_v44 = vsel %vm853_vm0, %v1613_v48, 0.0  ;;  %v2944_v29 = vsub.f32 %v2752_v6, %v2848_v15  ;;  %v7718_v15 = vpop.f32.mrf.mxu1 }
 0x459   :  { %1934 = vadd.xlane.f32.xlu1 %v1933_v0  ;;  %v4933_v0 = vpop.eup %4932  ;;  %v1937_v7 = vadd.f32 %v1936_v44, %v1612_v17  ;;  %v2275_v48 = vsub.f32 %v2083_v55, %v2179_v40  ;;  %v9803_v17 = vld [vmem:[#allocation54_spill] sm:$0xff]  ;;  %v2849_v55 = vmul.f32 %v7584_v20, %v2657_v63  ;;  %v3124_v40 = vpop.permute.xlu0 %3123 }
 0x45a   :  { %v2658_v35 = vmul.f32 %v4933_v0, %v2370_v21  ;;  %v3537_v44 = vmul.f32 %v3119_v24, %v9803_v17  ;;  %v7724_v27 = vpop.f32.mrf.mxu1  ;;  %v2371_v21 = vld [vmem:[%s9385_s3 + $0xd8] sm:$0xff]  ;;  %v3539_v54 = vmul.f32 %v3124_v40, %v9809_v34 }
 0x45b   :  { %v2467_v59 = vadd.f32 0.001, %v2275_v48 }
 0x45d   :  { %4934 = vrsqrt.f32 %v2467_v59  ;;  %v2753_v59 = vld [vmem:[%s9386_s4 + $0xc8] sm:$0xff] }
 0x45e   :  { %v2945_v24 = vsub.f32 %v2753_v59, %v2849_v55 }
 0x46a   :  { %3810 = vperm.xlu1 %4879, %v2944_v29   ;;  %v4935_v0 = vpop.eup %4934 }
 0x46d   :  { %1938 = vadd.xlane.f32.xlu0 %v1937_v7  ;;  %v7733_v7 = vpop.f32.mrf.mxu1 }
 0x46e   :  { %3148 = vperm.xlu1 %4879, %v2658_v35  }
 0x46f   :  { %v7735_v32 = vpop.f32.mrf.mxu1 }
 0x470   :  { %v7720_v6 = vpop.xlane.xlu1 %1918 }
 0x471   :  { %9801 = vst [vmem:[#allocation50_spill] sm:$0xff] %v7720_v6 }
 0x474   :  { %v3791_v26 = vpop.permute.xlu1 %3790 }
 0x475   :  { %v4208_v29 = vadd.f32 %v3791_v26, %v3536_v43  ;;  %v4209_v12 = vadd.f32 %v3791_v26, %v3537_v44  ;;  %v7741_v26 = vpop.f32.mrf.mxu1  ;;  %v2659_v43 = vmul.f32 %v4935_v0, %v2371_v21  ;;  %v2180_v44 = vmul.f32 %v7645_v23, %v7645_v23 }
 0x477   :  { %4400 = vst [vmem:[%s9387_s5 + $0x140] sm:$0xff] %v4208_v29  ;;  %4401 = vst.msk [vmem:[%s9387_s5 + $0x148] sm:$0xff] %vm853_vm0, %v4209_v12  ;;  %v7746_v12 = vpop.f32.mrf.mxu0  ;;  %v7748_v48 = vpop.f32.mrf.mxu1  ;;  %v9807_v29 = vld [vmem:[#allocation147_spill] sm:$0xff] }
 0x478   :  { %9804 = vst [vmem:[#allocation142_spill] sm:$0xff] %v7746_v12  ;;  %v2084_v55 = vmul.f32 0.0051020407, %v9807_v29  ;;  %v1614_v21 = vmul.f32 %v7746_v12, %v7746_v12 }
 0x479   :  { %v7752_v63 = vpop.f32.mrf.mxu0  ;;  %v7754_v17 = vpop.f32.mrf.mxu1 }
 0x47a   :  { %9806 = vst [vmem:[#allocation54_spill] sm:$0xff] %v7752_v63  ;;  %v1615_v59 = vmul.f32 %v7752_v63, %v7752_v63  ;;  %v2276_v25 = vsub.f32 %v2084_v55, %v2180_v44 }
 0x47b   :  { %v7763_v0 = vpop.f32.mrf.mxu1  ;;  %v7779_v44 = vpop.f32.mrf.mxu0 }
 0x47c   :  { %v1940_v57 = vsel %vm853_vm0, %v1615_v59, 0.0  ;;  %9810 = vst [vmem:[#allocation147_spill] sm:$0xff] %v7779_v44 }
 0x47d   :  { %v7775_v34 = vpop.f32.mrf.mxu1 }
 0x47f   :  { %v7777_v29 = vpop.f32.mrf.mxu1 }
 0x483   :  { %3815 = vperm.xlu0 %4878, %v2945_v24   ;;  %v3538_v24 = vmul.f32 %v3124_v40, %v9808_v14  ;;  %v1941_v14 = vadd.f32 %v1940_v57, %v1614_v21  ;;  %v2468_v40 = vadd.f32 0.001, %v2276_v25  ;;  %v1616_v25 = vmul.f32 %v7779_v44, %v7779_v44  ;;  %v2754_v57 = vld [vmem:[%s9386_s4 + $0xd0] sm:$0xff]  ;;  %v3129_v44 = vpop.permute.xlu1 %3128 }
 0x484   :  { %v7750_v20 = vpop.xlane.xlu0 %1922 }
 0x485   :  { %9805 = vst [vmem:[#allocation52_spill] sm:$0xff] %v7750_v20  ;;  %4936 = vrsqrt.f32 %v2468_v40  ;;  %v2181_v40 = vmul.f32 %v7636_v41, %v7636_v41 }
 0x487   :  { %3153 = vperm.xlu0 %4878, %v2659_v43  }
 0x48c   :  { %v3796_v11 = vpop.permute.xlu0 %3795 }
 0x48d   :  { %v4210_v60 = vadd.f32 %v3796_v11, %v3538_v24  ;;  %v4211_v20 = vadd.f32 %v3796_v11, %v3539_v54  ;;  %v7781_v11 = vpop.f32.mrf.mxu1  ;;  %v7783_v54 = vpop.f32.mrf.mxu0 }
 0x48e   :  { %9811 = vst [vmem:[#allocation56_spill] sm:$0xff] %v7783_v54 }
 0x48f   :  { %4402 = vst [vmem:[%s9387_s5 + $0x150] sm:$0xff] %v4210_v60  ;;  %4403 = vst.msk [vmem:[%s9387_s5 + $0x158] sm:$0xff] %vm853_vm0, %v4211_v20  ;;  %v1617_v60 = vmul.f32 %v7783_v54, %v7783_v54  ;;  %v7787_v55 = vpop.f32.mrf.mxu1  ;;  %v2850_v20 = vmul.f32 %v2658_v35, %v7632_v5  ;;  %v9813_v54 = vld [vmem:[#allocation145_spill] sm:$0xff]  ;;  %v2372_v35 = vld [vmem:[%s9385_s3 + $0xe0] sm:$0xff] }
 0x490   :  { %v2085_v63 = vmul.f32 0.0051020407, %v9813_v54  ;;  %v9817_v54 = vld [vmem:[#allocation60_spill] sm:$0xff] }
 0x491   :  { %v1944_v59 = vsel %vm853_vm0, %v1617_v60, 0.0  ;;  %v7796_v24 = vpop.f32.mrf.mxu1  ;;  %v2946_v21 = vsub.f32 %v2754_v57, %v2850_v20 }
 0x492   :  { %1942 = vadd.xlane.f32.xlu1 %v1941_v14  ;;  %9812 = vst [vmem:[#allocation58_spill] sm:$0xff] %v7796_v24  ;;  %v4937_v14 = vpop.eup %4936  ;;  %v1945_v12 = vadd.f32 %v1944_v59, %v1616_v25  ;;  %v2277_v60 = vsub.f32 %v2085_v63, %v2181_v40  ;;  %v3540_v25 = vmul.f32 %v3129_v44, %v9817_v54  ;;  %v9818_v59 = vld [vmem:[#allocation62_spill] sm:$0xff]  ;;  %v2373_v40 = vld [vmem:[%s9385_s3 + $0xe8] sm:$0xff] }
 0x493   :  { %v7804_v5 = vpop.f32.mrf.mxu1  ;;  %v2660_v46 = vmul.f32 %v4937_v14, %v2372_v35  ;;  %v3541_v47 = vmul.f32 %v3129_v44, %v9818_v59  ;;  %v2851_v63 = vmul.f32 %v7628_v45, %v2659_v43  ;;  %v3134_v14 = vpop.permute.xlu0 %3133  ;;  %v9827_v59 = vld [vmem:[#allocation149_spill] sm:$0xff] }
 0x494   :  { %v2469_v31 = vadd.f32 0.001, %v2277_v60  ;;  %v7834_v35 = vpop.f32.mrf.mxu0 }
 0x495   :  { %v7806_v20 = vpop.f32.mrf.mxu1  ;;  %9822 = vst [vmem:[#allocation192_spill] sm:$0xff] %v7834_v35 }
 0x496   :  { %9814 = vst [vmem:[#allocation145_spill] sm:$0xff] %v7806_v20  ;;  %4938 = vrsqrt.f32 %v2469_v31  ;;  %v2755_v31 = vld [vmem:[%s9386_s4 + $0xd8] sm:$0xff]  ;;  %v7842_v43 = vpop.f32.mrf.mxu0 }
 0x497   :  { %v7810_v6 = vpop.f32.mrf.mxu1  ;;  %9825 = vst [vmem:[#allocation195_spill] sm:$0xff] %v7842_v43 }
 0x498   :  { %9816 = vst [vmem:[#allocation190_spill] sm:$0xff] %v7810_v6 }
 0x499   :  { %v7814_v24 = vpop.f32.mrf.mxu1 }
 0x49a   :  { %9819 = vst [vmem:[#allocation60_spill] sm:$0xff] %v7814_v24 }
 0x4a3   :  { %3820 = vperm.xlu1 %4879, %v2946_v21   ;;  %v4939_v44 = vpop.eup %4938 }
 0x4a4   :  { %v7838_v60 = vmul.f32 %v4939_v44, %v2373_v40  ;;  %v9830_v40 = vld [vmem:[#allocation66_spill] sm:$0xff] }
 0x4a6   :  { %1946 = vadd.xlane.f32.xlu0 %v1945_v12  ;;  %v7823_v12 = vpop.f32.mrf.mxu1 }
 0x4a7   :  { %3158 = vperm.xlu1 %4879, %v2660_v46   ;;  %9820 = vst [vmem:[#allocation62_spill] sm:$0xff] %v7823_v12 }
 0x4a9   :  { %v7808_v57 = vpop.xlane.xlu1 %1926 }
 0x4aa   :  { %9815 = vst [vmem:[#allocation189_spill] sm:$0xff] %v7808_v57 }
 0x4ad   :  { %v3801_v4 = vpop.permute.xlu1 %3800 }
 0x4ae   :  { %v4212_v21 = vadd.f32 %v3801_v4, %v3540_v25  ;;  %v4213_v8 = vadd.f32 %v3801_v4, %v3541_v47  ;;  %v7829_v47 = vpop.f32.mrf.mxu1  ;;  %v2947_v4 = vsub.f32 %v2755_v31, %v2851_v63  ;;  %v2182_v25 = vmul.f32 %v7653_v16, %v7653_v16 }
 0x4af   :  { %9821 = vst [vmem:[#allocation191_spill] sm:$0xff] %v7829_v47  ;;  %v1619_v63 = vmul.f32 %v7842_v43, %v7842_v43  ;;  %v1618_v47 = vmul.f32 %v7834_v35, %v7834_v35  ;;  %v9840_v35 = vld [vmem:[#allocation150_spill] sm:$0xff] }
 0x4b0   :  { %4404 = vst [vmem:[%s9387_s5 + $0x160] sm:$0xff] %v4212_v21  ;;  %4405 = vst.msk [vmem:[%s9387_s5 + $0x168] sm:$0xff] %vm853_vm0, %v4213_v8  ;;  %v7836_v8 = vpop.f32.mrf.mxu1  ;;  %v2086_v21 = vmul.f32 0.0051020407, %v9827_v59 }
 0x4b1   :  { %9823 = vst [vmem:[#allocation193_spill] sm:$0xff] %v7836_v8  ;;  %v1948_v20 = vsel %vm853_vm0, %v1619_v63, 0.0  ;;  %v2852_v63 = vmul.f32 %v2660_v46, %v7645_v23  ;;  %v2374_v23 = vld [vmem:[%s9385_s3 + $0xf0] sm:$0xff] }
 0x4b2   :  { %v7844_v54 = vpop.f32.mrf.mxu1  ;;  %v2278_v57 = vsub.f32 %v2086_v21, %v2182_v25  ;;  %v7870_v25 = vpop.f32.mrf.mxu0 }
 0x4b3   :  { %9826 = vst [vmem:[#allocation196_spill] sm:$0xff] %v7844_v54  ;;  %9833 = vst [vmem:[#allocation197_spill] sm:$0xff] %v7870_v25 }
 0x4b4   :  { %v7852_v31 = vpop.f32.mrf.mxu1  ;;  %v2470_v59 = vadd.f32 0.001, %v2278_v57  ;;  %v9837_v57 = vld [vmem:[#allocation148_spill] sm:$0xff] }
 0x4b5   :  { %9828 = vst [vmem:[#allocation149_spill] sm:$0xff] %v7852_v31 }
 0x4b6   :  { %v7859_v12 = vpop.f32.mrf.mxu1  ;;  %4940 = vrsqrt.f32 %v2470_v59 }
 0x4bc   :  { %3825 = vperm.xlu0 %4878, %v2947_v4   ;;  %v9829_v4 = vld [vmem:[#allocation64_spill] sm:$0xff] }
 0x4bd   :  { %v7840_v45 = vpop.xlane.xlu0 %1930  ;;  %v3542_v44 = vmul.f32 %v3134_v14, %v9829_v4  ;;  %9831 = vst [vmem:[#allocation64_spill] sm:$0xff] %v7859_v12  ;;  %v7868_v4 = vpop.f32.mrf.mxu1 }
 0x4be   :  { %9824 = vst [vmem:[#allocation194_spill] sm:$0xff] %v7840_v45  ;;  %v3543_v45 = vmul.f32 %v3134_v14, %v9830_v40  ;;  %v1949_v14 = vadd.f32 %v1948_v20, %v1618_v47  ;;  %9832 = vst [vmem:[#allocation66_spill] sm:$0xff] %v7868_v4  ;;  %v2183_v20 = vmul.f32 %v7647_v9, %v7647_v9  ;;  %v2087_v47 = vmul.f32 0.0051020407, %v9837_v57  ;;  %v3139_v12 = vpop.permute.xlu1 %3138 }
 0x4bf   :  { %v2186_v4 = vmul.f32 %v7687_v56, %v7687_v56 }
 0x4c0   :  { %3163 = vperm.xlu0 %4878, %v7838_v60   ;;  %v2279_v43 = vsub.f32 %v2087_v47, %v2183_v20 }
 0x4c5   :  { %v3806_v54 = vpop.permute.xlu0 %3805 }
 0x4c6   :  { %v4214_v24 = vadd.f32 %v3806_v54, %v3542_v44  ;;  %v4215_v8 = vadd.f32 %v3806_v54, %v3543_v45  ;;  %v7872_v45 = vpop.f32.mrf.mxu1  ;;  %v7874_v54 = vpop.f32.mrf.mxu0  ;;  %v2756_v44 = vld [vmem:[%s9386_s4 + $0xe0] sm:$0xff] }
 0x4c7   :  { %9834 = vst [vmem:[#allocation198_spill] sm:$0xff] %v7872_v45  ;;  %9835 = vst [vmem:[#allocation199_spill] sm:$0xff] %v7874_v54  ;;  %v2948_v59 = vsub.f32 %v2756_v44, %v2852_v63  ;;  %v2089_v45 = vmul.f32 0.0051020407, %v9840_v35  ;;  %v9844_v44 = vld [vmem:[#allocation68_spill] sm:$0xff] }
 0x4c8   :  { %4406 = vst [vmem:[%s9387_s5 + $0x170] sm:$0xff] %v4214_v24  ;;  %4407 = vst.msk [vmem:[%s9387_s5 + $0x178] sm:$0xff] %vm853_vm0, %v4215_v8  ;;  %v7876_v21 = vpop.f32.mrf.mxu1  ;;  %v1621_v24 = vmul.f32 %v7874_v54, %v7874_v54  ;;  %v1620_v8 = vmul.f32 %v7870_v25, %v7870_v25  ;;  %v4941_v54 = vpop.eup %4940  ;;  %v2185_v25 = vmul.f32 %v7660_v18, %v7660_v18 }
 0x4c9   :  { %9836 = vst [vmem:[#allocation200_spill] sm:$0xff] %v7876_v21 }
 0x4ca   :  { %v7889_v40 = vpop.f32.mrf.mxu1  ;;  %v2281_v20 = vsub.f32 %v2089_v45, %v2185_v25  ;;  %v2187_v25 = vmul.f32 %v7677_v50, %v7677_v50 }
 0x4cb   :  { %1950 = vadd.xlane.f32.xlu1 %v1949_v14  ;;  %9838 = vst [vmem:[#allocation148_spill] sm:$0xff] %v7889_v40  ;;  %v1952_v14 = vsel %vm853_vm0, %v1621_v24, 0.0  ;;  %v7900_v40 = vmul.f32 %v4941_v54, %v2374_v23  ;;  %v2471_v24 = vadd.f32 0.001, %v2279_v43 }
 0x4cc   :  { %v1953_v46 = vadd.f32 %v1952_v14, %v1620_v8  ;;  %v7895_v57 = vpop.f32.mrf.mxu1  ;;  %v3544_v14 = vmul.f32 %v3139_v12, %v9844_v44  ;;  %v2473_v35 = vadd.f32 0.001, %v2281_v20  ;;  %v2757_v44 = vld [vmem:[%s9386_s4 + $0xe8] sm:$0xff] }
 0x4cd   :  { %9839 = vst [vmem:[#allocation201_spill] sm:$0xff] %v7895_v57  ;;  %4942 = vrsqrt.f32 %v2471_v24 }
 0x4ce   :  { %v7902_v63 = vpop.f32.mrf.mxu1  ;;  %4944 = vrsqrt.f32 %v2473_v35 }
 0x4cf   :  { %9841 = vst [vmem:[#allocation150_spill] sm:$0xff] %v7902_v63  ;;  %v3144_v63 = vpop.permute.xlu0 %3143 }
 0x4d0   :  { %v7907_v8 = vpop.f32.mrf.mxu1 }
 0x4d1   :  { %9843 = vst [vmem:[#allocation203_spill] sm:$0xff] %v7907_v8 }
 0x4d2   :  { %v7911_v43 = vpop.f32.mrf.mxu1 }
 0x4d3   :  { %9846 = vst [vmem:[#allocation68_spill] sm:$0xff] %v7911_v43  ;;  %v2088_v43 = vmul.f32 0.0051020407, %v7014_v42  ;;  %v9850_v42 = vld [vmem:[#allocation112_spill] sm:$0xff] }
 0x4d4   :  { %v7923_v45 = vpop.f32.mrf.mxu1 }
 0x4d6   :  { %v7929_v20 = vpop.f32.mrf.mxu1 }
 0x4da   :  { %v4943_v24 = vpop.eup %4942 }
 0x4db   :  { %v4945_v8 = vpop.eup %4944 }
 0x4dc   :  { %3830 = vperm.xlu1 %4879, %v2948_v59   ;;  %v9845_v59 = vld [vmem:[#allocation70_spill] sm:$0xff] }
 0x4dd   :  { %v3545_v57 = vmul.f32 %v3139_v12, %v9845_v59  ;;  %v2091_v12 = vmul.f32 0.0051020407, %v7016_v1  ;;  %v2375_v1 = vld [vmem:[%s9385_s3 + $0xf8] sm:$0xff] }
 0x4df   :  { %1954 = vadd.xlane.f32.xlu0 %v1953_v46  ;;  %v2225_v46 = vmul.f32 %v7923_v45, %v7923_v45 }
 0x4e0   :  { %3168 = vperm.xlu1 %4879, %v7900_v40  }
 0x4e2   :  { %v7905_v47 = vpop.xlane.xlu1 %1934 }
 0x4e3   :  { %9842 = vst [vmem:[#allocation202_spill] sm:$0xff] %v7905_v47 }
 0x4e6   :  { %v3811_v21 = vpop.permute.xlu1 %3810 }
 0x4e7   :  { %v4216_v54 = vadd.f32 %v3811_v21, %v3544_v14  ;;  %v4217_v23 = vadd.f32 %v3811_v21, %v3545_v57  ;;  %v2283_v21 = vsub.f32 %v2091_v12, %v2187_v25  ;;  %v2853_v57 = vmul.f32 %v7636_v41, %v7838_v60  ;;  %v9847_v14 = vld [vmem:[#allocation107_spill] sm:$0xff]  ;;  %v7938_v12 = vpop.f32.mrf.mxu1  ;;  %v7940_v41 = vpop.f32.mrf.mxu0 }
 0x4e8   :  { %v2129_v59 = vmul.f32 0.0051020407, %v9847_v14  ;;  %v2663_v25 = vmul.f32 %v4943_v24, %v2375_v1  ;;  %9848 = vst [vmem:[#allocation70_spill] sm:$0xff] %v7940_v41  ;;  %v2184_v60 = vmul.f32 %v7668_v52, %v7668_v52  ;;  %v2759_v24 = vld [vmem:[%s9386_s4 + $0xf8] sm:$0xff]  ;;  %v2131_v1 = vmul.f32 0.0051020407, %v9850_v42 }
 0x4e9   :  { %4408 = vst [vmem:[%s9387_s5 + $0x180] sm:$0xff] %v4216_v54  ;;  %4409 = vst.msk [vmem:[%s9387_s5 + $0x188] sm:$0xff] %vm853_vm0, %v4217_v23  ;;  %v2475_v35 = vadd.f32 0.001, %v2283_v21  ;;  %v2949_v23 = vsub.f32 %v2757_v44, %v2853_v57  ;;  %v2227_v21 = vmul.f32 %v7938_v12, %v7938_v12  ;;  %v2377_v57 = vld [vmem:[%s9385_s3 + $0x108] sm:$0xff]  ;;  %v7954_v44 = vpop.f32.mrf.mxu0  ;;  %v7963_v31 = vpop.f32.mrf.mxu1 }
 0x4ea   :  { %v2321_v54 = vsub.f32 %v2129_v59, %v2225_v46  ;;  %v2855_v46 = vmul.f32 %v7647_v9, %v2663_v25  ;;  %9849 = vst [vmem:[#allocation107_spill] sm:$0xff] %v7954_v44  ;;  %v2280_v14 = vsub.f32 %v2088_v43, %v2184_v60  ;;  %v9852_v43 = vld [vmem:[#allocation72_spill] sm:$0xff]  ;;  %v9853_v60 = vld [vmem:[#allocation74_spill] sm:$0xff] }
 0x4eb   :  { %4946 = vrsqrt.f32 %v2475_v35  ;;  %v2665_v35 = vmul.f32 %v4945_v8, %v2377_v57  ;;  %v9854_v8 = vld [vmem:[#allocation151_spill] sm:$0xff]  ;;  %v7975_v19 = vpop.f32.mrf.mxu1 }
 0x4ec   :  { %v2513_v47 = vadd.f32 0.001, %v2321_v54  ;;  %v2323_v54 = vsub.f32 %v2131_v1, %v2227_v21  ;;  %v2951_v9 = vsub.f32 %v2759_v24, %v2855_v46  ;;  %v2472_v42 = vadd.f32 0.001, %v2280_v14 }
 0x4ed   :  { %v2093_v21 = vmul.f32 0.0051020407, %v9854_v8  ;;  %v1622_v46 = vmul.f32 %v7940_v41, %v7940_v41  ;;  %v2857_v24 = vmul.f32 %v7660_v18, %v2665_v35  ;;  %v2188_v8 = vmul.f32 %v7695_v58, %v7695_v58  ;;  %v2762_v41 = vld [vmem:[%s9386_s4 + $0x110] sm:$0xff] }
 0x4ee   :  { %4948 = vrsqrt.f32 %v2513_v47  ;;  %v2090_v47 = vmul.f32 0.0051020407, %v7018_v10  ;;  %v2515_v1 = vadd.f32 0.001, %v2323_v54  ;;  %v2229_v54 = vmul.f32 %v7975_v19, %v7975_v19 }
 0x4ef   :  { %4950 = vrsqrt.f32 %v2472_v42 }
 0x4f0   :  { %v2282_v10 = vsub.f32 %v2090_v47, %v2186_v4  ;;  %4952 = vrsqrt.f32 %v2515_v1  ;;  %v7996_v47 = vpop.f32.mrf.mxu1 }
 0x4f5   :  { %3835 = vperm.xlu0 %4878, %v2949_v23   ;;  %v1623_v23 = vmul.f32 %v7954_v44, %v7954_v44 }
 0x4f6   :  { %v7957_v59 = vpop.xlane.xlu0 %1938 }
 0x4f7   :  { %9851 = vst [vmem:[#allocation112_spill] sm:$0xff] %v7957_v59  ;;  %v3547_v59 = vmul.f32 %v3144_v63, %v9853_v60  ;;  %v1956_v14 = vsel %vm853_vm0, %v1623_v23, 0.0 }
 0x4f8   :  { %v1957_v18 = vadd.f32 %v1956_v14, %v1622_v46  ;;  %v4947_v23 = vpop.eup %4946  ;;  %v8002_v14 = vpop.f32.mrf.mxu1 }
 0x4f9   :  { %3173 = vperm.xlu0 %4878, %v2663_v25   ;;  %v3546_v25 = vmul.f32 %v3144_v63, %v9852_v43  ;;  %v2761_v63 = vld [vmem:[%s9386_s4 + $0x108] sm:$0xff]  ;;  %v9855_v43 = vld [vmem:[#allocation114_spill] sm:$0xff] }
 0x4fb   :  { %v4949_v60 = vpop.eup %4948 }
 0x4fd   :  { %3845 = vperm.xlu0 %4878, %v2951_v9   ;;  %v2953_v9 = vsub.f32 %v2761_v63, %v2857_v24  ;;  %v2763_v63 = vld [vmem:[%s9386_s4 + $0x118] sm:$0xff] }
 0x4fe   :  { %v3816_v57 = vpop.permute.xlu0 %3815 }
 0x4ff   :  { %v4218_v44 = vadd.f32 %v3816_v57, %v3546_v25  ;;  %v4219_v6 = vadd.f32 %v3816_v57, %v3547_v59  ;;  %v2285_v59 = vsub.f32 %v2093_v21, %v2189_v2  ;;  %v2133_v25 = vmul.f32 0.0051020407, %v9855_v43  ;;  %v2417_v2 = vld [vmem:[%s9385_s3 + $0x248] sm:$0xff]  ;;  %v9856_v21 = vld [vmem:[#allocation152_spill] sm:$0xff] }
 0x500   :  { %v2092_v46 = vmul.f32 0.0051020407, %v9856_v21  ;;  %v2705_v57 = vmul.f32 %v4949_v60, %v2417_v2 }
 0x501   :  { %4410 = vst [vmem:[%s9387_s5 + $0x190] sm:$0xff] %v4218_v44  ;;  %4411 = vst.msk [vmem:[%s9387_s5 + $0x198] sm:$0xff] %vm853_vm0, %v4219_v6  ;;  %3183 = vperm.xlu0 %4878, %v2665_v35   ;;  %v2379_v44 = vld [vmem:[%s9385_s3 + $0x118] sm:$0xff]  ;;  %v2474_v6 = vadd.f32 0.001, %v2282_v10  ;;  %v2325_v42 = vsub.f32 %v2133_v25, %v2229_v54  ;;  %v4951_v54 = vpop.eup %4950  ;;  %v9857_v25 = vld [vmem:[#allocation103_spill] sm:$0xff] }
 0x502   :  { %v2477_v35 = vadd.f32 0.001, %v2285_v59  ;;  %v2667_v4 = vmul.f32 %v4947_v23, %v2379_v44  ;;  %v2284_v10 = vsub.f32 %v2092_v46, %v2188_v8  ;;  %v2854_v59 = vmul.f32 %v7900_v40, %v7653_v16  ;;  %v2758_v23 = vld [vmem:[%s9386_s4 + $0xf0] sm:$0xff]  ;;  %v2376_v44 = vld [vmem:[%s9385_s3 + $0x100] sm:$0xff]  ;;  %v4953_v43 = vpop.eup %4952  ;;  %v2419_v16 = vld [vmem:[%s9385_s3 + $0x258] sm:$0xff] }
 0x503   :  { %4954 = vrsqrt.f32 %v2474_v6  ;;  %v2517_v24 = vadd.f32 0.001, %v2325_v42  ;;  %v2128_v6 = vmul.f32 0.0051020407, %v9857_v25  ;;  %v9858_v40 = vld [vmem:[#allocation116_spill] sm:$0xff]  ;;  %v2664_v2 = vmul.f32 %v4951_v54, %v2376_v44  ;;  %v9859_v25 = vld [vmem:[#allocation109_spill] sm:$0xff]  ;;  %v3149_v44 = vpop.permute.xlu1 %3148 }
 0x504   :  { %1958 = vadd.xlane.f32.xlu1 %v1957_v18  ;;  %4956 = vrsqrt.f32 %v2477_v35  ;;  %v2859_v1 = vmul.f32 %v7677_v50, %v2667_v4  ;;  %v2224_v18 = vmul.f32 %v7929_v20, %v7929_v20  ;;  %v2135_v35 = vmul.f32 0.0051020407, %v9858_v40 }
 0x505   :  { %3855 = vperm.xlu0 %4878, %v2953_v9   ;;  %4958 = vrsqrt.f32 %v2517_v24  ;;  %v2231_v9 = vmul.f32 %v8002_v14, %v8002_v14  ;;  %v2476_v42 = vadd.f32 0.001, %v2284_v10  ;;  %v2950_v60 = vsub.f32 %v2758_v23, %v2854_v59 }
 0x506   :  { %v2955_v50 = vsub.f32 %v2763_v63, %v2859_v1  ;;  %v2897_v8 = vmul.f32 %v7923_v45, %v2705_v57  ;;  %v2707_v21 = vmul.f32 %v4953_v43, %v2419_v16  ;;  %v2226_v46 = vmul.f32 %v7963_v31, %v7963_v31  ;;  %v2801_v1 = vld [vmem:[%s9386_s4 + $0x248] sm:$0xff]  ;;  %v8030_v63 = vpop.f32.mrf.mxu1  ;;  %v2760_v43 = vld [vmem:[%s9386_s4 + $0x100] sm:$0xff] }
 0x507   :  { %v2327_v24 = vsub.f32 %v2135_v35, %v2231_v9  ;;  %v2130_v40 = vmul.f32 0.0051020407, %v9859_v25  ;;  %v2191_v10 = vmul.f32 %v7699_v53, %v7699_v53  ;;  %v2856_v59 = vmul.f32 %v2664_v2, %v7668_v52  ;;  %v2381_v52 = vld [vmem:[%s9385_s3 + $0x128] sm:$0xff] }
 0x508   :  { %4960 = vrsqrt.f32 %v2476_v42  ;;  %v2993_v9 = vsub.f32 %v2801_v1, %v2897_v8  ;;  %v8043_v35 = vpop.f32.mrf.mxu1 }
 0x509   :  { %3193 = vperm.xlu0 %4878, %v2667_v4   ;;  %v2320_v4 = vsub.f32 %v2128_v6, %v2224_v18  ;;  %v9860_v18 = vld [vmem:[#allocation153_spill] sm:$0xff]  ;;  %v2519_v23 = vadd.f32 0.001, %v2327_v24  ;;  %v2378_v6 = vld [vmem:[%s9385_s3 + $0x110] sm:$0xff] }
 0x50a   :  { %v2095_v45 = vmul.f32 0.0051020407, %v9860_v18  ;;  %v9862_v18 = vld [vmem:[#allocation117_spill] sm:$0xff] }
 0x50c   :  { %v2287_v42 = vsub.f32 %v2095_v45, %v2191_v10  ;;  %v9863_v10 = vld [vmem:[#allocation154_spill] sm:$0xff] }
 0x50d   :  { %3383 = vperm.xlu0 %4878, %v2705_v57   ;;  %v2512_v57 = vadd.f32 0.001, %v2320_v4  ;;  %v2952_v4 = vsub.f32 %v2760_v43, %v2856_v59  ;;  %v2094_v45 = vmul.f32 0.0051020407, %v9863_v10  ;;  %v9864_v59 = vld [vmem:[#allocation76_spill] sm:$0xff] }
 0x50f   :  { %4962 = vrsqrt.f32 %v2512_v57  ;;  %v2479_v57 = vadd.f32 0.001, %v2287_v42  ;;  %v2803_v42 = vld [vmem:[%s9386_s4 + $0x258] sm:$0xff] }
 0x510   :  { %v4955_v54 = vpop.eup %4954  ;;  %4964 = vrsqrt.f32 %v2519_v23 }
 0x511   :  { %3865 = vperm.xlu0 %4878, %v2955_v50   ;;  %v2322_v50 = vsub.f32 %v2130_v40, %v2226_v46  ;;  %v4957_v16 = vpop.eup %4956  ;;  %v2233_v46 = vmul.f32 %v8043_v35, %v8043_v35  ;;  %v2421_v40 = vld [vmem:[%s9385_s3 + $0x268] sm:$0xff] }
 0x512   :  { %v2669_v1 = vmul.f32 %v4957_v16, %v2381_v52  ;;  %v4959_v25 = vpop.eup %4958 }
 0x513   :  { %v2514_v8 = vadd.f32 0.001, %v2322_v50  ;;  %v9865_v50 = vld [vmem:[#allocation78_spill] sm:$0xff]  ;;  %v2709_v16 = vmul.f32 %v4959_v25, %v2421_v40  ;;  %v9866_v40 = vld [vmem:[#allocation113_spill] sm:$0xff] }
 0x514   :  { %v3549_v23 = vmul.f32 %v3149_v44, %v9865_v50  ;;  %v2861_v25 = vmul.f32 %v7691_v13, %v2669_v1 }
 0x515   :  { %3393 = vperm.xlu0 %4878, %v2707_v21   ;;  %3840 = vperm.xlu1 %4879, %v2950_v60   ;;  %v2666_v60 = vmul.f32 %v4955_v54, %v2378_v6  ;;  %v3548_v54 = vmul.f32 %v3149_v44, %v9864_v59  ;;  %v2899_v6 = vmul.f32 %v7938_v12, %v2707_v21  ;;  %4966 = vrsqrt.f32 %v2514_v8  ;;  %v2380_v59 = vld [vmem:[%s9385_s3 + $0x120] sm:$0xff] }
 0x516   :  { %v2228_v12 = vmul.f32 %v7996_v47, %v7996_v47  ;;  %4968 = vrsqrt.f32 %v2479_v57 }
 0x517   :  { %v2858_v43 = vmul.f32 %v2666_v60, %v7687_v56  ;;  %v2995_v8 = vsub.f32 %v2803_v42, %v2899_v6  ;;  %v2423_v6 = vld [vmem:[%s9385_s3 + $0x278] sm:$0xff] }
 0x519   :  { %4055 = vperm.xlu0 %4878, %v2993_v9   ;;  %3178 = vperm.xlu1 %4879, %v2664_v2   ;;  %v2137_v9 = vmul.f32 0.0051020407, %v9862_v18  ;;  %v2190_v2 = vmul.f32 %v7708_v3, %v7708_v3  ;;  %v2954_v21 = vsub.f32 %v2762_v41, %v2858_v43  ;;  %v2416_v43 = vld [vmem:[%s9385_s3 + $0x240] sm:$0xff] }
 0x51b   :  { %v8050_v24 = vpop.xlane.xlu1 %1942  ;;  %v2329_v52 = vsub.f32 %v2137_v9, %v2233_v46  ;;  %v2286_v56 = vsub.f32 %v2094_v45, %v2190_v2  ;;  %v2132_v9 = vmul.f32 0.0051020407, %v9866_v40  ;;  %v2765_v45 = vld [vmem:[%s9386_s4 + $0x128] sm:$0xff] }
 0x51c   :  { %9861 = vst [vmem:[#allocation72_spill] sm:$0xff] %v8050_v24  ;;  %v2805_v40 = vld [vmem:[%s9386_s4 + $0x268] sm:$0xff]  ;;  %v2807_v24 = vld [vmem:[%s9386_s4 + $0x278] sm:$0xff] }
 0x51d   :  { %3203 = vperm.xlu0 %4878, %v2669_v1   ;;  %3850 = vperm.xlu1 %4879, %v2952_v4   ;;  %v8069_v4 = vpop.f32.mrf.mxu1  ;;  %v2521_v46 = vadd.f32 0.001, %v2329_v52  ;;  %v2478_v41 = vadd.f32 0.001, %v2286_v56  ;;  %v2324_v57 = vsub.f32 %v2132_v9, %v2228_v12  ;;  %v2957_v1 = vsub.f32 %v2765_v45, %v2861_v25  ;;  %v9867_v52 = vld [vmem:[#allocation119_spill] sm:$0xff] }
 0x51e   :  { %v2901_v56 = vmul.f32 %v7975_v19, %v2709_v16  ;;  %v2193_v19 = vmul.f32 %v7716_v22, %v7716_v22 }
 0x51f   :  { %v3821_v18 = vpop.permute.xlu1 %3820  ;;  %v8082_v2 = vpop.f32.mrf.mxu1  ;;  %4970 = vrsqrt.f32 %v2521_v46  ;;  %v2516_v42 = vadd.f32 0.001, %v2324_v57  ;;  %v9868_v46 = vld [vmem:[#allocation115_spill] sm:$0xff] }
 0x520   :  { %v4220_v10 = vadd.f32 %v3821_v18, %v3548_v54  ;;  %v4221_v44 = vadd.f32 %v3821_v18, %v3549_v23  ;;  %v2235_v13 = vmul.f32 %v8082_v2, %v8082_v2  ;;  %v2139_v18 = vmul.f32 0.0051020407, %v9867_v52  ;;  %v2383_v52 = vld [vmem:[%s9385_s3 + $0x138] sm:$0xff] }
 0x521   :  { %3403 = vperm.xlu0 %4878, %v2709_v16   ;;  %3188 = vperm.xlu1 %4879, %v2666_v60   ;;  %v4961_v60 = vpop.eup %4960  ;;  %4972 = vrsqrt.f32 %v2478_v41  ;;  %v2134_v25 = vmul.f32 0.0051020407, %v9868_v46  ;;  %v8109_v9 = vpop.f32.mrf.mxu1  ;;  %v9869_v16 = vld [vmem:[#allocation155_spill] sm:$0xff]  ;;  %v2800_v46 = vld [vmem:[%s9386_s4 + $0x240] sm:$0xff] }
 0x522   :  { %4412 = vst [vmem:[%s9387_s5 + $0x1a0] sm:$0xff] %v4220_v10  ;;  %4413 = vst.msk [vmem:[%s9387_s5 + $0x1a8] sm:$0xff] %vm853_vm0, %v4221_v44  ;;  %v4963_v54 = vpop.eup %4962  ;;  %v2668_v50 = vmul.f32 %v4961_v60, %v2380_v59  ;;  %v2230_v10 = vmul.f32 %v8030_v63, %v8030_v63  ;;  %v2418_v60 = vld [vmem:[%s9385_s3 + $0x250] sm:$0xff]  ;;  %v2097_v45 = vmul.f32 0.0051020407, %v9869_v16  ;;  %4974 = vrsqrt.f32 %v2516_v42 }
 0x523   :  { %v4965_v23 = vpop.eup %4964  ;;  %v2704_v44 = vmul.f32 %v4963_v54, %v2416_v43  ;;  %v2997_v54 = vsub.f32 %v2805_v40, %v2901_v56 }
 0x524   :  { %v2711_v12 = vmul.f32 %v4965_v23, %v2423_v6  ;;  %v2326_v59 = vsub.f32 %v2134_v25, %v2230_v10  ;;  %v2860_v41 = vmul.f32 %v2668_v50, %v7695_v58  ;;  %v2764_v23 = vld [vmem:[%s9386_s4 + $0x120] sm:$0xff]  ;;  %v8120_v6 = vpop.f32.mrf.mxu1  ;;  %v2289_v58 = vsub.f32 %v2097_v45, %v2193_v19  ;;  %v2425_v25 = vld [vmem:[%s9385_s3 + $0x288] sm:$0xff] }
 0x525   :  { %4065 = vperm.xlu0 %4878, %v2995_v8   ;;  %3860 = vperm.xlu1 %4879, %v2954_v21   ;;  %v2331_v21 = vsub.f32 %v2139_v18, %v2235_v13  ;;  %v4967_v8 = vpop.eup %4966  ;;  %v2896_v42 = vmul.f32 %v2704_v44, %v7929_v20  ;;  %v2237_v10 = vmul.f32 %v8120_v6, %v8120_v6  ;;  %v9873_v45 = vld [vmem:[#allocation79_spill] sm:$0xff] }
 0x526   :  { %v8115_v57 = vmul.f32 %v4967_v8, %v2418_v60  ;;  %v4969_v43 = vpop.eup %4968  ;;  %v2956_v18 = vsub.f32 %v2764_v23, %v2860_v41  ;;  %v9871_v60 = vld [vmem:[#allocation123_spill] sm:$0xff]  ;;  %v2192_v20 = vmul.f32 %v7718_v15, %v7718_v15  ;;  %v2481_v16 = vadd.f32 0.001, %v2289_v58  ;;  %v9874_v41 = vld [vmem:[#allocation80_spill] sm:$0xff] }
 0x527   :  { %v2523_v13 = vadd.f32 0.001, %v2331_v21  ;;  %v2671_v21 = vmul.f32 %v4969_v43, %v2383_v52  ;;  %v2141_v40 = vmul.f32 0.0051020407, %v9871_v60  ;;  %v2992_v23 = vsub.f32 %v2800_v46, %v2896_v42  ;;  %v2767_v46 = vld [vmem:[%s9386_s4 + $0x138] sm:$0xff] }
 0x528   :  { %v2903_v43 = vmul.f32 %v8002_v14, %v2711_v12  ;;  %v2232_v14 = vmul.f32 %v8069_v4, %v8069_v4 }
 0x529   :  { %3875 = vperm.xlu0 %4878, %v2957_v1   ;;  %3198 = vperm.xlu1 %4879, %v2668_v50   ;;  %v3154_v1 = vpop.permute.xlu0 %3153  ;;  %v2518_v50 = vadd.f32 0.001, %v2326_v59  ;;  %4976 = vrsqrt.f32 %v2523_v13 }
 0x52a   :  { %v3550_v59 = vmul.f32 %v3154_v1, %v9873_v45  ;;  %v2999_v42 = vsub.f32 %v2807_v24, %v2903_v43 }
 0x52b   :  { %4978 = vrsqrt.f32 %v2518_v50  ;;  %v2382_v50 = vld [vmem:[%s9385_s3 + $0x130] sm:$0xff] }
 0x52c   :  { %v4971_v8 = vpop.eup %4970  ;;  %4980 = vrsqrt.f32 %v2481_v16 }
 0x52d   :  { %3413 = vperm.xlu0 %4878, %v2711_v12   ;;  %3378 = vperm.xlu1 %4879, %v2704_v44   ;;  %v9872_v44 = vld [vmem:[#allocation157_spill] sm:$0xff]  ;;  %v2713_v52 = vmul.f32 %v4971_v8, %v2425_v25  ;;  %v2863_v12 = vmul.f32 %v7699_v53, %v2671_v21 }
 0x52e   :  { %v2096_v19 = vmul.f32 0.0051020407, %v9872_v44  ;;  %v4973_v13 = vpop.eup %4972  ;;  %v8147_v44 = vpop.f32.mrf.mxu1 }
 0x52f   :  { %v8129_v56 = vpop.xlane.xlu0 %1946  ;;  %v2670_v8 = vmul.f32 %v4973_v13, %v2382_v50  ;;  %v4975_v25 = vpop.eup %4974  ;;  %v2959_v24 = vsub.f32 %v2767_v46, %v2863_v12  ;;  %v2427_v13 = vld [vmem:[%s9385_s3 + $0x298] sm:$0xff]  ;;  %v9877_v12 = vld [vmem:[#allocation120_spill] sm:$0xff]  ;;  %v2809_v46 = vld [vmem:[%s9386_s4 + $0x288] sm:$0xff] }
 0x530   :  { %9870 = vst [vmem:[#allocation74_spill] sm:$0xff] %v8129_v56  ;;  %v2333_v56 = vsub.f32 %v2141_v40, %v2237_v10  ;;  %v9875_v40 = vld [vmem:[#allocation118_spill] sm:$0xff]  ;;  %v8169_v45 = vpop.f32.mrf.mxu1 }
 0x531   :  { %4075 = vperm.xlu0 %4878, %v2997_v54   ;;  %3388 = vperm.xlu1 %4879, %v8115_v57   ;;  %v3551_v54 = vmul.f32 %v3154_v1, %v9874_v41  ;;  %v2288_v1 = vsub.f32 %v2096_v19, %v2192_v20  ;;  %v2136_v20 = vmul.f32 0.0051020407, %v9875_v40  ;;  %v2420_v19 = vld [vmem:[%s9385_s3 + $0x260] sm:$0xff] }
 0x532   :  { %v2525_v10 = vadd.f32 0.001, %v2333_v56  ;;  %v2898_v56 = vmul.f32 %v8115_v57, %v7963_v31  ;;  %v2708_v16 = vmul.f32 %v4975_v25, %v2420_v19  ;;  %v2234_v57 = vmul.f32 %v8109_v9, %v8109_v9 }
 0x533   :  { %v2480_v53 = vadd.f32 0.001, %v2288_v1  ;;  %v2195_v25 = vmul.f32 %v7724_v27, %v7724_v27 }
 0x534   :  { %4982 = vrsqrt.f32 %v2525_v10  ;;  %v2422_v10 = vld [vmem:[%s9385_s3 + $0x270] sm:$0xff] }
 0x535   :  { %3213 = vperm.xlu0 %4878, %v2671_v21   ;;  %3870 = vperm.xlu1 %4879, %v2956_v18   ;;  %v2328_v21 = vsub.f32 %v2136_v20, %v2232_v14  ;;  %4984 = vrsqrt.f32 %v2480_v53  ;;  %v8185_v14 = vpop.f32.mrf.mxu1 }
 0x536   :  { %v4977_v41 = vpop.eup %4976 }
 0x537   :  { %v3826_v60 = vpop.permute.xlu0 %3825  ;;  %v2520_v31 = vadd.f32 0.001, %v2328_v21  ;;  %v2715_v50 = vmul.f32 %v4977_v41, %v2427_v13  ;;  %v8197_v53 = vpop.f32.mrf.mxu1  ;;  %v2099_v21 = vmul.f32 0.0051020407, %v7103_v37  ;;  %v2804_v37 = vld [vmem:[%s9386_s4 + $0x260] sm:$0xff] }
 0x538   :  { %v4222_v18 = vadd.f32 %v3826_v60, %v3550_v59  ;;  %v4223_v58 = vadd.f32 %v3826_v60, %v3551_v54  ;;  %v2239_v59 = vmul.f32 %v8169_v45, %v8169_v45  ;;  %v2802_v54 = vld [vmem:[%s9386_s4 + $0x250] sm:$0xff]  ;;  %v4979_v60 = vpop.eup %4978  ;;  %v2241_v41 = vmul.f32 %v8197_v53, %v8197_v53 }
 0x539   :  { %3423 = vperm.xlu0 %4878, %v2713_v52   ;;  %4050 = vperm.xlu1 %4879, %v2992_v23   ;;  %v9876_v23 = vld [vmem:[#allocation126_spill] sm:$0xff]  ;;  %4986 = vrsqrt.f32 %v2520_v31  ;;  %v2710_v40 = vmul.f32 %v4979_v60, %v2422_v10  ;;  %v9878_v31 = vld [vmem:[#allocation129_spill] sm:$0xff]  ;;  %v2429_v60 = vld [vmem:[%s9385_s3 + $0x2a8] sm:$0xff]  ;;  %v2098_v10 = vmul.f32 0.0051020407, %v7083_v30 }
 0x53a   :  { %4414 = vst [vmem:[%s9387_s5 + $0x1b0] sm:$0xff] %v4222_v18  ;;  %4415 = vst.msk [vmem:[%s9387_s5 + $0x1b8] sm:$0xff] %vm853_vm0, %v4223_v58  ;;  %v2143_v43 = vmul.f32 0.0051020407, %v9876_v23  ;;  %v2994_v18 = vsub.f32 %v2802_v54, %v2898_v56  ;;  %v2905_v58 = vmul.f32 %v8043_v35, %v2713_v52  ;;  %v2862_v52 = vmul.f32 %v2670_v8, %v7708_v3  ;;  %v2385_v56 = vld [vmem:[%s9385_s3 + $0x148] sm:$0xff] }
 0x53b   :  { %v2900_v3 = vmul.f32 %v2708_v16, %v7996_v47  ;;  %v2291_v54 = vsub.f32 %v2099_v21, %v2195_v25  ;;  %v2194_v47 = vmul.f32 %v7733_v7, %v7733_v7  ;;  %v2384_v25 = vld [vmem:[%s9385_s3 + $0x140] sm:$0xff]  ;;  %v2769_v30 = vld [vmem:[%s9386_s4 + $0x148] sm:$0xff] }
 0x53c   :  { %v2335_v1 = vsub.f32 %v2143_v43, %v2239_v59  ;;  %v3001_v20 = vsub.f32 %v2809_v46, %v2905_v58  ;;  %v2766_v59 = vld [vmem:[%s9386_s4 + $0x130] sm:$0xff]  ;;  %v2424_v21 = vld [vmem:[%s9385_s3 + $0x280] sm:$0xff] }
 0x53d   :  { %4085 = vperm.xlu0 %4878, %v2999_v42   ;;  %3208 = vperm.xlu1 %4879, %v2670_v8   ;;  %v2138_v42 = vmul.f32 0.0051020407, %v9877_v12  ;;  %v2958_v23 = vsub.f32 %v2766_v59, %v2862_v52  ;;  %v2483_v46 = vadd.f32 0.001, %v2291_v54  ;;  %v3159_v52 = vpop.permute.xlu1 %3158  ;;  %v2902_v54 = vmul.f32 %v2710_v40, %v8030_v63  ;;  %v2431_v63 = vld [vmem:[%s9385_s3 + $0x2b8] sm:$0xff] }
 0x53e   :  { %v2527_v19 = vadd.f32 0.001, %v2335_v1  ;;  %v2907_v1 = vmul.f32 %v8082_v2, %v2715_v50  ;;  %v2236_v2 = vmul.f32 %v8147_v44, %v8147_v44 }
 0x53f   :  { %v2330_v35 = vsub.f32 %v2138_v42, %v2234_v57  ;;  %v2145_v57 = vmul.f32 0.0051020407, %v9878_v31  ;;  %v8219_v42 = vpop.f32.mrf.mxu1  ;;  %v2806_v31 = vld [vmem:[%s9386_s4 + $0x270] sm:$0xff] }
 0x540   :  { %4988 = vrsqrt.f32 %v2527_v19 }
 0x541   :  { %3885 = vperm.xlu0 %4878, %v2959_v24   ;;  %3398 = vperm.xlu1 %4879, %v2708_v16   ;;  %v4981_v24 = vpop.eup %4980  ;;  %v2522_v8 = vadd.f32 0.001, %v2330_v35  ;;  %v2996_v16 = vsub.f32 %v2804_v37, %v2900_v3  ;;  %v2811_v35 = vld [vmem:[%s9386_s4 + $0x298] sm:$0xff]  ;;  %v8237_v59 = vpop.f32.mrf.mxu1  ;;  %v2290_v3 = vsub.f32 %v2098_v10, %v2194_v47 }
 0x542   :  { %v2673_v13 = vmul.f32 %v4981_v24, %v2385_v56  ;;  %v4983_v43 = vpop.eup %4982  ;;  %v3003_v24 = vsub.f32 %v2811_v35, %v2907_v1  ;;  %v9882_v1 = vld [vmem:[#allocation131_spill] sm:$0xff]  ;;  %v2998_v35 = vsub.f32 %v2806_v31, %v2902_v54 }
 0x543   :  { %4990 = vrsqrt.f32 %v2522_v8  ;;  %v4985_v58 = vpop.eup %4984  ;;  %v2717_v12 = vmul.f32 %v4983_v43, %v2429_v60  ;;  %v2243_v43 = vmul.f32 %v8237_v59, %v8237_v59  ;;  %v9880_v60 = vld [vmem:[#allocation81_spill] sm:$0xff]  ;;  %v2147_v10 = vmul.f32 0.0051020407, %v9882_v1  ;;  %v9884_v1 = vld [vmem:[#allocation134_spill] sm:$0xff] }
 0x544   :  { %4992 = vrsqrt.f32 %v2483_v46  ;;  %v3552_v47 = vmul.f32 %v3159_v52, %v9880_v60  ;;  %v2768_v60 = vld [vmem:[%s9386_s4 + $0x140] sm:$0xff] }
 0x545   :  { %3433 = vperm.xlu0 %4878, %v2715_v50   ;;  %4060 = vperm.xlu1 %4879, %v2994_v18   ;;  %v2337_v18 = vsub.f32 %v2145_v57, %v2241_v41  ;;  %v2672_v50 = vmul.f32 %v4985_v58, %v2384_v25  ;;  %v2482_v57 = vadd.f32 0.001, %v2290_v3 }
 0x546   :  { %v4987_v19 = vpop.eup %4986 }
 0x547   :  { %v2529_v56 = vadd.f32 0.001, %v2337_v18 }
 0x549   :  { %4095 = vperm.xlu0 %4878, %v3001_v20   ;;  %3408 = vperm.xlu1 %4879, %v2710_v40   ;;  %v2865_v20 = vmul.f32 %v7716_v22, %v2673_v13  ;;  %v9879_v22 = vld [vmem:[#allocation124_spill] sm:$0xff]  ;;  %4994 = vrsqrt.f32 %v2529_v56 }
 0x54a   :  { %v2140_v8 = vmul.f32 0.0051020407, %v9879_v22  ;;  %4996 = vrsqrt.f32 %v2482_v57  ;;  %v9883_v56 = vld [vmem:[#allocation128_spill] sm:$0xff]  ;;  %v2197_v22 = vmul.f32 %v7735_v32, %v7735_v32  ;;  %v2101_v57 = vmul.f32 0.0051020407, %v7174_v49 }
 0x54b   :  { %v2961_v37 = vsub.f32 %v2769_v30, %v2865_v20  ;;  %v2142_v3 = vmul.f32 0.0051020407, %v9883_v56 }
 0x54c   :  { %v2293_v49 = vsub.f32 %v2101_v57, %v2197_v22 }
 0x54d   :  { %3223 = vperm.xlu0 %4878, %v2673_v13   ;;  %3880 = vperm.xlu1 %4879, %v2958_v23   ;;  %v2712_v13 = vmul.f32 %v4987_v19, %v2424_v21  ;;  %v2332_v23 = vsub.f32 %v2140_v8, %v2236_v2  ;;  %v4989_v58 = vpop.eup %4988  ;;  %v2238_v2 = vmul.f32 %v8185_v14, %v8185_v14 }
 0x54e   :  { %v2719_v19 = vmul.f32 %v4989_v58, %v2431_v63  ;;  %v2339_v21 = vsub.f32 %v2147_v10, %v2243_v43  ;;  %v2149_v10 = vmul.f32 0.0051020407, %v9884_v1  ;;  %v2485_v56 = vadd.f32 0.001, %v2293_v49  ;;  %v9886_v1 = vld [vmem:[#allocation83_spill] sm:$0xff] }
 0x54f   :  { %v2524_v20 = vadd.f32 0.001, %v2332_v23  ;;  %v2334_v8 = vsub.f32 %v2142_v3, %v2238_v2  ;;  %v2904_v58 = vmul.f32 %v2712_v13, %v8069_v4  ;;  %v2815_v2 = vld [vmem:[%s9386_s4 + $0x2b8] sm:$0xff] }
 0x550   :  { %v4991_v30 = vpop.eup %4990  ;;  %v2531_v43 = vadd.f32 0.001, %v2339_v21  ;;  %v2911_v4 = vmul.f32 %v8169_v45, %v2719_v19  ;;  %v2100_v21 = vmul.f32 0.0051020407, %v7150_v28  ;;  %v2240_v45 = vmul.f32 %v8219_v42, %v8219_v42  ;;  %v2428_v28 = vld [vmem:[%s9385_s3 + $0x2a0] sm:$0xff] }
 0x551   :  { %3443 = vperm.xlu0 %4878, %v2717_v12   ;;  %4070 = vperm.xlu1 %4879, %v2996_v16   ;;  %v9881_v16 = vld [vmem:[#allocation82_spill] sm:$0xff]  ;;  %4998 = vrsqrt.f32 %v2524_v20 }
 0x552   :  { %v3553_v18 = vmul.f32 %v3159_v52, %v9881_v16  ;;  %v2909_v52 = vmul.f32 %v8120_v6, %v2717_v12  ;;  %v2426_v6 = vld [vmem:[%s9385_s3 + $0x290] sm:$0xff]  ;;  %v2813_v12 = vld [vmem:[%s9386_s4 + $0x2a8] sm:$0xff]  ;;  %v2387_v16 = vld [vmem:[%s9385_s3 + $0x158] sm:$0xff]  ;;  %5000 = vrsqrt.f32 %v2531_v43 }
 0x553   :  { %v2714_v54 = vmul.f32 %v4991_v30, %v2426_v6  ;;  %v3164_v6 = vpop.permute.xlu0 %3163 }
 0x554   :  { %v8240_v41 = vpop.xlane.xlu1 %1950  ;;  %v3005_v23 = vsub.f32 %v2813_v12, %v2909_v52  ;;  %v2386_v12 = vld [vmem:[%s9385_s3 + $0x150] sm:$0xff] }
 0x555   :  { %4105 = vperm.xlu0 %4878, %v3003_v24   ;;  %3218 = vperm.xlu1 %4879, %v2672_v50   ;;  %v8257_v24 = vpop.f32.mrf.mxu1 }
 0x557   :  { %v8276_v31 = vpop.f32.mrf.mxu1 }
 0x558   :  { %v3831_v40 = vpop.permute.xlu1 %3830 }
 0x559   :  { %v4224_v46 = vadd.f32 %v3831_v40, %v3552_v47  ;;  %v4225_v25 = vadd.f32 %v3831_v40, %v3553_v18  ;;  %3895 = vperm.xlu0 %4878, %v2961_v37   ;;  %3418 = vperm.xlu1 %4879, %v2712_v13   ;;  %v2864_v37 = vmul.f32 %v2672_v50, %v7718_v15  ;;  %v4993_v47 = vpop.eup %4992  ;;  %v2526_v18 = vadd.f32 0.001, %v2334_v8  ;;  %v8301_v52 = vpop.f32.mrf.mxu1 }
 0x55a   :  { %v2245_v15 = vmul.f32 %v8276_v31, %v8276_v31  ;;  %v2675_v63 = vmul.f32 %v4993_v47, %v2387_v16  ;;  %v4995_v40 = vpop.eup %4994  ;;  %v3007_v8 = vsub.f32 %v2815_v2, %v2911_v4 }
 0x55b   :  { %4416 = vst [vmem:[%s9387_s5 + $0x1c0] sm:$0xff] %v4224_v46  ;;  %4417 = vst.msk [vmem:[%s9387_s5 + $0x1c8] sm:$0xff] %vm853_vm0, %v4225_v25  ;;  %v2960_v50 = vsub.f32 %v2768_v60, %v2864_v37  ;;  %v2808_v46 = vld [vmem:[%s9386_s4 + $0x280] sm:$0xff]  ;;  %v2433_v25 = vld [vmem:[%s9385_s3 + $0x2c8] sm:$0xff]  ;;  %5002 = vrsqrt.f32 %v2526_v18  ;;  %v4997_v3 = vpop.eup %4996  ;;  %v8313_v43 = vpop.f32.mrf.mxu1 }
 0x55c   :  { %v2341_v13 = vsub.f32 %v2149_v10, %v2245_v15  ;;  %v3000_v20 = vsub.f32 %v2808_v46, %v2904_v58  ;;  %v2721_v30 = vmul.f32 %v4995_v40, %v2433_v25  ;;  %5004 = vrsqrt.f32 %v2485_v56  ;;  %v2771_v18 = vld [vmem:[%s9386_s4 + $0x158] sm:$0xff] }
 0x55d   :  { %3453 = vperm.xlu0 %4878, %v2719_v19   ;;  %4080 = vperm.xlu1 %4879, %v2998_v35   ;;  %v2196_v35 = vmul.f32 %v7741_v26, %v7741_v26  ;;  %v9885_v19 = vld [vmem:[#allocation130_spill] sm:$0xff]  ;;  %v2674_v60 = vmul.f32 %v4997_v3, %v2386_v12  ;;  %v2867_v47 = vmul.f32 %v7724_v27, %v2675_v63  ;;  %v9887_v27 = vld [vmem:[#allocation84_spill] sm:$0xff] }
 0x55e   :  { %v2144_v22 = vmul.f32 0.0051020407, %v9885_v19  ;;  %v2533_v37 = vadd.f32 0.001, %v2341_v13  ;;  %v2247_v49 = vmul.f32 %v8313_v43, %v8313_v43  ;;  %v3554_v10 = vmul.f32 %v3164_v6, %v9886_v1  ;;  %v2810_v13 = vld [vmem:[%s9386_s4 + $0x290] sm:$0xff] }
 0x55f   :  { %v2292_v57 = vsub.f32 %v2100_v21, %v2196_v35  ;;  %v2963_v46 = vsub.f32 %v2771_v18, %v2867_v47  ;;  %v9888_v35 = vld [vmem:[#allocation138_spill] sm:$0xff]  ;;  %v2242_v21 = vmul.f32 %v8257_v24, %v8257_v24  ;;  %v2103_v19 = vmul.f32 0.0051020407, %v7244_v36  ;;  %v2817_v36 = vld [vmem:[%s9386_s4 + $0x2c8] sm:$0xff] }
 0x560   :  { %v2336_v15 = vsub.f32 %v2144_v22, %v2240_v45  ;;  %5006 = vrsqrt.f32 %v2533_v37  ;;  %v2151_v4 = vmul.f32 0.0051020407, %v9888_v35  ;;  %v2430_v37 = vld [vmem:[%s9385_s3 + $0x2b0] sm:$0xff]  ;;  %v2201_v35 = vmul.f32 %v7763_v0, %v7763_v0 }
 0x561   :  { %4115 = vperm.xlu0 %4878, %v3005_v23   ;;  %3428 = vperm.xlu1 %4879, %v2714_v54   ;;  %v4999_v23 = vpop.eup %4998  ;;  %v2484_v40 = vadd.f32 0.001, %v2292_v57 }
 0x562   :  { %v2716_v58 = vmul.f32 %v4999_v23, %v2428_v28  ;;  %v5001_v25 = vpop.eup %5000  ;;  %v2528_v12 = vadd.f32 0.001, %v2336_v15  ;;  %v2343_v45 = vsub.f32 %v2151_v4, %v2247_v49  ;;  %v2913_v23 = vmul.f32 %v8197_v53, %v2721_v30 }
 0x563   :  { %5008 = vrsqrt.f32 %v2484_v40  ;;  %v9891_v40 = vld [vmem:[#allocation88_spill] sm:$0xff] }
 0x564   :  { %5010 = vrsqrt.f32 %v2528_v12  ;;  %v3009_v15 = vsub.f32 %v2817_v36, %v2913_v23 }
 0x565   :  { %3233 = vperm.xlu0 %4878, %v2675_v63   ;;  %3890 = vperm.xlu1 %4879, %v2960_v50   ;;  %v2906_v50 = vmul.f32 %v2714_v54, %v8109_v9  ;;  %v3555_v63 = vmul.f32 %v3164_v6, %v9887_v27  ;;  %v2435_v9 = vld [vmem:[%s9385_s3 + $0x2d8] sm:$0xff]  ;;  %v2199_v6 = vmul.f32 %v7748_v48, %v7748_v48 }
 0x566   :  { %v2723_v28 = vmul.f32 %v5001_v25, %v2435_v9  ;;  %v2770_v25 = vld [vmem:[%s9386_s4 + $0x150] sm:$0xff] }
 0x567   :  { %v2295_v18 = vsub.f32 %v2103_v19, %v2199_v6  ;;  %v2102_v19 = vmul.f32 0.0051020407, %v7211_v39  ;;  %v2203_v39 = vmul.f32 %v7777_v29, %v7777_v29 }
 0x568   :  { %v8316_v16 = vpop.xlane.xlu0 %1954  ;;  %v5003_v22 = vpop.eup %5002  ;;  %v2915_v6 = vmul.f32 %v8237_v59, %v2723_v28  ;;  %v2244_v59 = vmul.f32 %v8301_v52, %v8301_v52 }
 0x569   :  { %3463 = vperm.xlu0 %4878, %v2721_v30   ;;  %4090 = vperm.xlu1 %4879, %v3000_v20   ;;  %v9889_v20 = vld [vmem:[#allocation132_spill] sm:$0xff]  ;;  %v8353_v53 = vmul.f32 %v5003_v22, %v2430_v37  ;;  %v2535_v30 = vadd.f32 0.001, %v2343_v45  ;;  %v5005_v27 = vpop.eup %5004  ;;  %v9892_v22 = vld [vmem:[#allocation91_spill] sm:$0xff] }
 0x56a   :  { %v2146_v2 = vmul.f32 0.0051020407, %v9889_v20  ;;  %v9893_v37 = vld [vmem:[#allocation92_spill] sm:$0xff] }
 0x56b   :  { %5012 = vrsqrt.f32 %v2535_v30  ;;  %v2388_v30 = vld [vmem:[%s9385_s3 + $0x160] sm:$0xff] }
 0x56c   :  { %v2338_v47 = vsub.f32 %v2146_v2, %v2242_v21  ;;  %v2812_v2 = vld [vmem:[%s9386_s4 + $0x2a0] sm:$0xff] }
 0x56d   :  { %4125 = vperm.xlu0 %4878, %v3007_v8   ;;  %3228 = vperm.xlu1 %4879, %v2674_v60   ;;  %v3002_v8 = vsub.f32 %v2810_v13, %v2906_v50  ;;  %v9890_v50 = vld [vmem:[#allocation87_spill] sm:$0xff]  ;;  %v5007_v20 = vpop.eup %5006 }
 0x56e   :  { %v2530_v4 = vadd.f32 0.001, %v2338_v47 }
 0x570   :  { %v3836_v54 = vpop.permute.xlu0 %3835  ;;  %5014 = vrsqrt.f32 %v2530_v4  ;;  %v5009_v36 = vpop.eup %5008 }
 0x571   :  { %v4226_v56 = vadd.f32 %v3836_v54, %v3554_v10  ;;  %v4227_v3 = vadd.f32 %v3836_v54, %v3555_v63  ;;  %3905 = vperm.xlu0 %4878, %v2963_v46   ;;  %3438 = vperm.xlu1 %4879, %v2716_v58   ;;  %v2866_v10 = vmul.f32 %v2674_v60, %v7733_v7  ;;  %v2389_v46 = vld [vmem:[%s9385_s3 + $0x168] sm:$0xff]  ;;  %v2487_v60 = vadd.f32 0.001, %v2295_v18 }
 0x572   :  { %v2908_v7 = vmul.f32 %v2716_v58, %v8147_v44  ;;  %v2105_v54 = vmul.f32 0.0051020407, %v7308_v61  ;;  %v2677_v21 = vmul.f32 %v5005_v27, %v2389_v46  ;;  %v2437_v61 = vld [vmem:[%s9385_s3 + $0x2e8] sm:$0xff] }
 0x573   :  { %4418 = vst [vmem:[%s9387_s5 + $0x1d0] sm:$0xff] %v4226_v56  ;;  %4419 = vst.msk [vmem:[%s9387_s5 + $0x1d8] sm:$0xff] %vm853_vm0, %v4227_v3  ;;  %v2962_v44 = vsub.f32 %v2770_v25, %v2866_v10  ;;  %v2198_v56 = vmul.f32 %v7754_v17, %v7754_v17  ;;  %5016 = vrsqrt.f32 %v2487_v60  ;;  %v2725_v45 = vmul.f32 %v5007_v20, %v2437_v61  ;;  %v2432_v25 = vld [vmem:[%s9385_s3 + $0x2c0] sm:$0xff]  ;;  %v2814_v60 = vld [vmem:[%s9386_s4 + $0x2b0] sm:$0xff] }
 0x574   :  { %v3174_v57 = vpop.permute.xlu0 %3173  ;;  %v3004_v3 = vsub.f32 %v2812_v2, %v2908_v7  ;;  %v2297_v12 = vsub.f32 %v2105_v54, %v2201_v35  ;;  %v2869_v46 = vmul.f32 %v7735_v32, %v2677_v21  ;;  %v2773_v35 = vld [vmem:[%s9386_s4 + $0x168] sm:$0xff]  ;;  %v2439_v20 = vld [vmem:[%s9385_s3 + $0x2f8] sm:$0xff] }
 0x575   :  { %3473 = vperm.xlu0 %4878, %v2723_v28   ;;  %4100 = vperm.xlu1 %4879, %v3002_v8   ;;  %v3558_v49 = vmul.f32 %v3174_v57, %v9890_v50  ;;  %v3559_v1 = vmul.f32 %v3174_v57, %v9891_v40  ;;  %v2819_v57 = vld [vmem:[%s9386_s4 + $0x2d8] sm:$0xff]  ;;  %v2107_v40 = vmul.f32 0.0051020407, %v7372_v51  ;;  %v2294_v27 = vsub.f32 %v2102_v19, %v2198_v56 }
 0x576   :  { %v3011_v10 = vsub.f32 %v2819_v57, %v2915_v6  ;;  %v2917_v19 = vmul.f32 %v8276_v31, %v2725_v45  ;;  %v2821_v31 = vld [vmem:[%s9386_s4 + $0x2e8] sm:$0xff] }
 0x577   :  { %v2299_v7 = vsub.f32 %v2107_v40, %v2203_v39  ;;  %v2486_v2 = vadd.f32 0.001, %v2294_v27  ;;  %v2772_v27 = vld [vmem:[%s9386_s4 + $0x160] sm:$0xff] }
 0x578   :  { %v3846_v63 = vpop.permute.xlu0 %3845 }
 0x579   :  { %v4230_v13 = vadd.f32 %v3846_v63, %v3558_v49  ;;  %v4231_v9 = vadd.f32 %v3846_v63, %v3559_v1  ;;  %4135 = vperm.xlu0 %4878, %v3009_v15   ;;  %3448 = vperm.xlu1 %4879, %v8353_v53   ;;  %v9894_v15 = vld [vmem:[#allocation135_spill] sm:$0xff]  ;;  %v2489_v49 = vadd.f32 0.001, %v2297_v12  ;;  %v5011_v1 = vpop.eup %5010  ;;  %v2676_v63 = vmul.f32 %v5009_v36, %v2388_v30 }
 0x57a   :  { %v2148_v50 = vmul.f32 0.0051020407, %v9894_v15  ;;  %v5013_v32 = vpop.eup %5012  ;;  %v2720_v54 = vmul.f32 %v5011_v1, %v2432_v25  ;;  %v9896_v36 = vld [vmem:[#allocation95_spill] sm:$0xff]  ;;  %v3013_v1 = vsub.f32 %v2821_v31, %v2917_v19  ;;  %v9899_v25 = vld [vmem:[#allocation86_spill] sm:$0xff] }
 0x57b   :  { %4422 = vst [vmem:[%s9387_s5 + $0x1f0] sm:$0xff] %v4230_v13  ;;  %4423 = vst.msk [vmem:[%s9387_s5 + $0x1f8] sm:$0xff] %vm853_vm0, %v4231_v9  ;;  %v2910_v13 = vmul.f32 %v8353_v53, %v8185_v14  ;;  %v8416_v9 = vpop.f32.mrf.mxu1  ;;  %5018 = vrsqrt.f32 %v2489_v49  ;;  %v2205_v14 = vmul.f32 %v7787_v55, %v7787_v55  ;;  %v9895_v53 = vld [vmem:[#allocation139_spill] sm:$0xff]  ;;  %v2868_v49 = vmul.f32 %v2676_v63, %v7741_v26 }
 0x57c   :  { %v3184_v58 = vpop.permute.xlu0 %3183  ;;  %v2340_v4 = vsub.f32 %v2148_v50, %v2244_v59  ;;  %v2150_v61 = vmul.f32 0.0051020407, %v9895_v53  ;;  %v2246_v56 = vmul.f32 %v8416_v9, %v8416_v9  ;;  %5020 = vrsqrt.f32 %v2486_v2  ;;  %v2391_v59 = vld [vmem:[%s9385_s3 + $0x178] sm:$0xff] }
 0x57d   :  { %3243 = vperm.xlu0 %4878, %v2677_v21   ;;  %3900 = vperm.xlu1 %4879, %v2962_v44   ;;  %v3562_v8 = vmul.f32 %v3184_v58, %v9892_v22  ;;  %v3563_v23 = vmul.f32 %v3184_v58, %v9893_v37  ;;  %v2965_v21 = vsub.f32 %v2773_v35, %v2869_v46  ;;  %v5015_v6 = vpop.eup %5014 }
 0x57e   :  { %v2532_v58 = vadd.f32 0.001, %v2340_v4  ;;  %v3006_v12 = vsub.f32 %v2814_v60, %v2910_v13  ;;  %v8430_v22 = vmul.f32 %v5013_v32, %v2439_v20  ;;  %v2200_v26 = vmul.f32 %v7775_v34, %v7775_v34 }
 0x57f   :  { %v2207_v4 = vmul.f32 %v7804_v5, %v7804_v5  ;;  %v2912_v13 = vmul.f32 %v2720_v54, %v8219_v42  ;;  %v2104_v32 = vmul.f32 0.0051020407, %v7266_v38  ;;  %v2393_v38 = vld [vmem:[%s9385_s3 + $0x188] sm:$0xff] }
 0x580   :  { %v3856_v47 = vpop.permute.xlu0 %3855  ;;  %v5017_v37 = vpop.eup %5016  ;;  %5022 = vrsqrt.f32 %v2532_v58  ;;  %v2111_v58 = vmul.f32 0.0051020407, %v7500_v62 }
 0x581   :  { %v4234_v28 = vadd.f32 %v3856_v47, %v3562_v8  ;;  %v4235_v18 = vadd.f32 %v3856_v47, %v3563_v23  ;;  %3483 = vperm.xlu0 %4878, %v2725_v45   ;;  %4110 = vperm.xlu1 %4879, %v3004_v3   ;;  %v3169_v3 = vpop.permute.xlu1 %3168  ;;  %v2491_v8 = vadd.f32 0.001, %v2299_v7  ;;  %v2109_v23 = vmul.f32 0.0051020407, %v7436_v33  ;;  %v9897_v47 = vld [vmem:[#allocation96_spill] sm:$0xff] }
 0x582   :  { %v2679_v50 = vmul.f32 %v5017_v37, %v2391_v59 }
 0x583   :  { %4426 = vst [vmem:[%s9387_s5 + $0x210] sm:$0xff] %v4234_v28  ;;  %4427 = vst.msk [vmem:[%s9387_s5 + $0x218] sm:$0xff] %vm853_vm0, %v4235_v18  ;;  %v2434_v28 = vld [vmem:[%s9385_s3 + $0x2d0] sm:$0xff]  ;;  %v2342_v18 = vsub.f32 %v2150_v61, %v2246_v56  ;;  %5024 = vrsqrt.f32 %v2491_v8 }
 0x584   :  { %v3194_v51 = vpop.permute.xlu0 %3193  ;;  %v8448_v40 = vmul.f32 %v5015_v6, %v2434_v28  ;;  %v9900_v56 = vld [vmem:[#allocation4_spill] sm:$0xff]  ;;  %v9901_v6 = vld [vmem:[#allocation5_spill] sm:$0xff]  ;;  %v9903_v28 = vld [vmem:[#allocation90_spill] sm:$0xff] }
 0x585   :  { %4145 = vperm.xlu0 %4878, %v3011_v10   ;;  %3238 = vperm.xlu1 %4879, %v2676_v63   ;;  %v3566_v57 = vmul.f32 %v3194_v51, %v9896_v36  ;;  %v3567_v30 = vmul.f32 %v3194_v51, %v9897_v47  ;;  %v2301_v10 = vsub.f32 %v2109_v23, %v2205_v14  ;;  %v9898_v63 = vld [vmem:[#allocation85_spill] sm:$0xff]  ;;  %v2534_v7 = vadd.f32 0.001, %v2342_v18  ;;  %v2390_v18 = vld [vmem:[%s9385_s3 + $0x170] sm:$0xff] }
 0x586   :  { %v3556_v46 = vmul.f32 %v3169_v3, %v9898_v63  ;;  %v3557_v51 = vmul.f32 %v3169_v3, %v9899_v25  ;;  %v2871_v14 = vmul.f32 %v7748_v48, %v2679_v50  ;;  %v2775_v48 = vld [vmem:[%s9386_s4 + $0x178] sm:$0xff]  ;;  %v2303_v36 = vsub.f32 %v2111_v58, %v2207_v4 }
 0x587   :  { %v2493_v61 = vadd.f32 0.001, %v2301_v10  ;;  %5026 = vrsqrt.f32 %v2534_v7  ;;  %v9906_v7 = vld [vmem:[#allocation137_spill] sm:$0xff] }
 0x588   :  { %v3384_v44 = vpop.permute.xlu0 %3383  ;;  %v5019_v53 = vpop.eup %5018 }
 0x589   :  { %3915 = vperm.xlu0 %4878, %v2965_v21   ;;  %3458 = vperm.xlu1 %4879, %v2720_v54   ;;  %v2964_v21 = vsub.f32 %v2772_v27, %v2868_v49  ;;  %v3642_v3 = vmul.f32 %v3384_v44, %v9900_v56  ;;  %v3643_v42 = vmul.f32 %v3384_v44, %v9901_v6  ;;  %v2816_v54 = vld [vmem:[%s9386_s4 + $0x2c0] sm:$0xff]  ;;  %5028 = vrsqrt.f32 %v2493_v61  ;;  %v5021_v47 = vpop.eup %5020 }
 0x58a   :  { %v2296_v44 = vsub.f32 %v2104_v32, %v2200_v26  ;;  %v2681_v37 = vmul.f32 %v5019_v53, %v2393_v38  ;;  %v3008_v23 = vsub.f32 %v2816_v54, %v2912_v13  ;;  %v2436_v27 = vld [vmem:[%s9385_s3 + $0x2e0] sm:$0xff]  ;;  %v2495_v13 = vadd.f32 0.001, %v2303_v36  ;;  %v9908_v54 = vld [vmem:[#allocation9_spill] sm:$0xff] }
 0x58b   :  { %v2113_v32 = vmul.f32 0.0051020407, %v9906_v7  ;;  %v2914_v53 = vmul.f32 %v8448_v40, %v8257_v24  ;;  %v9910_v24 = vld [vmem:[#allocation62_spill] sm:$0xff] }
 0x58c   :  { %v3866_v45 = vpop.permute.xlu0 %3865 }
 0x58d   :  { %v4238_v33 = vadd.f32 %v3866_v45, %v3566_v57  ;;  %v4239_v39 = vadd.f32 %v3866_v45, %v3567_v30  ;;  %3493 = vperm.xlu0 %4878, %v8430_v22   ;;  %4120 = vperm.xlu1 %4879, %v3006_v12   ;;  %v8445_v15 = vpop.xlane.xlu1 %1958  ;;  %v2967_v57 = vsub.f32 %v2775_v48, %v2871_v14  ;;  %v9902_v30 = vld [vmem:[#allocation89_spill] sm:$0xff]  ;;  %v5023_v10 = vpop.eup %5022  ;;  %v9909_v48 = vld [vmem:[#allocation58_spill] sm:$0xff] }
 0x58e   :  { %v8533_v61 = vmul.f32 %v5023_v10, %v2436_v27  ;;  %v9915_v10 = vld [vmem:[#allocation99_spill] sm:$0xff] }
 0x58f   :  { %4430 = vst [vmem:[%s9387_s5 + $0x230] sm:$0xff] %v4238_v33  ;;  %4431 = vst.msk [vmem:[%s9387_s5 + $0x238] sm:$0xff] %vm853_vm0, %v4239_v39  ;;  %v2202_v33 = vmul.f32 %v7781_v11, %v7781_v11  ;;  %v2488_v39 = vadd.f32 0.001, %v2296_v44  ;;  %v2204_v44 = vmul.f32 %v9909_v48, %v9909_v48 }
 0x590   :  { %v8464_v35 = vpop.permute.xlu0 %3393  ;;  %v5025_v25 = vpop.eup %5024 }
 0x591   :  { %4155 = vperm.xlu0 %4878, %v3013_v1   ;;  %3468 = vperm.xlu1 %4879, %v8448_v40   ;;  %v3841_v60 = vpop.permute.xlu1 %3840  ;;  %5030 = vrsqrt.f32 %v2488_v39  ;;  %v2211_v40 = vmul.f32 %v9910_v24, %v9910_v24 }
 0x592   :  { %v4228_v20 = vadd.f32 %v3841_v60, %v3556_v46  ;;  %v4229_v2 = vadd.f32 %v3841_v60, %v3557_v51  ;;  %v2873_v46 = vmul.f32 %v7763_v0, %v2681_v37  ;;  %v9905_v51 = vld [vmem:[#allocation190_spill] sm:$0xff]  ;;  %v8513_v60 = vmul.f32 %v5021_v47, %v2390_v18 }
 0x593   :  { %v2209_v4 = vmul.f32 %v9905_v51, %v9905_v51  ;;  %5032 = vrsqrt.f32 %v2495_v13  ;;  %v2397_v13 = vld [vmem:[%s9385_s3 + $0x1a8] sm:$0xff] }
 0x594   :  { %4420 = vst [vmem:[%s9387_s5 + $0x1e0] sm:$0xff] %v4228_v20  ;;  %4421 = vst.msk [vmem:[%s9387_s5 + $0x1e8] sm:$0xff] %vm853_vm0, %v4229_v2  ;;  %v4056_v62 = vpop.permute.xlu0 %4055  ;;  %v2777_v20 = vld [vmem:[%s9386_s4 + $0x188] sm:$0xff]  ;;  %v2395_v2 = vld [vmem:[%s9385_s3 + $0x198] sm:$0xff] }
 0x595   :  { %v4314_v12 = vadd.f32 %v4056_v62, %v3642_v3  ;;  %v4315_v19 = vadd.f32 %v4056_v62, %v3643_v42  ;;  %3253 = vperm.xlu0 %4878, %v2679_v50   ;;  %3910 = vperm.xlu1 %4879, %v2964_v21   ;;  %v3179_v8 = vpop.permute.xlu1 %3178  ;;  %v9904_v50 = vld [vmem:[#allocation176_spill] sm:$0xff]  ;;  %v2969_v58 = vsub.f32 %v2777_v20, %v2873_v46 }
 0x596   :  { %v3560_v59 = vmul.f32 %v3179_v8, %v9902_v30  ;;  %v3561_v31 = vmul.f32 %v3179_v8, %v9903_v28  ;;  %v2106_v49 = vmul.f32 0.0051020407, %v9904_v50  ;;  %v2683_v56 = vmul.f32 %v5025_v25, %v2395_v2  ;;  %v2818_v3 = vld [vmem:[%s9386_s4 + $0x2d0] sm:$0xff]  ;;  %v9912_v8 = vld [vmem:[#allocation94_spill] sm:$0xff]  ;;  %v5027_v50 = vpop.eup %5026 }
 0x597   :  { %4506 = vst [vmem:[%s9387_s5 + $0x490] sm:$0xff] %v4314_v12  ;;  %4507 = vst.msk [vmem:[%s9387_s5 + $0x498] sm:$0xff] %vm853_vm0, %v4315_v19  ;;  %v2305_v6 = vsub.f32 %v2113_v32, %v2209_v4  ;;  %v9907_v42 = vld [vmem:[#allocation8_spill] sm:$0xff]  ;;  %v3647_v62 = vmul.f32 %v8464_v35, %v9908_v54  ;;  %v9911_v12 = vld [vmem:[#allocation93_spill] sm:$0xff]  ;;  %v3010_v28 = vsub.f32 %v2818_v3, %v2914_v53  ;;  %v5029_v25 = vpop.eup %5028 }
 0x598   :  { %v3204_v45 = vpop.permute.xlu0 %3203  ;;  %v2298_v21 = vsub.f32 %v2106_v49, %v2202_v33  ;;  %v3646_v38 = vmul.f32 %v8464_v35, %v9907_v42  ;;  %v2438_v49 = vld [vmem:[%s9385_s3 + $0x2f0] sm:$0xff]  ;;  %v2875_v46 = vmul.f32 %v7777_v29, %v2683_v56  ;;  %v2779_v4 = vld [vmem:[%s9386_s4 + $0x198] sm:$0xff]  ;;  %v2685_v53 = vmul.f32 %v5029_v25, %v2397_v13  ;;  %v9924_v25 = vld [vmem:[#allocation98_spill] sm:$0xff] }
 0x599   :  { %3925 = vperm.xlu0 %4878, %v2967_v57   ;;  %4130 = vperm.xlu1 %4879, %v3008_v23   ;;  %v3851_v1 = vpop.permute.xlu1 %3850  ;;  %v9913_v57 = vld [vmem:[#allocation181_spill] sm:$0xff]  ;;  %v3570_v27 = vmul.f32 %v3204_v45, %v9915_v10  ;;  %v8577_v2 = vmul.f32 %v5027_v50, %v2438_v49  ;;  %v2774_v54 = vld [vmem:[%s9386_s4 + $0x170] sm:$0xff] }
 0x59a   :  { %v4232_v26 = vadd.f32 %v3851_v1, %v3560_v59  ;;  %v4233_v63 = vadd.f32 %v3851_v1, %v3561_v31  ;;  %v2490_v36 = vadd.f32 0.001, %v2298_v21  ;;  %v2108_v47 = vmul.f32 0.0051020407, %v9913_v57  ;;  %v9914_v31 = vld [vmem:[#allocation42_spill] sm:$0xff]  ;;  %v9925_v13 = vld [vmem:[#allocation60_spill] sm:$0xff] }
 0x59b   :  { %v2115_v18 = vmul.f32 0.0051020407, %v9914_v31  ;;  %v2497_v1 = vadd.f32 0.001, %v2305_v6  ;;  %v9918_v6 = vld [vmem:[#allocation23_spill] sm:$0xff] }
 0x59c   :  { %4424 = vst [vmem:[%s9387_s5 + $0x200] sm:$0xff] %v4232_v26  ;;  %4425 = vst.msk [vmem:[%s9387_s5 + $0x208] sm:$0xff] %vm853_vm0, %v4233_v63  ;;  %v8528_v0 = vpop.permute.xlu0 %3403  ;;  %v9916_v26 = vld [vmem:[#allocation100_spill] sm:$0xff]  ;;  %5034 = vrsqrt.f32 %v2490_v36  ;;  %v2300_v29 = vsub.f32 %v2108_v47, %v2204_v44  ;;  %v2110_v42 = vmul.f32 0.0051020407, %v9918_v6  ;;  %v9922_v47 = vld [vmem:[#allocation13_spill] sm:$0xff] }
 0x59d   :  { %3263 = vperm.xlu0 %4878, %v2681_v37   ;;  %3248 = vperm.xlu1 %4879, %v8513_v60   ;;  %v3189_v14 = vpop.permute.xlu1 %3188  ;;  %v3571_v63 = vmul.f32 %v3204_v45, %v9916_v26  ;;  %v2307_v21 = vsub.f32 %v2115_v18, %v2211_v40  ;;  %5036 = vrsqrt.f32 %v2497_v1  ;;  %v9921_v36 = vld [vmem:[#allocation12_spill] sm:$0xff]  ;;  %v2781_v18 = vld [vmem:[%s9386_s4 + $0x1a8] sm:$0xff] }
 0x59e   :  { %v3564_v19 = vmul.f32 %v3189_v14, %v9911_v12  ;;  %v3565_v37 = vmul.f32 %v3189_v14, %v9912_v8  ;;  %v2971_v14 = vsub.f32 %v2779_v4, %v2875_v46  ;;  %v5031_v40 = vpop.eup %5030  ;;  %v9919_v12 = vld [vmem:[#allocation193_spill] sm:$0xff]  ;;  %v9920_v8 = vld [vmem:[#allocation50_spill] sm:$0xff]  ;;  %v3650_v57 = vmul.f32 %v8528_v0, %v9921_v36 }
 0x5a0   :  { %v4066_v23 = vpop.permute.xlu0 %4065 }
 0x5a1   :  { %v4318_v30 = vadd.f32 %v4066_v23, %v3646_v38  ;;  %v4319_v59 = vadd.f32 %v4066_v23, %v3647_v62  ;;  %3935 = vperm.xlu0 %4878, %v2969_v58   ;;  %3478 = vperm.xlu1 %4879, %v8533_v61   ;;  %v3861_v35 = vpop.permute.xlu1 %3860  ;;  %v2870_v58 = vmul.f32 %v8513_v60, %v7754_v17  ;;  %v2492_v62 = vadd.f32 0.001, %v2300_v29  ;;  %v2392_v23 = vld [vmem:[%s9385_s3 + $0x180] sm:$0xff] }
 0x5a2   :  { %v4236_v33 = vadd.f32 %v3861_v35, %v3564_v19  ;;  %v4237_v39 = vadd.f32 %v3861_v35, %v3565_v37  ;;  %v2213_v17 = vmul.f32 %v9919_v12, %v9919_v12  ;;  %v2916_v60 = vmul.f32 %v8533_v61, %v8301_v52  ;;  %v2820_v52 = vld [vmem:[%s9386_s4 + $0x2e0] sm:$0xff] }
 0x5a3   :  { %4510 = vst [vmem:[%s9387_s5 + $0x4b0] sm:$0xff] %v4318_v30  ;;  %4511 = vst.msk [vmem:[%s9387_s5 + $0x4b8] sm:$0xff] %vm853_vm0, %v4319_v59  ;;  %v2499_v19 = vadd.f32 0.001, %v2307_v21  ;;  %v2117_v37 = vmul.f32 0.0051020407, %v9920_v8  ;;  %v3651_v30 = vmul.f32 %v8528_v0, %v9922_v47  ;;  %v2966_v59 = vsub.f32 %v2774_v54, %v2870_v58 }
 0x5a4   :  { %4428 = vst [vmem:[%s9387_s5 + $0x220] sm:$0xff] %v4236_v33  ;;  %4429 = vst.msk [vmem:[%s9387_s5 + $0x228] sm:$0xff] %vm853_vm0, %v4237_v39  ;;  %v3876_v45 = vpop.permute.xlu0 %3875  ;;  %v2877_v35 = vmul.f32 %v7787_v55, %v2685_v53  ;;  %v2399_v33 = vld [vmem:[%s9385_s3 + $0x1b8] sm:$0xff]  ;;  %5038 = vrsqrt.f32 %v2492_v62  ;;  %v2680_v50 = vmul.f32 %v5031_v40, %v2392_v23  ;;  %v3012_v1 = vsub.f32 %v2820_v52, %v2916_v60  ;;  %v9927_v21 = vld [vmem:[#allocation31_spill] sm:$0xff] }
 0x5a5   :  { %v4242_v7 = vadd.f32 %v3876_v45, %v3570_v27  ;;  %v4243_v32 = vadd.f32 %v3876_v45, %v3571_v63  ;;  %3273 = vperm.xlu0 %4878, %v2683_v56   ;;  %4140 = vperm.xlu1 %4879, %v3010_v28   ;;  %v3199_v20 = vpop.permute.xlu1 %3198  ;;  %v9917_v56 = vld [vmem:[#allocation145_spill] sm:$0xff]  ;;  %v5033_v28 = vpop.eup %5032  ;;  %5040 = vrsqrt.f32 %v2499_v19  ;;  %v2309_v49 = vsub.f32 %v2117_v37, %v2213_v17  ;;  %v2776_v40 = vld [vmem:[%s9386_s4 + $0x180] sm:$0xff]  ;;  %v2394_v17 = vld [vmem:[%s9385_s3 + $0x190] sm:$0xff] }
 0x5a6   :  { %v2206_v3 = vmul.f32 %v9917_v56, %v9917_v56  ;;  %v2973_v10 = vsub.f32 %v2781_v18, %v2877_v35  ;;  %v2687_v27 = vmul.f32 %v5033_v28, %v2399_v33  ;;  %v9923_v63 = vld [vmem:[#allocation97_spill] sm:$0xff]  ;;  %v3569_v45 = vmul.f32 %v3199_v20, %v9924_v25  ;;  %v9929_v8 = vld [vmem:[#allocation2_spill] sm:$0xff]  ;;  %v9930_v37 = vld [vmem:[#allocation3_spill] sm:$0xff] }
 0x5a7   :  { %4434 = vst [vmem:[%s9387_s5 + $0x250] sm:$0xff] %v4242_v7  ;;  %4435 = vst.msk [vmem:[%s9387_s5 + $0x258] sm:$0xff] %vm853_vm0, %v4243_v32  ;;  %v3568_v46 = vmul.f32 %v3199_v20, %v9923_v63  ;;  %v2208_v29 = vmul.f32 %v9925_v13, %v9925_v13  ;;  %v9926_v7 = vld [vmem:[#allocation149_spill] sm:$0xff]  ;;  %v2872_v58 = vmul.f32 %v2680_v50, %v7775_v34  ;;  %v2501_v6 = vadd.f32 0.001, %v2309_v49  ;;  %v9933_v49 = vld [vmem:[#allocation191_spill] sm:$0xff] }
 0x5a8   :  { %v8591_v38 = vpop.permute.xlu0 %3413  ;;  %v2302_v61 = vsub.f32 %v2110_v42, %v2206_v3  ;;  %v2215_v32 = vmul.f32 %v9926_v7, %v9926_v7  ;;  %v9928_v42 = vld [vmem:[#allocation189_spill] sm:$0xff]  ;;  %v2879_v60 = vmul.f32 %v7804_v5, %v2687_v27 }
 0x5a9   :  { %3945 = vperm.xlu0 %4878, %v2971_v14   ;;  %3488 = vperm.xlu1 %4879, %v8577_v2   ;;  %v3379_v44 = vpop.permute.xlu1 %3378  ;;  %v2112_v14 = vmul.f32 0.0051020407, %v9927_v21  ;;  %v5035_v3 = vpop.eup %5034  ;;  %v2119_v54 = vmul.f32 0.0051020407, %v9928_v42  ;;  %v2783_v5 = vld [vmem:[%s9386_s4 + $0x1b8] sm:$0xff] }
 0x5aa   :  { %v2494_v26 = vadd.f32 0.001, %v2302_v61  ;;  %v5037_v19 = vpop.eup %5036  ;;  %v3640_v34 = vmul.f32 %v3379_v44, %v9929_v8  ;;  %v3641_v23 = vmul.f32 %v3379_v44, %v9930_v37  ;;  %v9931_v61 = vld [vmem:[#allocation16_spill] sm:$0xff]  ;;  %v9932_v18 = vld [vmem:[#allocation17_spill] sm:$0xff] }
 0x5ab   :  { %v2304_v44 = vsub.f32 %v2112_v14, %v2208_v29  ;;  %v2311_v35 = vsub.f32 %v2119_v54, %v2215_v32  ;;  %v3655_v33 = vmul.f32 %v8591_v38, %v9932_v18  ;;  %v9938_v42 = vld [vmem:[#allocation105_spill] sm:$0xff]  ;;  %v9942_v18 = vld [vmem:[#allocation44_spill] sm:$0xff] }
 0x5ac   :  { %v4076_v31 = vpop.permute.xlu0 %4075  ;;  %5042 = vrsqrt.f32 %v2494_v26 }
 0x5ad   :  { %v4322_v0 = vadd.f32 %v4076_v31, %v3650_v57  ;;  %v4323_v39 = vadd.f32 %v4076_v31, %v3651_v30  ;;  %3283 = vperm.xlu0 %4878, %v2685_v53   ;;  %3920 = vperm.xlu1 %4879, %v2966_v59   ;;  %v8619_v55 = vpop.permute.xlu1 %3388  ;;  %v2401_v57 = vld [vmem:[%s9385_s3 + $0x1c8] sm:$0xff]  ;;  %v2968_v30 = vsub.f32 %v2776_v40, %v2872_v58  ;;  %5044 = vrsqrt.f32 %v2501_v6 }
 0x5ae   :  { %v2682_v59 = vmul.f32 %v5035_v3, %v2394_v17  ;;  %v3654_v31 = vmul.f32 %v8591_v38, %v9931_v61  ;;  %v2503_v32 = vadd.f32 0.001, %v2311_v35  ;;  %v9937_v3 = vld [vmem:[#allocation104_spill] sm:$0xff]  ;;  %v2785_v40 = vld [vmem:[%s9386_s4 + $0x1c8] sm:$0xff] }
 0x5af   :  { %4514 = vst [vmem:[%s9387_s5 + $0x4d0] sm:$0xff] %v4322_v0  ;;  %4515 = vst.msk [vmem:[%s9387_s5 + $0x4d8] sm:$0xff] %vm853_vm0, %v4323_v39  ;;  %v2975_v0 = vsub.f32 %v2783_v5, %v2879_v60  ;;  %v2689_v39 = vmul.f32 %v5037_v19, %v2401_v57  ;;  %v2778_v17 = vld [vmem:[%s9386_s4 + $0x190] sm:$0xff] }
 0x5b0   :  { %v3214_v4 = vpop.permute.xlu0 %3213  ;;  %v2874_v21 = vmul.f32 %v2682_v59, %v7781_v11  ;;  %v2403_v11 = vld [vmem:[%s9385_s3 + $0x1d8] sm:$0xff] }
 0x5b1   :  { %3955 = vperm.xlu0 %4878, %v2973_v10   ;;  %4150 = vperm.xlu1 %4879, %v3012_v1   ;;  %v3871_v53 = vpop.permute.xlu1 %3870  ;;  %v2210_v1 = vmul.f32 %v9933_v49, %v9933_v49  ;;  %v2496_v10 = vadd.f32 0.001, %v2304_v44  ;;  %v5039_v25 = vpop.eup %5038  ;;  %v3574_v6 = vmul.f32 %v3214_v4, %v9937_v3  ;;  %v3575_v54 = vmul.f32 %v3214_v4, %v9938_v42  ;;  %v9939_v44 = vld [vmem:[#allocation6_spill] sm:$0xff] }
 0x5b2   :  { %v4240_v62 = vadd.f32 %v3871_v53, %v3568_v46  ;;  %v4241_v20 = vadd.f32 %v3871_v53, %v3569_v45  ;;  %v9935_v45 = vld [vmem:[#allocation66_spill] sm:$0xff]  ;;  %v5041_v14 = vpop.eup %5040  ;;  %v2970_v57 = vsub.f32 %v2778_v17, %v2874_v21  ;;  %v9947_v17 = vld [vmem:[#allocation101_spill] sm:$0xff] }
 0x5b3   :  { %v2217_v29 = vmul.f32 %v9935_v45, %v9935_v45  ;;  %v9936_v53 = vld [vmem:[#allocation202_spill] sm:$0xff]  ;;  %5046 = vrsqrt.f32 %v2496_v10 }
 0x5b4   :  { %4432 = vst [vmem:[%s9387_s5 + $0x240] sm:$0xff] %v4240_v62  ;;  %4433 = vst.msk [vmem:[%s9387_s5 + $0x248] sm:$0xff] %vm853_vm0, %v4241_v20  ;;  %v8653_v36 = vpop.permute.xlu0 %3423  ;;  %v2121_v58 = vmul.f32 0.0051020407, %v9936_v53  ;;  %v2881_v62 = vmul.f32 %v9905_v51, %v2689_v39  ;;  %v2396_v20 = vld [vmem:[%s9385_s3 + $0x1a0] sm:$0xff]  ;;  %5048 = vrsqrt.f32 %v2503_v32  ;;  %v9946_v53 = vld [vmem:[#allocation200_spill] sm:$0xff] }
 0x5b5   :  { %3293 = vperm.xlu0 %4878, %v2687_v27   ;;  %3258 = vperm.xlu1 %4879, %v2680_v50   ;;  %v4051_v47 = vpop.permute.xlu1 %4050  ;;  %v9934_v27 = vld [vmem:[#allocation38_spill] sm:$0xff]  ;;  %v2684_v37 = vmul.f32 %v5039_v25, %v2396_v20  ;;  %v9944_v25 = vld [vmem:[#allocation20_spill] sm:$0xff] }
 0x5b6   :  { %v4312_v28 = vadd.f32 %v4051_v47, %v3640_v34  ;;  %v4313_v52 = vadd.f32 %v4051_v47, %v3641_v23  ;;  %v2114_v26 = vmul.f32 0.0051020407, %v9934_v27  ;;  %v2691_v34 = vmul.f32 %v5041_v14, %v2403_v11  ;;  %v9945_v32 = vld [vmem:[#allocation22_spill] sm:$0xff]  ;;  %v2405_v14 = vld [vmem:[%s9385_s3 + $0x1e8] sm:$0xff] }
 0x5b7   :  { %v2313_v23 = vsub.f32 %v2121_v58, %v2217_v29  ;;  %v2977_v5 = vsub.f32 %v2785_v40, %v2881_v62  ;;  %v3644_v47 = vmul.f32 %v8619_v55, %v9939_v44  ;;  %v2876_v10 = vmul.f32 %v2684_v37, %v9909_v48 }
 0x5b8   :  { %4504 = vst [vmem:[%s9387_s5 + $0x480] sm:$0xff] %v4312_v28  ;;  %4505 = vst.msk [vmem:[%s9387_s5 + $0x488] sm:$0xff] %vm853_vm0, %v4313_v52  ;;  %v4086_v50 = vpop.permute.xlu0 %4085  ;;  %v2306_v60 = vsub.f32 %v2114_v26, %v2210_v1  ;;  %v9941_v52 = vld [vmem:[#allocation196_spill] sm:$0xff]  ;;  %v3658_v29 = vmul.f32 %v8653_v36, %v9944_v25  ;;  %v3659_v21 = vmul.f32 %v8653_v36, %v9945_v32  ;;  %v2780_v36 = vld [vmem:[%s9386_s4 + $0x1a0] sm:$0xff] }
 0x5b9   :  { %v4326_v63 = vadd.f32 %v4086_v50, %v3654_v31  ;;  %v4327_v38 = vadd.f32 %v4086_v50, %v3655_v33  ;;  %3965 = vperm.xlu0 %4878, %v2975_v0   ;;  %3930 = vperm.xlu1 %4879, %v2968_v30   ;;  %v8675_v46 = vpop.permute.xlu1 %3208  ;;  %v9940_v30 = vld [vmem:[#allocation7_spill] sm:$0xff]  ;;  %v5043_v28 = vpop.eup %5042  ;;  %v2212_v61 = vmul.f32 %v9941_v52, %v9941_v52  ;;  %v2116_v33 = vmul.f32 0.0051020407, %v9942_v18  ;;  %v2400_v18 = vld [vmem:[%s9385_s3 + $0x1c0] sm:$0xff] }
 0x5ba   :  { %v2498_v31 = vadd.f32 0.001, %v2306_v60  ;;  %v5045_v27 = vpop.eup %5044  ;;  %v2505_v26 = vadd.f32 0.001, %v2313_v23  ;;  %v2219_v58 = vmul.f32 %v9946_v53, %v9946_v53  ;;  %v2972_v40 = vsub.f32 %v2780_v36, %v2876_v10  ;;  %v9955_v36 = vld [vmem:[#allocation30_spill] sm:$0xff] }
 0x5bb   :  { %4518 = vst [vmem:[%s9387_s5 + $0x4f0] sm:$0xff] %v4326_v63  ;;  %4519 = vst.msk [vmem:[%s9387_s5 + $0x4f8] sm:$0xff] %vm853_vm0, %v4327_v38  ;;  %v9943_v63 = vld [vmem:[#allocation72_spill] sm:$0xff]  ;;  %v2693_v11 = vmul.f32 %v5045_v27, %v2405_v14  ;;  %v3572_v60 = vmul.f32 %v8675_v46, %v9947_v17  ;;  %v9953_v27 = vld [vmem:[#allocation11_spill] sm:$0xff] }
 0x5bc   :  { %v3886_v4 = vpop.permute.xlu0 %3885  ;;  %v2123_v38 = vmul.f32 0.0051020407, %v9943_v63  ;;  %5050 = vrsqrt.f32 %v2498_v31  ;;  %v9957_v17 = vld [vmem:[#allocation194_spill] sm:$0xff] }
 0x5bd   :  { %v4246_v51 = vadd.f32 %v3886_v4, %v3574_v6  ;;  %v4247_v19 = vadd.f32 %v3886_v4, %v3575_v54  ;;  %3303 = vperm.xlu0 %4878, %v2689_v39   ;;  %3268 = vperm.xlu1 %4879, %v2682_v59   ;;  %v8703_v8 = vpop.permute.xlu1 %3398  ;;  %v3645_v59 = vmul.f32 %v8619_v55, %v9940_v30  ;;  %v2398_v39 = vld [vmem:[%s9385_s3 + $0x1b0] sm:$0xff]  ;;  %5052 = vrsqrt.f32 %v2505_v26 }
 0x5be   :  { %v2883_v55 = vmul.f32 %v9910_v24, %v2691_v34  ;;  %v2787_v24 = vld [vmem:[%s9386_s4 + $0x1d8] sm:$0xff]  ;;  %v2686_v3 = vmul.f32 %v5043_v28, %v2398_v39  ;;  %v2308_v6 = vsub.f32 %v2116_v33, %v2212_v61  ;;  %v2315_v20 = vsub.f32 %v2123_v38, %v2219_v58 }
 0x5bf   :  { %4438 = vst [vmem:[%s9387_s5 + $0x270] sm:$0xff] %v4246_v51  ;;  %4439 = vst.msk [vmem:[%s9387_s5 + $0x278] sm:$0xff] %vm853_vm0, %v4247_v19  ;;  %v9948_v51 = vld [vmem:[#allocation102_spill] sm:$0xff]  ;;  %v2885_v31 = vmul.f32 %v9919_v12, %v2693_v11  ;;  %v2125_v39 = vmul.f32 0.0051020407, %v8240_v41  ;;  %v2407_v12 = vld [vmem:[%s9385_s3 + $0x1f8] sm:$0xff]  ;;  %v3649_v26 = vmul.f32 %v8703_v8, %v9953_v27 }
 0x5c0   :  { %v8716_v35 = vpop.permute.xlu0 %3433  ;;  %v2979_v4 = vsub.f32 %v2787_v24, %v2883_v55  ;;  %v3573_v19 = vmul.f32 %v8675_v46, %v9948_v51  ;;  %v2878_v30 = vmul.f32 %v2686_v3, %v9917_v56  ;;  %v2782_v46 = vld [vmem:[%s9386_s4 + $0x1b0] sm:$0xff]  ;;  %v2789_v56 = vld [vmem:[%s9386_s4 + $0x1e8] sm:$0xff]  ;;  %v9952_v55 = vld [vmem:[#allocation10_spill] sm:$0xff] }
 0x5c1   :  { %3975 = vperm.xlu0 %4878, %v2977_v5   ;;  %3940 = vperm.xlu1 %4879, %v2970_v57   ;;  %v4061_v0 = vpop.permute.xlu1 %4060  ;;  %v2500_v5 = vadd.f32 0.001, %v2308_v6  ;;  %v9950_v57 = vld [vmem:[#allocation52_spill] sm:$0xff]  ;;  %v3648_v10 = vmul.f32 %v8703_v8, %v9952_v55  ;;  %v3663_v6 = vmul.f32 %v8716_v35, %v9955_v36 }
 0x5c2   :  { %v4316_v1 = vadd.f32 %v4061_v0, %v3644_v47  ;;  %v4317_v50 = vadd.f32 %v4061_v0, %v3645_v59  ;;  %v2118_v44 = vmul.f32 0.0051020407, %v9950_v57  ;;  %v5047_v59 = vpop.eup %5046  ;;  %v2507_v0 = vadd.f32 0.001, %v2315_v20 }
 0x5c3   :  { %v5049_v33 = vpop.eup %5048  ;;  %5054 = vrsqrt.f32 %v2500_v5  ;;  %v2974_v25 = vsub.f32 %v2782_v46, %v2878_v30  ;;  %v2127_v57 = vmul.f32 0.0051020407, %v8445_v15  ;;  %v9959_v30 = vld [vmem:[#allocation111_spill] sm:$0xff] }
 0x5c4   :  { %4508 = vst [vmem:[%s9387_s5 + $0x4a0] sm:$0xff] %v4316_v1  ;;  %4509 = vst.msk [vmem:[%s9387_s5 + $0x4a8] sm:$0xff] %vm853_vm0, %v4317_v50  ;;  %v4096_v48 = vpop.permute.xlu0 %4095  ;;  %v9951_v1 = vld [vmem:[#allocation201_spill] sm:$0xff]  ;;  %v2695_v14 = vmul.f32 %v5049_v33, %v2407_v12  ;;  %5056 = vrsqrt.f32 %v2507_v0 }
 0x5c5   :  { %v4330_v42 = vadd.f32 %v4096_v48, %v3658_v29  ;;  %v4331_v54 = vadd.f32 %v4096_v48, %v3659_v21  ;;  %3313 = vperm.xlu0 %4878, %v2691_v34   ;;  %3278 = vperm.xlu1 %4879, %v2684_v37   ;;  %v8749_v62 = vpop.permute.xlu1 %3408  ;;  %v9949_v37 = vld [vmem:[#allocation64_spill] sm:$0xff]  ;;  %v2221_v50 = vmul.f32 %v9951_v1, %v9951_v1 }
 0x5c6   :  { %v2214_v23 = vmul.f32 %v9949_v37, %v9949_v37  ;;  %v2688_v29 = vmul.f32 %v5047_v59, %v2400_v18  ;;  %v2981_v21 = vsub.f32 %v2789_v56, %v2885_v31  ;;  %v9954_v48 = vld [vmem:[#allocation28_spill] sm:$0xff]  ;;  %v2887_v51 = vmul.f32 %v9926_v7, %v2695_v14  ;;  %v2409_v31 = vld [vmem:[%s9385_s3 + $0x208] sm:$0xff] }
 0x5c7   :  { %4522 = vst [vmem:[%s9387_s5 + $0x510] sm:$0xff] %v4330_v42  ;;  %4523 = vst.msk [vmem:[%s9387_s5 + $0x518] sm:$0xff] %vm853_vm0, %v4331_v54  ;;  %v2317_v58 = vsub.f32 %v2125_v39, %v2221_v50  ;;  %v3662_v24 = vmul.f32 %v8716_v35, %v9954_v48 }
 0x5c8   :  { %v3224_v34 = vpop.permute.xlu0 %3223  ;;  %v2310_v63 = vsub.f32 %v2118_v44, %v2214_v23  ;;  %v2402_v23 = vld [vmem:[%s9385_s3 + $0x1d0] sm:$0xff]  ;;  %v9958_v44 = vld [vmem:[#allocation110_spill] sm:$0xff] }
 0x5c9   :  { %3985 = vperm.xlu0 %4878, %v2979_v4   ;;  %3950 = vperm.xlu1 %4879, %v2972_v40   ;;  %v3881_v47 = vpop.permute.xlu1 %3880  ;;  %v5051_v4 = vpop.eup %5050  ;;  %v9956_v40 = vld [vmem:[#allocation198_spill] sm:$0xff]  ;;  %v2509_v5 = vadd.f32 0.001, %v2317_v58  ;;  %v3579_v59 = vmul.f32 %v3224_v34, %v9959_v30  ;;  %v9964_v58 = vld [vmem:[#allocation112_spill] sm:$0xff] }
 0x5ca   :  { %v4244_v28 = vadd.f32 %v3881_v47, %v3572_v60  ;;  %v4245_v61 = vadd.f32 %v3881_v47, %v3573_v19  ;;  %v2502_v42 = vadd.f32 0.001, %v2310_v63  ;;  %v2216_v35 = vmul.f32 %v9956_v40, %v9956_v40  ;;  %v5053_v7 = vpop.eup %5052  ;;  %v9967_v30 = vld [vmem:[#allocation106_spill] sm:$0xff] }
 0x5cb   :  { %v2120_v60 = vmul.f32 0.0051020407, %v9957_v17  ;;  %v2880_v19 = vmul.f32 %v2688_v29, %v9925_v13  ;;  %v3578_v47 = vmul.f32 %v3224_v34, %v9958_v44  ;;  %v2784_v13 = vld [vmem:[%s9386_s4 + $0x1c0] sm:$0xff]  ;;  %v2791_v34 = vld [vmem:[%s9386_s4 + $0x1f8] sm:$0xff]  ;;  %v2690_v0 = vmul.f32 %v5051_v4, %v2402_v23  ;;  %v2793_v17 = vld [vmem:[%s9386_s4 + $0x208] sm:$0xff] }
 0x5cc   :  { %4436 = vst [vmem:[%s9387_s5 + $0x260] sm:$0xff] %v4244_v28  ;;  %4437 = vst.msk [vmem:[%s9387_s5 + $0x268] sm:$0xff] %vm853_vm0, %v4245_v61  ;;  %v8793_v41 = vpop.permute.xlu0 %3443  ;;  %v9960_v28 = vld [vmem:[#allocation203_spill] sm:$0xff]  ;;  %5058 = vrsqrt.f32 %v2502_v42  ;;  %v2983_v50 = vsub.f32 %v2791_v34, %v2887_v51  ;;  %v2697_v55 = vmul.f32 %v5053_v7, %v2409_v31  ;;  %v2122_v48 = vmul.f32 0.0051020407, %v9964_v58 }
 0x5cd   :  { %3323 = vperm.xlu0 %4878, %v2693_v11   ;;  %3288 = vperm.xlu1 %4879, %v2686_v3   ;;  %v4071_v38 = vpop.permute.xlu1 %4070  ;;  %v2223_v15 = vmul.f32 %v9960_v28, %v9960_v28  ;;  %v2312_v39 = vsub.f32 %v2120_v60, %v2216_v35  ;;  %v2976_v56 = vsub.f32 %v2784_v13, %v2880_v19  ;;  %5060 = vrsqrt.f32 %v2509_v5  ;;  %v9968_v13 = vld [vmem:[#allocation108_spill] sm:$0xff] }
 0x5ce   :  { %v4320_v32 = vadd.f32 %v4071_v38, %v3648_v10  ;;  %v4321_v8 = vadd.f32 %v4071_v38, %v3649_v26  ;;  %v9961_v10 = vld [vmem:[#allocation14_spill] sm:$0xff]  ;;  %v9962_v26 = vld [vmem:[#allocation15_spill] sm:$0xff]  ;;  %v2889_v4 = vmul.f32 %v9935_v45, %v2697_v55  ;;  %v2411_v45 = vld [vmem:[%s9385_s3 + $0x218] sm:$0xff] }
 0x5cf   :  { %v2319_v12 = vsub.f32 %v2127_v57, %v2223_v15  ;;  %v3652_v27 = vmul.f32 %v8749_v62, %v9961_v10  ;;  %v3653_v63 = vmul.f32 %v8749_v62, %v9962_v26  ;;  %v2404_v62 = vld [vmem:[%s9385_s3 + $0x1e0] sm:$0xff] }
 0x5d0   :  { %4512 = vst [vmem:[%s9387_s5 + $0x4c0] sm:$0xff] %v4320_v32  ;;  %4513 = vst.msk [vmem:[%s9387_s5 + $0x4c8] sm:$0xff] %vm853_vm0, %v4321_v8  ;;  %v4106_v3 = vpop.permute.xlu0 %4105  ;;  %v2882_v8 = vmul.f32 %v2690_v0, %v9933_v49  ;;  %v2985_v57 = vsub.f32 %v2793_v17, %v2889_v4  ;;  %v9970_v10 = vld [vmem:[#allocation150_spill] sm:$0xff] }
 0x5d1   :  { %v4334_v54 = vadd.f32 %v4106_v3, %v3662_v24  ;;  %v4335_v11 = vadd.f32 %v4106_v3, %v3663_v6  ;;  %3995 = vperm.xlu0 %4878, %v2981_v21   ;;  %3960 = vperm.xlu1 %4879, %v2974_v25   ;;  %v8806_v20 = vpop.permute.xlu1 %3218  ;;  %v9963_v25 = vld [vmem:[#allocation148_spill] sm:$0xff]  ;;  %v5055_v21 = vpop.eup %5054  ;;  %v2511_v6 = vadd.f32 0.001, %v2319_v12  ;;  %v9965_v3 = vld [vmem:[#allocation35_spill] sm:$0xff]  ;;  %v2788_v12 = vld [vmem:[%s9386_s4 + $0x1e0] sm:$0xff] }
 0x5d2   :  { %v3666_v42 = vmul.f32 %v8793_v41, %v9965_v3  ;;  %v5057_v49 = vpop.eup %5056  ;;  %v2692_v23 = vmul.f32 %v5055_v21, %v2404_v62  ;;  %v3577_v7 = vmul.f32 %v8806_v20, %v9968_v13  ;;  %v9977_v13 = vld [vmem:[#allocation68_spill] sm:$0xff] }
 0x5d3   :  { %4526 = vst [vmem:[%s9387_s5 + $0x530] sm:$0xff] %v4334_v54  ;;  %4527 = vst.msk [vmem:[%s9387_s5 + $0x538] sm:$0xff] %vm853_vm0, %v4335_v11  ;;  %v9966_v54 = vld [vmem:[#allocation37_spill] sm:$0xff] }
 0x5d4   :  { %v3896_v61 = vpop.permute.xlu0 %3895  ;;  %v3667_v11 = vmul.f32 %v8793_v41, %v9966_v54  ;;  %v2786_v41 = vld [vmem:[%s9386_s4 + $0x1d0] sm:$0xff]  ;;  %v2884_v34 = vmul.f32 %v2692_v23, %v9941_v52  ;;  %v2220_v52 = vmul.f32 %v9970_v10, %v9970_v10 }
 0x5d5   :  { %v4250_v46 = vadd.f32 %v3896_v61, %v3578_v47  ;;  %v4251_v18 = vadd.f32 %v3896_v61, %v3579_v59  ;;  %3333 = vperm.xlu0 %4878, %v2695_v14   ;;  %3298 = vperm.xlu1 %4879, %v2688_v29   ;;  %v8837_v33 = vpop.permute.xlu1 %3418  ;;  %v2218_v29 = vmul.f32 %v9963_v25, %v9963_v25  ;;  %v2504_v14 = vadd.f32 0.001, %v2312_v39 }
 0x5d6   :  { %v2978_v44 = vsub.f32 %v2786_v41, %v2882_v8  ;;  %v2699_v47 = vmul.f32 %v5057_v49, %v2411_v45  ;;  %v3576_v59 = vmul.f32 %v8806_v20, %v9967_v30  ;;  %v2406_v20 = vld [vmem:[%s9385_s3 + $0x1f0] sm:$0xff]  ;;  %v2413_v8 = vld [vmem:[%s9385_s3 + $0x228] sm:$0xff]  ;;  %v2980_v21 = vsub.f32 %v2788_v12, %v2884_v34  ;;  %v9979_v12 = vld [vmem:[#allocation26_spill] sm:$0xff] }
 0x5d7   :  { %4442 = vst [vmem:[%s9387_s5 + $0x290] sm:$0xff] %v4250_v46  ;;  %4443 = vst.msk [vmem:[%s9387_s5 + $0x298] sm:$0xff] %vm853_vm0, %v4251_v18  ;;  %5062 = vrsqrt.f32 %v2504_v14  ;;  %v2314_v5 = vsub.f32 %v2122_v48, %v2218_v29  ;;  %v9969_v18 = vld [vmem:[#allocation74_spill] sm:$0xff]  ;;  %v2126_v45 = vmul.f32 0.0051020407, %v8316_v16  ;;  %v2797_v30 = vld [vmem:[%s9386_s4 + $0x228] sm:$0xff] }
 0x5d8   :  { %v8850_v38 = vpop.permute.xlu0 %3453  ;;  %5064 = vrsqrt.f32 %v2511_v6  ;;  %v9974_v6 = vld [vmem:[#allocation45_spill] sm:$0xff]  ;;  %v2408_v16 = vld [vmem:[%s9385_s3 + $0x200] sm:$0xff] }
 0x5d9   :  { %4005 = vperm.xlu0 %4878, %v2983_v50   ;;  %3970 = vperm.xlu1 %4879, %v2976_v56   ;;  %v4081_v32 = vpop.permute.xlu1 %4080  ;;  %v5059_v31 = vpop.eup %5058  ;;  %v2506_v46 = vadd.f32 0.001, %v2314_v5  ;;  %v2891_v50 = vmul.f32 %v9946_v53, %v2699_v47  ;;  %v3671_v3 = vmul.f32 %v8850_v38, %v9974_v6 }
 0x5da   :  { %v4324_v24 = vadd.f32 %v4081_v32, %v3652_v27  ;;  %v4325_v36 = vadd.f32 %v4081_v32, %v3653_v63  ;;  %v9971_v27 = vld [vmem:[#allocation18_spill] sm:$0xff]  ;;  %v9972_v63 = vld [vmem:[#allocation19_spill] sm:$0xff]  ;;  %v2795_v32 = vld [vmem:[%s9386_s4 + $0x218] sm:$0xff]  ;;  %v2694_v14 = vmul.f32 %v5059_v31, %v2406_v20 }
 0x5db   :  { %v3656_v26 = vmul.f32 %v8837_v33, %v9971_v27  ;;  %v3657_v29 = vmul.f32 %v8837_v33, %v9972_v63  ;;  %5066 = vrsqrt.f32 %v2506_v46 }
 0x5dc   :  { %4516 = vst [vmem:[%s9387_s5 + $0x4e0] sm:$0xff] %v4324_v24  ;;  %4517 = vst.msk [vmem:[%s9387_s5 + $0x4e8] sm:$0xff] %vm853_vm0, %v4325_v36  ;;  %v4116_v35 = vpop.permute.xlu0 %4115  ;;  %v9973_v36 = vld [vmem:[#allocation43_spill] sm:$0xff] }
 0x5dd   :  { %v4338_v60 = vadd.f32 %v4116_v35, %v3666_v42  ;;  %v4339_v51 = vadd.f32 %v4116_v35, %v3667_v11  ;;  %3343 = vperm.xlu0 %4878, %v2697_v55   ;;  %3308 = vperm.xlu1 %4879, %v2690_v0   ;;  %v8880_v19 = vpop.permute.xlu1 %3428  ;;  %v2124_v0 = vmul.f32 0.0051020407, %v9969_v18  ;;  %v5061_v55 = vpop.eup %5060  ;;  %v3670_v62 = vmul.f32 %v8850_v38, %v9973_v36 }
 0x5de   :  { %v2987_v42 = vsub.f32 %v2795_v32, %v2891_v50  ;;  %v2701_v54 = vmul.f32 %v5061_v55, %v2413_v8  ;;  %v2886_v38 = vmul.f32 %v2694_v14, %v9949_v37  ;;  %v2790_v37 = vld [vmem:[%s9386_s4 + $0x1f0] sm:$0xff]  ;;  %v3661_v20 = vmul.f32 %v8880_v19, %v9979_v12  ;;  %v9980_v32 = vld [vmem:[#allocation51_spill] sm:$0xff] }
 0x5df   :  { %4530 = vst [vmem:[%s9387_s5 + $0x550] sm:$0xff] %v4338_v60  ;;  %4531 = vst.msk [vmem:[%s9387_s5 + $0x558] sm:$0xff] %vm853_vm0, %v4339_v51  ;;  %v2316_v58 = vsub.f32 %v2124_v0, %v2220_v52  ;;  %v9975_v60 = vld [vmem:[#allocation125_spill] sm:$0xff]  ;;  %v2919_v36 = vmul.f32 %v8313_v43, %v8430_v22  ;;  %v9983_v22 = vld [vmem:[#allocation122_spill] sm:$0xff] }
 0x5e0   :  { %v3234_v15 = vpop.permute.xlu0 %3233  ;;  %v2982_v34 = vsub.f32 %v2790_v37, %v2886_v38  ;;  %v2794_v37 = vld [vmem:[%s9386_s4 + $0x210] sm:$0xff] }
 0x5e1   :  { %4015 = vperm.xlu0 %4878, %v2985_v57   ;;  %3980 = vperm.xlu1 %4879, %v2978_v44   ;;  %v3891_v61 = vpop.permute.xlu1 %3890  ;;  %v2508_v17 = vadd.f32 0.001, %v2316_v58  ;;  %v3582_v51 = vmul.f32 %v3234_v15, %v9975_v60  ;;  %v2893_v57 = vmul.f32 %v9951_v1, %v2701_v54  ;;  %v2222_v1 = vmul.f32 %v9977_v13, %v9977_v13 }
 0x5e2   :  { %v4248_v39 = vadd.f32 %v3891_v61, %v3576_v59  ;;  %v4249_v56 = vadd.f32 %v3891_v61, %v3577_v7  ;;  %v2415_v59 = vld [vmem:[%s9385_s3 + $0x238] sm:$0xff] }
 0x5e3   :  { %5068 = vrsqrt.f32 %v2508_v17  ;;  %v2318_v46 = vsub.f32 %v2126_v45, %v2222_v1  ;;  %v2989_v18 = vsub.f32 %v2797_v30, %v2893_v57  ;;  %v9986_v30 = vld [vmem:[#allocation59_spill] sm:$0xff]  ;;  %v9987_v1 = vld [vmem:[#allocation61_spill] sm:$0xff] }
 0x5e4   :  { %4440 = vst [vmem:[%s9387_s5 + $0x280] sm:$0xff] %v4248_v39  ;;  %4441 = vst.msk [vmem:[%s9387_s5 + $0x288] sm:$0xff] %vm853_vm0, %v4249_v56  ;;  %v8915_v53 = vpop.permute.xlu0 %3463  ;;  %v5063_v41 = vpop.eup %5062  ;;  %v9978_v39 = vld [vmem:[#allocation24_spill] sm:$0xff] }
 0x5e5   :  { %3353 = vperm.xlu0 %4878, %v2699_v47   ;;  %3318 = vperm.xlu1 %4879, %v2692_v23   ;;  %v4091_v33 = vpop.permute.xlu1 %4090  ;;  %v9976_v23 = vld [vmem:[#allocation127_spill] sm:$0xff]  ;;  %v5065_v44 = vpop.eup %5064  ;;  %v2696_v31 = vmul.f32 %v5063_v41, %v2408_v16  ;;  %v3660_v56 = vmul.f32 %v8880_v19, %v9978_v39  ;;  %v3674_v8 = vmul.f32 %v8915_v53, %v9980_v32  ;;  %v2799_v19 = vld [vmem:[%s9386_s4 + $0x238] sm:$0xff] }
 0x5e6   :  { %v4328_v48 = vadd.f32 %v4091_v33, %v3656_v26  ;;  %v4329_v24 = vadd.f32 %v4091_v33, %v3657_v29  ;;  %v3583_v5 = vmul.f32 %v3234_v15, %v9976_v23  ;;  %v2703_v0 = vmul.f32 %v5065_v44, %v2415_v59  ;;  %v9981_v33 = vld [vmem:[#allocation53_spill] sm:$0xff] }
 0x5e7   :  { %v2888_v26 = vmul.f32 %v2696_v31, %v9956_v40  ;;  %v2510_v29 = vadd.f32 0.001, %v2318_v46 }
 0x5e8   :  { %4520 = vst [vmem:[%s9387_s5 + $0x500] sm:$0xff] %v4328_v48  ;;  %4521 = vst.msk [vmem:[%s9387_s5 + $0x508] sm:$0xff] %vm853_vm0, %v4329_v24  ;;  %v4126_v11 = vpop.permute.xlu0 %4125  ;;  %v5067_v63 = vpop.eup %5066 }
 0x5e9   :  { %v4342_v4 = vadd.f32 %v4126_v11, %v3670_v62  ;;  %v4343_v49 = vadd.f32 %v4126_v11, %v3671_v3  ;;  %4025 = vperm.xlu0 %4878, %v2987_v42   ;;  %3990 = vperm.xlu1 %4879, %v2980_v21   ;;  %v8934_v35 = vpop.permute.xlu1 %3228  ;;  %v3675_v21 = vmul.f32 %v8915_v53, %v9981_v33  ;;  %v2792_v53 = vld [vmem:[%s9386_s4 + $0x200] sm:$0xff]  ;;  %5070 = vrsqrt.f32 %v2510_v29  ;;  %v2823_v42 = vld [vmem:[%s9386_s4 + $0x2f8] sm:$0xff] }
 0x5ea   :  { %v2984_v6 = vsub.f32 %v2792_v53, %v2888_v26  ;;  %v3581_v11 = vmul.f32 %v8934_v35, %v9983_v22  ;;  %v3015_v41 = vsub.f32 %v2823_v42, %v2919_v36  ;;  %v9993_v36 = vld [vmem:[#allocation69_spill] sm:$0xff] }
 0x5eb   :  { %4534 = vst [vmem:[%s9387_s5 + $0x570] sm:$0xff] %v4342_v4  ;;  %4535 = vst.msk [vmem:[%s9387_s5 + $0x578] sm:$0xff] %vm853_vm0, %v4343_v49 }
 0x5ec   :  { %v3906_v47 = vpop.permute.xlu0 %3905 }
 0x5ed   :  { %v4254_v7 = vadd.f32 %v3906_v47, %v3582_v51  ;;  %v4255_v15 = vadd.f32 %v3906_v47, %v3583_v5  ;;  %3363 = vperm.xlu0 %4878, %v2701_v54   ;;  %3328 = vperm.xlu1 %4879, %v2694_v14   ;;  %v3439_v61 = vpop.permute.xlu1 %3438  ;;  %v2895_v14 = vmul.f32 %v9960_v28, %v2703_v0  ;;  %v2410_v28 = vld [vmem:[%s9385_s3 + $0x210] sm:$0xff]  ;;  %v9982_v54 = vld [vmem:[#allocation121_spill] sm:$0xff] }
 0x5ee   :  { %v2698_v3 = vmul.f32 %v5067_v63, %v2410_v28  ;;  %v3580_v43 = vmul.f32 %v8934_v35, %v9982_v54  ;;  %v9984_v51 = vld [vmem:[#allocation32_spill] sm:$0xff]  ;;  %v9985_v5 = vld [vmem:[#allocation33_spill] sm:$0xff] }
 0x5ef   :  { %4446 = vst [vmem:[%s9387_s5 + $0x2b0] sm:$0xff] %v4254_v7  ;;  %4447 = vst.msk [vmem:[%s9387_s5 + $0x2b8] sm:$0xff] %vm853_vm0, %v4255_v15  ;;  %v2991_v62 = vsub.f32 %v2799_v19, %v2895_v14  ;;  %v3664_v23 = vmul.f32 %v3439_v61, %v9984_v51  ;;  %v3665_v57 = vmul.f32 %v3439_v61, %v9985_v5  ;;  %v9996_v51 = vld [vmem:[#allocation159_spill] sm:$0xff]  ;;  %v9997_v5 = vld [vmem:[#allocation160_spill] sm:$0xff] }
 0x5f0   :  { %v3474_v50 = vpop.permute.xlu0 %3473  ;;  %v2890_v45 = vmul.f32 %v2698_v3, %v9963_v25  ;;  %v5069_v60 = vpop.eup %5068  ;;  %v2412_v25 = vld [vmem:[%s9385_s3 + $0x220] sm:$0xff] }
 0x5f1   :  { %4035 = vperm.xlu0 %4878, %v2989_v18   ;;  %4000 = vperm.xlu1 %4879, %v2982_v34   ;;  %v4101_v55 = vpop.permute.xlu1 %4100  ;;  %v3678_v59 = vmul.f32 %v3474_v50, %v9986_v30  ;;  %v3679_v7 = vmul.f32 %v3474_v50, %v9987_v1  ;;  %v2700_v61 = vmul.f32 %v5069_v60, %v2412_v25  ;;  %v9999_v25 = vld [vmem:[#allocation49_spill] sm:$0xff] }
 0x5f2   :  { %v4332_v52 = vadd.f32 %v4101_v55, %v3660_v56  ;;  %v4333_v27 = vadd.f32 %v4101_v55, %v3661_v20  ;;  %v2986_v15 = vsub.f32 %v2794_v37, %v2890_v45  ;;  %v9989_v56 = vld [vmem:[#allocation146_spill] sm:$0xff] }
 0x5f3   :  { %v2892_v20 = vmul.f32 %v2700_v61, %v9970_v10 }
 0x5f4   :  { %4524 = vst [vmem:[%s9387_s5 + $0x520] sm:$0xff] %v4332_v52  ;;  %4525 = vst.msk [vmem:[%s9387_s5 + $0x528] sm:$0xff] %vm853_vm0, %v4333_v27  ;;  %v4136_v40 = vpop.permute.xlu0 %4135  ;;  %v2796_v52 = vld [vmem:[%s9386_s4 + $0x220] sm:$0xff]  ;;  %v2414_v27 = vld [vmem:[%s9385_s3 + $0x230] sm:$0xff] }
 0x5f5   :  { %v4346_v58 = vadd.f32 %v4136_v40, %v3674_v8  ;;  %v4347_v48 = vadd.f32 %v4136_v40, %v3675_v21  ;;  %3373 = vperm.xlu0 %4878, %v2703_v0   ;;  %3338 = vperm.xlu1 %4879, %v2696_v31   ;;  %v3449_v24 = vpop.permute.xlu1 %3448  ;;  %v9988_v0 = vld [vmem:[#allocation143_spill] sm:$0xff]  ;;  %v2988_v10 = vsub.f32 %v2796_v52, %v2892_v20  ;;  %v9991_v21 = vld [vmem:[#allocation41_spill] sm:$0xff] }
 0x5f6   :  { %v5071_v50 = vpop.eup %5070  ;;  %v9990_v8 = vld [vmem:[#allocation39_spill] sm:$0xff]  ;;  %v3669_v14 = vmul.f32 %v3449_v24, %v9991_v21 }
 0x5f7   :  { %4538 = vst [vmem:[%s9387_s5 + $0x590] sm:$0xff] %v4346_v58  ;;  %4539 = vst.msk [vmem:[%s9387_s5 + $0x598] sm:$0xff] %vm853_vm0, %v4347_v48  ;;  %v2702_v32 = vmul.f32 %v5071_v50, %v2414_v27  ;;  %v3668_v33 = vmul.f32 %v3449_v24, %v9990_v8  ;;  %v9992_v58 = vld [vmem:[#allocation67_spill] sm:$0xff]  ;;  %v10005_v8 = vld [vmem:[#allocation168_spill] sm:$0xff] }
 0x5f8   :  { %v3244_v4 = vpop.permute.xlu0 %3243  ;;  %v10002_v20 = vld [vmem:[#allocation55_spill] sm:$0xff] }
 0x5f9   :  { %4045 = vperm.xlu0 %4878, %v2991_v62   ;;  %4010 = vperm.xlu1 %4879, %v2984_v6   ;;  %v3901_v49 = vpop.permute.xlu1 %3900  ;;  %v3586_v39 = vmul.f32 %v3244_v4, %v9988_v0  ;;  %v3587_v12 = vmul.f32 %v3244_v4, %v9989_v56  ;;  %v2894_v6 = vmul.f32 %v2702_v32, %v9977_v13  ;;  %v9994_v4 = vld [vmem:[#allocation133_spill] sm:$0xff] }
 0x5fa   :  { %v4252_v17 = vadd.f32 %v3901_v49, %v3580_v43  ;;  %v4253_v38 = vadd.f32 %v3901_v49, %v3581_v11  ;;  %v2918_v13 = vmul.f32 %v8577_v2, %v8416_v9  ;;  %v2822_v11 = vld [vmem:[%s9386_s4 + $0x2f0] sm:$0xff] }
 0x5fc   :  { %4444 = vst [vmem:[%s9387_s5 + $0x2a0] sm:$0xff] %v4252_v17  ;;  %4445 = vst.msk [vmem:[%s9387_s5 + $0x2a8] sm:$0xff] %vm853_vm0, %v4253_v38  ;;  %v3484_v35 = vpop.permute.xlu0 %3483  ;;  %v9995_v17 = vld [vmem:[#allocation136_spill] sm:$0xff]  ;;  %v3014_v60 = vsub.f32 %v2822_v11, %v2918_v13 }
 0x5fd   :  { %4165 = vperm.xlu0 %4878, %v3015_v41   ;;  %3348 = vperm.xlu1 %4879, %v2698_v3   ;;  %v4111_v16 = vpop.permute.xlu1 %4110  ;;  %v3682_v48 = vmul.f32 %v3484_v35, %v9992_v58  ;;  %v3683_v62 = vmul.f32 %v3484_v35, %v9993_v36  ;;  %v2798_v3 = vld [vmem:[%s9386_s4 + $0x230] sm:$0xff]  ;;  %v9998_v35 = vld [vmem:[#allocation47_spill] sm:$0xff] }
 0x5fe   :  { %v4336_v44 = vadd.f32 %v4111_v16, %v3664_v23  ;;  %v4337_v47 = vadd.f32 %v4111_v16, %v3665_v57  ;;  %v2990_v22 = vsub.f32 %v2798_v3, %v2894_v6 }
 0x600   :  { %4528 = vst [vmem:[%s9387_s5 + $0x540] sm:$0xff] %v4336_v44  ;;  %4529 = vst.msk [vmem:[%s9387_s5 + $0x548] sm:$0xff] %vm853_vm0, %v4337_v47  ;;  %v4146_v34 = vpop.permute.xlu0 %4145 }
 0x601   :  { %v4350_v31 = vadd.f32 %v4146_v34, %v3678_v59  ;;  %v4351_v46 = vadd.f32 %v4146_v34, %v3679_v7  ;;  %4020 = vperm.xlu1 %4879, %v2986_v15   ;;  %v3239_v18 = vpop.permute.xlu1 %3238  ;;  %v10000_v34 = vld [vmem:[#allocation163_spill] sm:$0xff] }
 0x602   :  { %v3584_v49 = vmul.f32 %v3239_v18, %v9994_v4  ;;  %v3585_v38 = vmul.f32 %v3239_v18, %v9995_v17  ;;  %v10011_v4 = vld [vmem:[#allocation65_spill] sm:$0xff] }
 0x603   :  { %4542 = vst [vmem:[%s9387_s5 + $0x5b0] sm:$0xff] %v4350_v31  ;;  %4543 = vst.msk [vmem:[%s9387_s5 + $0x5b8] sm:$0xff] %vm853_vm0, %v4351_v46  ;;  %v10001_v46 = vld [vmem:[#allocation164_spill] sm:$0xff] }
 0x604   :  { %v3916_v55 = vpop.permute.xlu0 %3915 }
 0x605   :  { %v4258_v26 = vadd.f32 %v3916_v55, %v3586_v39  ;;  %v4259_v63 = vadd.f32 %v3916_v55, %v3587_v12  ;;  %3358 = vperm.xlu1 %4879, %v2700_v61   ;;  %v3459_v29 = vpop.permute.xlu1 %3458  ;;  %v10003_v55 = vld [vmem:[#allocation57_spill] sm:$0xff] }
 0x606   :  { %v3672_v37 = vmul.f32 %v3459_v29, %v9998_v35  ;;  %v3673_v16 = vmul.f32 %v3459_v29, %v9999_v25 }
 0x607   :  { %4450 = vst [vmem:[%s9387_s5 + $0x2d0] sm:$0xff] %v4258_v26  ;;  %4451 = vst.msk [vmem:[%s9387_s5 + $0x2d8] sm:$0xff] %vm853_vm0, %v4259_v63 }
 0x608   :  { %v9061_v40 = vpop.permute.xlu0 %3493 }
 0x609   :  { %4030 = vperm.xlu1 %4879, %v2988_v10   ;;  %v4121_v19 = vpop.permute.xlu1 %4120  ;;  %v10004_v10 = vld [vmem:[#allocation167_spill] sm:$0xff] }
 0x60a   :  { %v4340_v53 = vadd.f32 %v4121_v19, %v3668_v33  ;;  %v4341_v28 = vadd.f32 %v4121_v19, %v3669_v14 }
 0x60c   :  { %4532 = vst [vmem:[%s9387_s5 + $0x560] sm:$0xff] %v4340_v53  ;;  %4533 = vst.msk [vmem:[%s9387_s5 + $0x568] sm:$0xff] %vm853_vm0, %v4341_v28  ;;  %v4156_v24 = vpop.permute.xlu0 %4155  ;;  %v10006_v28 = vld [vmem:[#allocation156_spill] sm:$0xff] }
 0x60d   :  { %v4354_v42 = vadd.f32 %v4156_v24, %v3682_v48  ;;  %v4355_v54 = vadd.f32 %v4156_v24, %v3683_v62  ;;  %3368 = vperm.xlu1 %4879, %v2702_v32   ;;  %v3469_v43 = vpop.permute.xlu1 %3468  ;;  %v10007_v48 = vld [vmem:[#allocation158_spill] sm:$0xff] }
 0x60e   :  { %v3676_v50 = vmul.f32 %v3469_v43, %v10002_v20  ;;  %v3677_v52 = vmul.f32 %v3469_v43, %v10003_v55  ;;  %v10009_v43 = vld [vmem:[#allocation172_spill] sm:$0xff] }
 0x60f   :  { %4546 = vst [vmem:[%s9387_s5 + $0x5d0] sm:$0xff] %v4354_v42  ;;  %4547 = vst.msk [vmem:[%s9387_s5 + $0x5d8] sm:$0xff] %vm853_vm0, %v4355_v54  ;;  %v10008_v42 = vld [vmem:[#allocation171_spill] sm:$0xff] }
 0x610   :  { %v3254_v41 = vpop.permute.xlu0 %3253 }
 0x611   :  { %4040 = vperm.xlu1 %4879, %v2990_v22   ;;  %v3911_v9 = vpop.permute.xlu1 %3910  ;;  %v3590_v23 = vmul.f32 %v3254_v41, %v9996_v51  ;;  %v3591_v57 = vmul.f32 %v3254_v41, %v9997_v5  ;;  %v10010_v22 = vld [vmem:[#allocation63_spill] sm:$0xff] }
 0x612   :  { %v4256_v2 = vadd.f32 %v3911_v9, %v3584_v49  ;;  %v4257_v45 = vadd.f32 %v3911_v9, %v3585_v38 }
 0x614   :  { %4448 = vst [vmem:[%s9387_s5 + $0x2c0] sm:$0xff] %v4256_v2  ;;  %4449 = vst.msk [vmem:[%s9387_s5 + $0x2c8] sm:$0xff] %vm853_vm0, %v4257_v45  ;;  %v3926_v44 = vpop.permute.xlu0 %3925 }
 0x615   :  { %v4262_v47 = vadd.f32 %v3926_v44, %v3590_v23  ;;  %v4263_v30 = vadd.f32 %v3926_v44, %v3591_v57  ;;  %4160 = vperm.xlu1 %4879, %v3014_v60   ;;  %v4131_v59 = vpop.permute.xlu1 %4130  ;;  %v10012_v23 = vld [vmem:[#allocation175_spill] sm:$0xff]  ;;  %v10013_v57 = vld [vmem:[#allocation177_spill] sm:$0xff] }
 0x616   :  { %v4344_v1 = vadd.f32 %v4131_v59, %v3672_v37  ;;  %v4345_v7 = vadd.f32 %v4131_v59, %v3673_v16  ;;  %v10014_v37 = vld [vmem:[#allocation161_spill] sm:$0xff]  ;;  %v10015_v16 = vld [vmem:[#allocation162_spill] sm:$0xff] }
 0x617   :  { %4454 = vst [vmem:[%s9387_s5 + $0x2f0] sm:$0xff] %v4262_v47  ;;  %4455 = vst.msk [vmem:[%s9387_s5 + $0x2f8] sm:$0xff] %vm853_vm0, %v4263_v30 }
 0x618   :  { %4536 = vst [vmem:[%s9387_s5 + $0x580] sm:$0xff] %v4344_v1  ;;  %4537 = vst.msk [vmem:[%s9387_s5 + $0x588] sm:$0xff] %vm853_vm0, %v4345_v7  ;;  %v3264_v15 = vpop.permute.xlu0 %3263 }
 0x619   :  { %v3249_v61 = vpop.permute.xlu1 %3248  ;;  %v3594_v31 = vmul.f32 %v3264_v15, %v10000_v34  ;;  %v3595_v18 = vmul.f32 %v3264_v15, %v10001_v46 }
 0x61a   :  { %v3588_v58 = vmul.f32 %v3249_v61, %v10006_v28  ;;  %v3589_v36 = vmul.f32 %v3249_v61, %v10007_v48  ;;  %v10023_v28 = vld [vmem:[#allocation170_spill] sm:$0xff] }
 0x61c   :  { %v3936_v0 = vpop.permute.xlu0 %3935 }
 0x61d   :  { %v4266_v39 = vadd.f32 %v3936_v0, %v3594_v31  ;;  %v4267_v56 = vadd.f32 %v3936_v0, %v3595_v18  ;;  %v3479_v12 = vpop.permute.xlu1 %3478  ;;  %v10016_v31 = vld [vmem:[#allocation180_spill] sm:$0xff]  ;;  %v10017_v18 = vld [vmem:[#allocation182_spill] sm:$0xff] }
 0x61e   :  { %v3680_v11 = vmul.f32 %v3479_v12, %v10010_v22  ;;  %v3681_v49 = vmul.f32 %v3479_v12, %v10011_v4  ;;  %v10019_v12 = vld [vmem:[#allocation166_spill] sm:$0xff]  ;;  %v10026_v4 = vld [vmem:[#allocation173_spill] sm:$0xff] }
 0x61f   :  { %4458 = vst [vmem:[%s9387_s5 + $0x310] sm:$0xff] %v4266_v39  ;;  %4459 = vst.msk [vmem:[%s9387_s5 + $0x318] sm:$0xff] %vm853_vm0, %v4267_v56  ;;  %v10018_v39 = vld [vmem:[#allocation165_spill] sm:$0xff]  ;;  %v10025_v22 = vld [vmem:[#allocation186_spill] sm:$0xff] }
 0x620   :  { %v3274_v27 = vpop.permute.xlu0 %3273 }
 0x621   :  { %v4141_v26 = vpop.permute.xlu1 %4140  ;;  %v3598_v32 = vmul.f32 %v3274_v27, %v10004_v10  ;;  %v3599_v33 = vmul.f32 %v3274_v27, %v10005_v8 }
 0x622   :  { %v4348_v63 = vadd.f32 %v4141_v26, %v3676_v50  ;;  %v4349_v29 = vadd.f32 %v4141_v26, %v3677_v52 }
 0x624   :  { %4540 = vst [vmem:[%s9387_s5 + $0x5a0] sm:$0xff] %v4348_v63  ;;  %4541 = vst.msk [vmem:[%s9387_s5 + $0x5a8] sm:$0xff] %vm853_vm0, %v4349_v29  ;;  %v3946_v21 = vpop.permute.xlu0 %3945 }
 0x625   :  { %v4270_v14 = vadd.f32 %v3946_v21, %v3598_v32  ;;  %v4271_v19 = vadd.f32 %v3946_v21, %v3599_v33  ;;  %v9135_v53 = vpop.permute.xlu1 %3488  ;;  %v10020_v32 = vld [vmem:[#allocation21_spill] sm:$0xff] }
 0x626   :  { %v10021_v33 = vld [vmem:[#allocation185_spill] sm:$0xff] }
 0x627   :  { %4462 = vst [vmem:[%s9387_s5 + $0x330] sm:$0xff] %v4270_v14  ;;  %4463 = vst.msk [vmem:[%s9387_s5 + $0x338] sm:$0xff] %vm853_vm0, %v4271_v19  ;;  %v10022_v14 = vld [vmem:[#allocation169_spill] sm:$0xff] }
 0x628   :  { %v3284_v62 = vpop.permute.xlu0 %3283 }
 0x629   :  { %v3921_v6 = vpop.permute.xlu1 %3920  ;;  %v3602_v54 = vmul.f32 %v3284_v62, %v10008_v42  ;;  %v3603_v13 = vmul.f32 %v3284_v62, %v10009_v43  ;;  %v10024_v43 = vld [vmem:[#allocation29_spill] sm:$0xff] }
 0x62a   :  { %v4260_v24 = vadd.f32 %v3921_v6, %v3588_v58  ;;  %v4261_v3 = vadd.f32 %v3921_v6, %v3589_v36 }
 0x62c   :  { %4452 = vst [vmem:[%s9387_s5 + $0x2e0] sm:$0xff] %v4260_v24  ;;  %4453 = vst.msk [vmem:[%s9387_s5 + $0x2e8] sm:$0xff] %vm853_vm0, %v4261_v3  ;;  %v3956_v17 = vpop.permute.xlu0 %3955 }
 0x62d   :  { %v4274_v38 = vadd.f32 %v3956_v17, %v3602_v54  ;;  %v4275_v41 = vadd.f32 %v3956_v17, %v3603_v13  ;;  %v4151_v9 = vpop.permute.xlu1 %4150  ;;  %v10027_v17 = vld [vmem:[#allocation174_spill] sm:$0xff] }
 0x62e   :  { %v4352_v2 = vadd.f32 %v4151_v9, %v3680_v11  ;;  %v4353_v45 = vadd.f32 %v4151_v9, %v3681_v49 }
 0x62f   :  { %4466 = vst [vmem:[%s9387_s5 + $0x350] sm:$0xff] %v4274_v38  ;;  %4467 = vst.msk [vmem:[%s9387_s5 + $0x358] sm:$0xff] %vm853_vm0, %v4275_v41 }
 0x630   :  { %4544 = vst [vmem:[%s9387_s5 + $0x5c0] sm:$0xff] %v4352_v2  ;;  %4545 = vst.msk [vmem:[%s9387_s5 + $0x5c8] sm:$0xff] %vm853_vm0, %v4353_v45  ;;  %v3294_v60 = vpop.permute.xlu0 %3293 }
 0x631   :  { %v3259_v51 = vpop.permute.xlu1 %3258  ;;  %v3606_v5 = vmul.f32 %v3294_v60, %v10012_v23  ;;  %v3607_v35 = vmul.f32 %v3294_v60, %v10013_v57  ;;  %v10028_v57 = vld [vmem:[#allocation36_spill] sm:$0xff] }
 0x632   :  { %v3592_v25 = vmul.f32 %v3259_v51, %v10014_v37  ;;  %v3593_v44 = vmul.f32 %v3259_v51, %v10015_v16  ;;  %v10029_v37 = vld [vmem:[#allocation188_spill] sm:$0xff]  ;;  %v10030_v16 = vld [vmem:[#allocation178_spill] sm:$0xff] }
 0x634   :  { %v3966_v47 = vpop.permute.xlu0 %3965 }
 0x635   :  { %v4278_v30 = vadd.f32 %v3966_v47, %v3606_v5  ;;  %v4279_v59 = vadd.f32 %v3966_v47, %v3607_v35  ;;  %v3931_v1 = vpop.permute.xlu1 %3930  ;;  %v10031_v47 = vld [vmem:[#allocation179_spill] sm:$0xff] }
 0x636   :  { %v4264_v7 = vadd.f32 %v3931_v1, %v3592_v25  ;;  %v4265_v15 = vadd.f32 %v3931_v1, %v3593_v44 }
 0x637   :  { %4470 = vst [vmem:[%s9387_s5 + $0x370] sm:$0xff] %v4278_v30  ;;  %4471 = vst.msk [vmem:[%s9387_s5 + $0x378] sm:$0xff] %vm853_vm0, %v4279_v59 }
 0x638   :  { %4456 = vst [vmem:[%s9387_s5 + $0x300] sm:$0xff] %v4264_v7  ;;  %4457 = vst.msk [vmem:[%s9387_s5 + $0x308] sm:$0xff] %vm853_vm0, %v4265_v15  ;;  %v3304_v61 = vpop.permute.xlu0 %3303 }
 0x639   :  { %v3269_v34 = vpop.permute.xlu1 %3268  ;;  %v3610_v46 = vmul.f32 %v3304_v61, %v10016_v31  ;;  %v3611_v0 = vmul.f32 %v3304_v61, %v10017_v18  ;;  %v10032_v18 = vld [vmem:[#allocation140_spill] sm:$0xff] }
 0x63a   :  { %v3596_v56 = vmul.f32 %v3269_v34, %v10018_v39  ;;  %v3597_v20 = vmul.f32 %v3269_v34, %v10019_v12  ;;  %v10033_v39 = vld [vmem:[#allocation46_spill] sm:$0xff]  ;;  %v10034_v12 = vld [vmem:[#allocation183_spill] sm:$0xff] }
 0x63c   :  { %v3976_v50 = vpop.permute.xlu0 %3975 }
 0x63d   :  { %v4282_v55 = vadd.f32 %v3976_v50, %v3610_v46  ;;  %v4283_v52 = vadd.f32 %v3976_v50, %v3611_v0  ;;  %v3941_v27 = vpop.permute.xlu1 %3940  ;;  %v10035_v50 = vld [vmem:[#allocation184_spill] sm:$0xff] }
 0x63e   :  { %v4268_v26 = vadd.f32 %v3941_v27, %v3596_v56  ;;  %v4269_v63 = vadd.f32 %v3941_v27, %v3597_v20 }
 0x63f   :  { %4474 = vst [vmem:[%s9387_s5 + $0x390] sm:$0xff] %v4282_v55  ;;  %4475 = vst.msk [vmem:[%s9387_s5 + $0x398] sm:$0xff] %vm853_vm0, %v4283_v52 }
 0x640   :  { %4460 = vst [vmem:[%s9387_s5 + $0x320] sm:$0xff] %v4268_v26  ;;  %4461 = vst.msk [vmem:[%s9387_s5 + $0x328] sm:$0xff] %vm853_vm0, %v4269_v63  ;;  %v3314_v29 = vpop.permute.xlu0 %3313 }
 0x641   :  { %v3279_v10 = vpop.permute.xlu1 %3278  ;;  %v3614_v8 = vmul.f32 %v3314_v29, %v10020_v32  ;;  %v3615_v21 = vmul.f32 %v3314_v29, %v10021_v33  ;;  %v10036_v33 = vld [vmem:[#allocation142_spill] sm:$0xff] }
 0x642   :  { %v3600_v19 = vmul.f32 %v3279_v10, %v10022_v14  ;;  %v3601_v58 = vmul.f32 %v3279_v10, %v10023_v28  ;;  %v10037_v14 = vld [vmem:[#allocation54_spill] sm:$0xff]  ;;  %v10038_v28 = vld [vmem:[#allocation25_spill] sm:$0xff] }
 0x644   :  { %v3986_v48 = vpop.permute.xlu0 %3985 }
 0x645   :  { %v4286_v36 = vadd.f32 %v3986_v48, %v3614_v8  ;;  %v4287_v62 = vadd.f32 %v3986_v48, %v3615_v21  ;;  %v3951_v6 = vpop.permute.xlu1 %3950  ;;  %v10039_v48 = vld [vmem:[#allocation27_spill] sm:$0xff] }
 0x646   :  { %v4272_v24 = vadd.f32 %v3951_v6, %v3600_v19  ;;  %v4273_v3 = vadd.f32 %v3951_v6, %v3601_v58 }
 0x647   :  { %4478 = vst [vmem:[%s9387_s5 + $0x3b0] sm:$0xff] %v4286_v36  ;;  %4479 = vst.msk [vmem:[%s9387_s5 + $0x3b8] sm:$0xff] %vm853_vm0, %v4287_v62 }
 0x648   :  { %4464 = vst [vmem:[%s9387_s5 + $0x340] sm:$0xff] %v4272_v24  ;;  %4465 = vst.msk [vmem:[%s9387_s5 + $0x348] sm:$0xff] %vm853_vm0, %v4273_v3  ;;  %v3324_v42 = vpop.permute.xlu0 %3323 }
 0x649   :  { %v3289_v54 = vpop.permute.xlu1 %3288  ;;  %v3618_v13 = vmul.f32 %v3324_v42, %v10024_v43  ;;  %v3619_v11 = vmul.f32 %v3324_v42, %v10025_v22  ;;  %v10040_v22 = vld [vmem:[#allocation192_spill] sm:$0xff] }
 0x64a   :  { %v3604_v49 = vmul.f32 %v3289_v54, %v10026_v4  ;;  %v3605_v38 = vmul.f32 %v3289_v54, %v10027_v17  ;;  %v10041_v4 = vld [vmem:[#allocation195_spill] sm:$0xff]  ;;  %v10042_v17 = vld [vmem:[#allocation34_spill] sm:$0xff] }
 0x64c   :  { %v3996_v41 = vpop.permute.xlu0 %3995 }
 0x64d   :  { %v4290_v9 = vadd.f32 %v3996_v41, %v3618_v13  ;;  %v4291_v2 = vadd.f32 %v3996_v41, %v3619_v11  ;;  %v3961_v45 = vpop.permute.xlu1 %3960  ;;  %v10043_v41 = vld [vmem:[#allocation187_spill] sm:$0xff] }
 0x64e   :  { %v4276_v60 = vadd.f32 %v3961_v45, %v3604_v49  ;;  %v4277_v51 = vadd.f32 %v3961_v45, %v3605_v38 }
 0x64f   :  { %4482 = vst [vmem:[%s9387_s5 + $0x3d0] sm:$0xff] %v4290_v9  ;;  %4483 = vst.msk [vmem:[%s9387_s5 + $0x3d8] sm:$0xff] %vm853_vm0, %v4291_v2 }
 0x650   :  { %4468 = vst [vmem:[%s9387_s5 + $0x360] sm:$0xff] %v4276_v60  ;;  %4469 = vst.msk [vmem:[%s9387_s5 + $0x368] sm:$0xff] %vm853_vm0, %v4277_v51  ;;  %v3334_v23 = vpop.permute.xlu0 %3333 }
 0x651   :  { %v3299_v5 = vpop.permute.xlu1 %3298  ;;  %v3622_v35 = vmul.f32 %v3334_v23, %v10028_v57  ;;  %v3623_v25 = vmul.f32 %v3334_v23, %v10029_v37  ;;  %v10044_v37 = vld [vmem:[#allocation70_spill] sm:$0xff] }
 0x652   :  { %v3608_v44 = vmul.f32 %v3299_v5, %v10030_v16  ;;  %v3609_v30 = vmul.f32 %v3299_v5, %v10031_v47  ;;  %v10045_v16 = vld [vmem:[#allocation107_spill] sm:$0xff]  ;;  %v10046_v47 = vld [vmem:[#allocation141_spill] sm:$0xff] }
 0x654   :  { %v4006_v59 = vpop.permute.xlu0 %4005 }
 0x655   :  { %v4294_v1 = vadd.f32 %v4006_v59, %v3622_v35  ;;  %v4295_v7 = vadd.f32 %v4006_v59, %v3623_v25  ;;  %v3971_v15 = vpop.permute.xlu1 %3970  ;;  %v10047_v59 = vld [vmem:[#allocation40_spill] sm:$0xff] }
 0x656   :  { %v4280_v61 = vadd.f32 %v3971_v15, %v3608_v44  ;;  %v4281_v34 = vadd.f32 %v3971_v15, %v3609_v30 }
 0x657   :  { %4486 = vst [vmem:[%s9387_s5 + $0x3f0] sm:$0xff] %v4294_v1  ;;  %4487 = vst.msk [vmem:[%s9387_s5 + $0x3f8] sm:$0xff] %vm853_vm0, %v4295_v7 }
 0x658   :  { %4472 = vst [vmem:[%s9387_s5 + $0x380] sm:$0xff] %v4280_v61  ;;  %4473 = vst.msk [vmem:[%s9387_s5 + $0x388] sm:$0xff] %vm853_vm0, %v4281_v34  ;;  %v3344_v31 = vpop.permute.xlu0 %3343 }
 0x659   :  { %v3309_v46 = vpop.permute.xlu1 %3308  ;;  %v3626_v0 = vmul.f32 %v3344_v31, %v10032_v18  ;;  %v3627_v56 = vmul.f32 %v3344_v31, %v10033_v39  ;;  %v10048_v18 = vld [vmem:[#allocation75_spill] sm:$0xff]  ;;  %v10049_v39 = vld [vmem:[#allocation77_spill] sm:$0xff] }
 0x65a   :  { %v3612_v20 = vmul.f32 %v3309_v46, %v10034_v12  ;;  %v3613_v55 = vmul.f32 %v3309_v46, %v10035_v50 }
 0x65c   :  { %v4016_v52 = vpop.permute.xlu0 %4015 }
 0x65d   :  { %v4298_v27 = vadd.f32 %v4016_v52, %v3626_v0  ;;  %v4299_v26 = vadd.f32 %v4016_v52, %v3627_v56  ;;  %v3981_v63 = vpop.permute.xlu1 %3980  ;;  %v3686_v0 = vmul.f32 %v9061_v40, %v10048_v18  ;;  %v3687_v56 = vmul.f32 %v9061_v40, %v10049_v39 }
 0x65e   :  { %v4284_v29 = vadd.f32 %v3981_v63, %v3612_v20  ;;  %v4285_v10 = vadd.f32 %v3981_v63, %v3613_v55  ;;  %v10050_v55 = vld [vmem:[#allocation144_spill] sm:$0xff] }
 0x65f   :  { %4490 = vst [vmem:[%s9387_s5 + $0x410] sm:$0xff] %v4298_v27  ;;  %4491 = vst.msk [vmem:[%s9387_s5 + $0x418] sm:$0xff] %vm853_vm0, %v4299_v26  ;;  %v10051_v27 = vld [vmem:[#allocation48_spill] sm:$0xff] }
 0x660   :  { %4476 = vst [vmem:[%s9387_s5 + $0x3a0] sm:$0xff] %v4284_v29  ;;  %4477 = vst.msk [vmem:[%s9387_s5 + $0x3a8] sm:$0xff] %vm853_vm0, %v4285_v10  ;;  %v3354_v32 = vpop.permute.xlu0 %3353 }
 0x661   :  { %v3319_v8 = vpop.permute.xlu1 %3318  ;;  %v3630_v21 = vmul.f32 %v3354_v32, %v10036_v33  ;;  %v3631_v19 = vmul.f32 %v3354_v32, %v10037_v14 }
 0x662   :  { %v3616_v58 = vmul.f32 %v3319_v8, %v10038_v28  ;;  %v3617_v36 = vmul.f32 %v3319_v8, %v10039_v48  ;;  %v10052_v8 = vld [vmem:[#allocation147_spill] sm:$0xff] }
 0x664   :  { %v4026_v62 = vpop.permute.xlu0 %4025 }
 0x665   :  { %v4302_v6 = vadd.f32 %v4026_v62, %v3630_v21  ;;  %v4303_v24 = vadd.f32 %v4026_v62, %v3631_v19  ;;  %v3991_v3 = vpop.permute.xlu1 %3990  ;;  %v10053_v21 = vld [vmem:[#allocation56_spill] sm:$0xff] }
 0x666   :  { %v4288_v42 = vadd.f32 %v3991_v3, %v3616_v58  ;;  %v4289_v54 = vadd.f32 %v3991_v3, %v3617_v36  ;;  %v10054_v36 = vld [vmem:[#allocation197_spill] sm:$0xff] }
 0x667   :  { %4494 = vst [vmem:[%s9387_s5 + $0x430] sm:$0xff] %v4302_v6  ;;  %4495 = vst.msk [vmem:[%s9387_s5 + $0x438] sm:$0xff] %vm853_vm0, %v4303_v24  ;;  %v10055_v6 = vld [vmem:[#allocation199_spill] sm:$0xff] }
 0x668   :  { %4480 = vst [vmem:[%s9387_s5 + $0x3c0] sm:$0xff] %v4288_v42  ;;  %4481 = vst.msk [vmem:[%s9387_s5 + $0x3c8] sm:$0xff] %vm853_vm0, %v4289_v54  ;;  %v3364_v43 = vpop.permute.xlu0 %3363 }
 0x669   :  { %v3329_v13 = vpop.permute.xlu1 %3328  ;;  %v3634_v11 = vmul.f32 %v3364_v43, %v10040_v22  ;;  %v3635_v49 = vmul.f32 %v3364_v43, %v10041_v4  ;;  %v10056_v43 = vld [vmem:[#allocation71_spill] sm:$0xff]  ;;  %v10057_v22 = vld [vmem:[#allocation73_spill] sm:$0xff] }
 0x66a   :  { %v3620_v38 = vmul.f32 %v3329_v13, %v10042_v17  ;;  %v3621_v9 = vmul.f32 %v3329_v13, %v10043_v41  ;;  %v3684_v13 = vmul.f32 %v9135_v53, %v10056_v43 }
 0x66c   :  { %v4036_v2 = vpop.permute.xlu0 %4035 }
 0x66d   :  { %v4306_v45 = vadd.f32 %v4036_v2, %v3634_v11  ;;  %v4307_v60 = vadd.f32 %v4036_v2, %v3635_v49  ;;  %v4001_v51 = vpop.permute.xlu1 %4000  ;;  %v3685_v11 = vmul.f32 %v9135_v53, %v10057_v22 }
 0x66e   :  { %v4292_v23 = vadd.f32 %v4001_v51, %v3620_v38  ;;  %v4293_v5 = vadd.f32 %v4001_v51, %v3621_v9 }
 0x66f   :  { %4498 = vst [vmem:[%s9387_s5 + $0x450] sm:$0xff] %v4306_v45  ;;  %4499 = vst.msk [vmem:[%s9387_s5 + $0x458] sm:$0xff] %vm853_vm0, %v4307_v60 }
 0x670   :  { %4484 = vst [vmem:[%s9387_s5 + $0x3e0] sm:$0xff] %v4292_v23  ;;  %4485 = vst.msk [vmem:[%s9387_s5 + $0x3e8] sm:$0xff] %vm853_vm0, %v4293_v5  ;;  %v3374_v57 = vpop.permute.xlu0 %3373 }
 0x671   :  { %v3339_v35 = vpop.permute.xlu1 %3338  ;;  %v3638_v25 = vmul.f32 %v3374_v57, %v10044_v37  ;;  %v3639_v44 = vmul.f32 %v3374_v57, %v10045_v16 }
 0x672   :  { %v3624_v30 = vmul.f32 %v3339_v35, %v10046_v47  ;;  %v3625_v1 = vmul.f32 %v3339_v35, %v10047_v59 }
 0x674   :  { %v4046_v7 = vpop.permute.xlu0 %4045 }
 0x675   :  { %v4310_v15 = vadd.f32 %v4046_v7, %v3638_v25  ;;  %v4311_v61 = vadd.f32 %v4046_v7, %v3639_v44  ;;  %v4011_v34 = vpop.permute.xlu1 %4010 }
 0x676   :  { %v4296_v31 = vadd.f32 %v4011_v34, %v3624_v30  ;;  %v4297_v46 = vadd.f32 %v4011_v34, %v3625_v1 }
 0x677   :  { %4502 = vst [vmem:[%s9387_s5 + $0x470] sm:$0xff] %v4310_v15  ;;  %4503 = vst.msk [vmem:[%s9387_s5 + $0x478] sm:$0xff] %vm853_vm0, %v4311_v61 }
 0x678   :  { %4488 = vst [vmem:[%s9387_s5 + $0x400] sm:$0xff] %v4296_v31  ;;  %4489 = vst.msk [vmem:[%s9387_s5 + $0x408] sm:$0xff] %vm853_vm0, %v4297_v46  ;;  %v4166_v12 = vpop.permute.xlu0 %4165 }
 0x679   :  { %v4358_v40 = vadd.f32 %v4166_v12, %v3686_v0  ;;  %v4359_v20 = vadd.f32 %v4166_v12, %v3687_v56  ;;  %v3349_v50 = vpop.permute.xlu1 %3348 }
 0x67a   :  { %v3628_v52 = vmul.f32 %v3349_v50, %v10050_v55  ;;  %v3629_v26 = vmul.f32 %v3349_v50, %v10051_v27 }
 0x67b   :  { %4550 = vst [vmem:[%s9387_s5 + $0x5f0] sm:$0xff] %v4358_v40  ;;  %4551 = vst.msk [vmem:[%s9387_s5 + $0x5f8] sm:$0xff] %vm853_vm0, %v4359_v20 }
 0x67d   :  { %v4021_v63 = vpop.permute.xlu1 %4020 }
 0x67e   :  { %v4300_v29 = vadd.f32 %v4021_v63, %v3628_v52  ;;  %v4301_v10 = vadd.f32 %v4021_v63, %v3629_v26 }
 0x680   :  { %4492 = vst [vmem:[%s9387_s5 + $0x420] sm:$0xff] %v4300_v29  ;;  %4493 = vst.msk [vmem:[%s9387_s5 + $0x428] sm:$0xff] %vm853_vm0, %v4301_v10 }
 0x681   :  { %v3359_v32 = vpop.permute.xlu1 %3358 }
 0x682   :  { %v3632_v33 = vmul.f32 %v3359_v32, %v10052_v8  ;;  %v3633_v14 = vmul.f32 %v3359_v32, %v10053_v21 }
 0x685   :  { %v4031_v19 = vpop.permute.xlu1 %4030 }
 0x686   :  { %v4304_v28 = vadd.f32 %v4031_v19, %v3632_v33  ;;  %v4305_v58 = vadd.f32 %v4031_v19, %v3633_v14 }
 0x688   :  { %4496 = vst [vmem:[%s9387_s5 + $0x440] sm:$0xff] %v4304_v28  ;;  %4497 = vst.msk [vmem:[%s9387_s5 + $0x448] sm:$0xff] %vm853_vm0, %v4305_v58 }
 0x689   :  { %v3369_v48 = vpop.permute.xlu1 %3368 }
 0x68a   :  { %v3636_v62 = vmul.f32 %v3369_v48, %v10054_v36  ;;  %v3637_v24 = vmul.f32 %v3369_v48, %v10055_v6 }
 0x68d   :  { %v4041_v3 = vpop.permute.xlu1 %4040 }
 0x68e   :  { %v4308_v42 = vadd.f32 %v4041_v3, %v3636_v62  ;;  %v4309_v54 = vadd.f32 %v4041_v3, %v3637_v24 }
 0x690   :  { %4500 = vst [vmem:[%s9387_s5 + $0x460] sm:$0xff] %v4308_v42  ;;  %4501 = vst.msk [vmem:[%s9387_s5 + $0x468] sm:$0xff] %vm853_vm0, %v4309_v54 }
 0x691   :  { %v4161_v4 = vpop.permute.xlu1 %4160 }
 0x692   :  { %v4356_v49 = vadd.f32 %v4161_v4, %v3684_v13  ;;  %v4357_v17 = vadd.f32 %v4161_v4, %v3685_v11 }
 0x694   :  { %4548 = vst [vmem:[%s9387_s5 + $0x5e0] sm:$0xff] %v4356_v49  ;;  %4549 = vst.msk [vmem:[%s9387_s5 + $0x5e8] sm:$0xff] %vm853_vm0, %v4357_v17 }

</bundles_post_ra>
